<compile_context>
chip_gen: v7x
topology: tpu7x:2x2x1
jax: 0.10.0
libtpu: 0.0.40
codegen_flags: <defaults>
</compile_context>

<pallas_src>
import functools

import jax
import jax.numpy as jnp
from jax import lax
from jax.experimental import pallas as pl
from jax.experimental.pallas import tpu as pltpu

_MAX_TILE_H = 256
_MAX_TILE_COUT = 256
_PW_CHUNK_BYTES = 4 * 1024 * 1024      # cap for pointwise per-chunk temporaries


def _round_up(x, m):
    return ((x + m - 1) // m) * m


def _device_kind():
    try:
        return jax.devices()[0].device_kind.lower()
    except Exception:
        return ""


def _vmem_capacity_bytes(kind):
    try:
        cap = getattr(pltpu.get_tpu_info(), "vmem_capacity_bytes", None)
        if cap:
            return int(cap)
    except Exception:
        pass
    if "v7" in kind or "7x" in kind:
        return 64 * 1024 * 1024
    return 128 * 1024 * 1024            # v5e / v6e


def _sepconv_kernel(x_ref, halo_ref, dw_ref, pw_ref, o_ref, acc_ref, *,
                    k, stride, dilation, tile_h, w_out, pw_chunk_h):
    """One (batch, H-tile, Cout-tile) grid step.

    x_ref   : (1, tile_h*stride, Wp, Cin)   main input rows of this H tile
    halo_ref: (1, 1, halo, Wp, Cin)         extra bottom rows (tap overlap into next tile)
    dw_ref  : (K, K, Cin)                   depthwise filter (tap dtype)
    pw_ref  : (Cin, TCout)                  pointwise filter slab (MXU dtype)
    o_ref   : (1, tile_h, w_out, TCout)     output tile (NHWC)
    acc_ref : (tile_h, w_out, Cin) f32      depthwise result, reused across Cout tiles
    """
    co = pl.program_id(2)
    main_rows = tile_h * stride
    w_span = (w_out - 1) * stride + 1

    @pl.when(co == 0)
    def _depthwise():
        dw = dw_ref[...]                                   # (K, K, Cin)
        first = True
        for kh in range(k):
            h0 = kh * dilation
            # output rows whose input row for this tap lies inside the main block
            n_main = min(tile_h, (main_rows - 1 - h0) // stride + 1) if h0 < main_rows else 0
            n_halo = tile_h - n_main
            for kw in range(k):
                w0 = kw * dilation
                scale = dw[kh, kw, :]
                if n_main > 0:
                    h_span = (n_main - 1) * stride + 1
                    band = x_ref[0, h0:h0 + h_span, w0:w0 + w_span, :]
                    if stride > 1:
                        # TODO(synk): wrapper-side space-to-depth would make these dense loads.
                        band = band[::stride, ::stride, :]
                    contrib = (band * scale).astype(jnp.float32)
                    if first:
                        acc_ref[0:n_main] = contrib
                    else:
                        acc_ref[0:n_main] += contrib
                if n_halo > 0:
                    hs = h0 + n_main * stride - main_rows
                    hspan = (n_halo - 1) * stride + 1
                    hband = halo_ref[0, 0, hs:hs + hspan, w0:w0 + w_span, :]
                    if stride > 1:
                        hband = hband[::stride, ::stride, :]
                    acc_ref[n_main:tile_h] += (hband * scale).astype(jnp.float32)
                first = False

    # Pointwise 1x1 conv: chunked (rows, Cin) @ (Cin, TCout) MXU matmuls written straight
    # into o_ref, so no full-tile f32 matmul result / lhs cast is live at once.
    cin = acc_ref.shape[-1]
    tcout = pw_ref.shape[-1]
    pw = pw_ref[...]
    h_start = 0
    while h_start < tile_h:
        ch = min(pw_chunk_h, tile_h - h_start)
        lhs = acc_ref[h_start:h_start + ch].reshape(ch * w_out, cin).astype(pw.dtype)
        y = jnp.dot(lhs, pw, preferred_element_type=jnp.float32)
        o_ref[0, h_start:h_start + ch] = y.reshape(ch, w_out, tcout).astype(o_ref.dtype)
        h_start += ch


def seperable_conv2d_same(x_nchw, dw_torch, pw_torch, *, kernel_size=3, stride=1,
                          dilation=1, tile_h=None, allow_bf16_pointwise=False):
    """Forward pass of SeperableConv2D_same.

    x_nchw  : (B, Cin, H, W)
    dw_torch: (Cin, 1, K, K)     depthwise weight, PyTorch layout
    pw_torch: (Cout, Cin, 1, 1)  pointwise weight, PyTorch layout
    returns : (B, Cout, Hout, Wout)
    """
    B, Cin, H, W = x_nchw.shape
    Cout = pw_torch.shape[0]
    K = kernel_size
    in_dtype = x_nchw.dtype
    itemsize = jnp.dtype(in_dtype).itemsize

    # fixed_padding (reflect), identical to the PyTorch module.
    k_eff = K + (K - 1) * (dilation - 1)
    pad_total = k_eff - 1
    pad_beg = pad_total // 2
    pad_end = pad_total - pad_beg

    # TODO(synk): keeping activations NHWC model-wide would remove these transposes.
    x_nhwc = jnp.transpose(x_nchw, (0, 2, 3, 1))
    x_pad = jnp.pad(x_nhwc, ((0, 0), (pad_beg, pad_end), (pad_beg, pad_end), (0, 0)),
                    mode='reflect')
    Hp, Wp = x_pad.shape[1], x_pad.shape[2]
    h_out = (Hp - k_eff) // stride + 1
    w_out = (Wp - k_eff) // stride + 1

    # ---- generation-aware VMEM budget / compute dtypes ----
    kind = _device_kind()
    vmem_cap = _vmem_capacity_bytes(kind)
    vmem_budget = int(vmem_cap * 0.45)
    vmem_limit = int(vmem_cap * 0.8)

    vpu_bf16_ok = "v5" not in kind                       # v5e has no bf16 VALU
    tap_dtype = jnp.bfloat16 if (in_dtype == jnp.bfloat16 and vpu_bf16_ok) else jnp.float32
    mxu_dtype = jnp.bfloat16 if (in_dtype == jnp.bfloat16 or allow_bf16_pointwise) \
        else jnp.float32
    tap_itemsize = jnp.dtype(tap_dtype).itemsize
    mxu_itemsize = jnp.dtype(mxu_dtype).itemsize

    # ---- Cout tiling: lane-dense (multiple of 128), <=256 to match MXU native N ----
    tc_out = min(_MAX_TILE_COUT, _round_up(Cout, 128))
    n_co = pl.cdiv(Cout, tc_out)
    cout_pad = n_co * tc_out

    # ---- weights (already in their in-kernel compute dtypes) ----
    dw = jnp.transpose(dw_torch[:, 0, :, :], (1, 2, 0)).astype(tap_dtype)   # (K, K, Cin)
    pw = jnp.transpose(pw_torch[:, :, 0, 0], (1, 0))                        # (Cin, Cout)
    if cout_pad != Cout:
        pw = jnp.pad(pw, ((0, 0), (0, cout_pad - Cout)))
    pw = pw.astype(mxu_dtype)

    halo = max(k_eff - stride, 1)

    def pw_rows_per_chunk(th):
        per_row = w_out * (Cin * mxu_itemsize + tc_out * (4 + itemsize))
        return max(1, min(th, _PW_CHUNK_BYTES // max(per_row, 1)))

    def vmem_bytes(th):
        x_main_b = 2 * th * stride * Wp * Cin * itemsize          # double-buffered block
        x_halo_b = 2 * halo * Wp * Cin * itemsize
        out_b = 2 * th * w_out * tc_out * itemsize
        wts_b = 2 * (K * K * Cin * tap_itemsize + Cin * tc_out * mxu_itemsize)
        acc_b = th * w_out * Cin * 4                              # f32 scratch
        dw_tmp = th * w_out * Cin * (itemsize + tap_itemsize + 4)  # tap load + f32 product
        pr = pw_rows_per_chunk(th)
        pw_tmp = pr * w_out * (Cin * mxu_itemsize + tc_out * (4 + itemsize))
        return x_main_b + x_halo_b + out_b + wts_b + acc_b + dw_tmp + pw_tmp

    # ---- H tiling ----
    if tile_h is None:
        if h_out <= _MAX_TILE_H and vmem_bytes(h_out) <= vmem_budget:
            tile_h = h_out
        else:
            tile_h = max(8, min((h_out // 8) * 8, _MAX_TILE_H))
            while tile_h > 8 and vmem_bytes(tile_h) > vmem_budget:
                tile_h -= 8
        # v7x has 2 TensorCores: split H so both get "parallel" grid work.
        if ("v7" in kind or "7x" in kind) and B == 1 and tile_h >= h_out and h_out >= 16:
            tile_h = max(8, _round_up(pl.cdiv(h_out, 2), 8))
    # TODO(synk): add W tiling as a guaranteed-fit fallback for extremely wide Wp*Cin tiles.
    n_h = pl.cdiv(h_out, tile_h)
    h_out_pad = n_h * tile_h
    pw_chunk_h = pw_rows_per_chunk(tile_h)
    vmem_limit = max(vmem_limit, min(int(vmem_cap * 0.9), vmem_bytes(tile_h) + (4 << 20)))

    # Pad rows so every main tile and its halo window is in bounds (extra rows are zeros and
    # only feed output rows that are cropped below).
    rows_needed = n_h * tile_h * stride + halo
    if rows_needed > Hp:
        x_pad = jnp.pad(x_pad, ((0, 0), (0, rows_needed - Hp), (0, 0), (0, 0)))

    # Tiny per-tile halo array (B, n_h, halo, Wp, Cin): bottom `halo` rows of each tile window.
    halo_rows = (jnp.arange(1, n_h + 1)[:, None] * (tile_h * stride)
                 + jnp.arange(halo)[None, :])
    x_halo = x_pad[:, halo_rows]

    kernel = functools.partial(
        _sepconv_kernel, k=K, stride=stride, dilation=dilation,
        tile_h=tile_h, w_out=w_out, pw_chunk_h=pw_chunk_h)

    flops = 2 * B * h_out * w_out * Cin * (K * K + cout_pad)
    bytes_accessed = ((x_pad.size + x_halo.size) * itemsize
                      + B * h_out_pad * w_out * cout_pad * itemsize
                      + dw.size * tap_itemsize + pw.size * mxu_itemsize)

    out_nhwc = pl.pallas_call(
        kernel,
        out_shape=jax.ShapeDtypeStruct((B, h_out_pad, w_out, cout_pad), in_dtype),
        grid_spec=pltpu.PrefetchScalarGridSpec(
            num_scalar_prefetch=0,
            grid=(B, n_h, n_co),
            in_specs=[
                pl.BlockSpec((1, tile_h * stride, Wp, Cin), lambda b, h, c: (b, h, 0, 0)),
                pl.BlockSpec((1, 1, halo, Wp, Cin), lambda b, h, c: (b, h, 0, 0, 0)),
                pl.BlockSpec((K, K, Cin), lambda b, h, c: (0, 0, 0)),
                pl.BlockSpec((Cin, tc_out), lambda b, h, c: (0, c)),
            ],
            out_specs=pl.BlockSpec((1, tile_h, w_out, tc_out),
                                   lambda b, h, c: (b, h, 0, c)),
            scratch_shapes=[pltpu.VMEM((tile_h, w_out, Cin), jnp.float32)],
        ),
        compiler_params=pltpu.CompilerParams(
            dimension_semantics=("parallel", "parallel", "arbitrary"),
            vmem_limit_bytes=int(vmem_limit)),
        cost_estimate=pl.CostEstimate(flops=flops, transcendentals=0,
                                      bytes_accessed=int(bytes_accessed)),
    )(x_pad, x_halo, dw, pw)

    if h_out_pad != h_out or cout_pad != Cout:
        out_nhwc = out_nhwc[:, :h_out, :, :Cout]
    return jnp.transpose(out_nhwc, (0, 3, 1, 2))    # back to NCHW


def _reference(x_nchw, dw_torch, pw_torch, *, kernel_size=3, stride=1, dilation=1):
    """Pure-JAX reference mirroring the PyTorch module (for verification)."""
    K = kernel_size
    k_eff = K + (K - 1) * (dilation - 1)
    pad_total = k_eff - 1
    pad_beg = pad_total // 2
    pad_end = pad_total - pad_beg
    xp = jnp.pad(x_nchw, ((0, 0), (0, 0), (pad_beg, pad_end), (pad_beg, pad_end)),
                 mode='reflect')
    Cin = x_nchw.shape[1]
    y = lax.conv_general_dilated(
        xp, dw_torch, window_strides=(stride, stride), padding='VALID',
        rhs_dilation=(dilation, dilation), feature_group_count=Cin,
        dimension_numbers=('NCHW', 'OIHW', 'NCHW'))
    y = lax.conv_general_dilated(
        y, pw_torch, window_strides=(1, 1), padding='VALID',
        dimension_numbers=('NCHW', 'OIHW', 'NCHW'))
    return y


if __name__ == "__main__":
    def run_case(key, *, B, Cin, H, W, Cout, K, stride, dilation, tile_h):
        kx, kd, kp = jax.random.split(key, 3)
        x = jax.random.normal(kx, (B, Cin, H, W), dtype=jnp.float32)
        dw_t = jax.random.normal(kd, (Cin, 1, K, K), dtype=jnp.float32) * 0.1
        pw_t = jax.random.normal(kp, (Cout, Cin, 1, 1), dtype=jnp.float32) * 0.1
        out = seperable_conv2d_same(x, dw_t, pw_t, kernel_size=K, stride=stride,
                                    dilation=dilation, tile_h=tile_h)
        out = jax.block_until_ready(out)
        ref = jax.block_until_ready(
            _reference(x, dw_t, pw_t, kernel_size=K, stride=stride, dilation=dilation))
        assert out.shape == ref.shape, (out.shape, ref.shape)
        err = float(jnp.max(jnp.abs(out - ref)))
        assert err < 1e-4, err

    k0, k1, k2, k3 = jax.random.split(jax.random.PRNGKey(0), 4)
    # Module-default config (single H tile, single Cout tile).
    run_case(k0, B=2, Cin=4, H=16, W=16, Cout=8, K=3, stride=1, dilation=1, tile_h=None)
    # Multi H-tile path (halo rows exercised).
    run_case(k1, B=2, Cin=4, H=16, W=16, Cout=8, K=3, stride=1, dilation=1, tile_h=8)
    # Multi Cout-tile path (depthwise scratch reused across Cout tiles).
    run_case(k2, B=1, Cin=8, H=16, W=16, Cout=512, K=3, stride=1, dilation=1, tile_h=8)
    # Dilated config (rate=2), multi H-tile (large halo).
    run_case(k3, B=1, Cin=4, H=16, W=16, Cout=8, K=3, stride=1, dilation=2, tile_h=8)

    print("KERNEL_OK")
</pallas_src>

<mosaic_0001>
module attributes {stable_mosaic.version = 11 : i64} {
  func.func @_sepconv_kernel(%arg0: i32, %arg1: i32, %arg2: i32, %arg3: memref<1x16x18x4xf32, #tpu.memory_space<vmem>>, %arg4: memref<1x1x2x18x4xf32, #tpu.memory_space<vmem>>, %arg5: memref<3x3x4xf32, #tpu.memory_space<vmem>>, %arg6: memref<4x128xf32, #tpu.memory_space<vmem>>, %arg7: memref<1x16x16x128xf32, #tpu.memory_space<vmem>>, %arg8: memref<16x16x4xf32, #tpu.memory_space<vmem>>) attributes {dimension_semantics = [#tpu.dimension_semantics<parallel>, #tpu.dimension_semantics<parallel>, #tpu.dimension_semantics<arbitrary>], iteration_bounds = array<i64: 2, 1, 1>, scalar_prefetch = 0 : i64, scratch_operands = 1 : i64, tpu.core_type = #tpu.core_type<tc>, window_params = [{transform_indices = @transform_0, window_bounds = array<i64: 1, 16, 18, 4>}, {transform_indices = @transform_1, window_bounds = array<i64: 1, 1, 2, 18, 4>}, {pipeline_mode = #tpu.pipeline_mode<synchronous>, transform_indices = @transform_2, window_bounds = array<i64: 3, 3, 4>}, {transform_indices = @transform_3, window_bounds = array<i64: 4, 128>}, {transform_indices = @transform_4, window_bounds = array<i64: 1, 16, 16, 128>}]} {
    %c0_i32 = arith.constant 0 : i32
    %0 = arith.cmpi eq, %arg2, %c0_i32 : i32
    %1 = arith.extui %0 : i1 to i32
    %c0_i32_0 = arith.constant 0 : i32
    %2 = arith.cmpi ne, %1, %c0_i32_0 : i32
    scf.if %2 {
      %c0_9 = arith.constant 0 : index
      %c0_10 = arith.constant 0 : index
      %c0_11 = arith.constant 0 : index
      %11 = vector.load %arg5[%c0_9, %c0_10, %c0_11] : memref<3x3x4xf32, #tpu.memory_space<vmem>>, vector<3x3x4xf32>
      %12 = vector.extract_strided_slice %11 {offsets = [0, 0, 0], sizes = [1, 1, 4], strides = [1, 1, 1]} : vector<3x3x4xf32> to vector<1x1x4xf32>
      %13 = vector.shape_cast %12 : vector<1x1x4xf32> to vector<4xf32>
      %c0_12 = arith.constant 0 : index
      %c0_13 = arith.constant 0 : index
      %c0_14 = arith.constant 0 : index
      %c0_15 = arith.constant 0 : index
      %14 = vector.load %arg3[%c0_12, %c0_13, %c0_14, %c0_15] : memref<1x16x18x4xf32, #tpu.memory_space<vmem>>, vector<1x16x16x4xf32>
      %15 = vector.shape_cast %14 : vector<1x16x16x4xf32> to vector<16x16x4xf32>
      %16 = vector.shape_cast %13 : vector<4xf32> to vector<1x1x4xf32>
      %17 = vector.broadcast %16 : vector<1x1x4xf32> to vector<16x16x4xf32>
      %18 = arith.mulf %15, %17 : vector<16x16x4xf32>
      %c0_16 = arith.constant 0 : index
      %c0_17 = arith.constant 0 : index
      %c0_18 = arith.constant 0 : index
      %19 = vector.load %arg8[%c0_16, %c0_17, %c0_18] : memref<16x16x4xf32, #tpu.memory_space<vmem>>, vector<16x16x4xf32>
      tpu.vector_store %arg8[%c0_16, %c0_17, %c0_18], %18 {strides = array<i32>} : memref<16x16x4xf32, #tpu.memory_space<vmem>>, vector<16x16x4xf32>,
      %20 = vector.extract_strided_slice %11 {offsets = [0, 1, 0], sizes = [1, 1, 4], strides = [1, 1, 1]} : vector<3x3x4xf32> to vector<1x1x4xf32>
      %21 = vector.shape_cast %20 : vector<1x1x4xf32> to vector<4xf32>
      %c0_19 = arith.constant 0 : index
      %c0_20 = arith.constant 0 : index
      %c1 = arith.constant 1 : index
      %c0_21 = arith.constant 0 : index
      %22 = vector.load %arg3[%c0_19, %c0_20, %c1, %c0_21] : memref<1x16x18x4xf32, #tpu.memory_space<vmem>>, vector<1x16x16x4xf32>
      %23 = vector.shape_cast %22 : vector<1x16x16x4xf32> to vector<16x16x4xf32>
      %24 = vector.shape_cast %21 : vector<4xf32> to vector<1x1x4xf32>
      %25 = vector.broadcast %24 : vector<1x1x4xf32> to vector<16x16x4xf32>
      %26 = arith.mulf %23, %25 : vector<16x16x4xf32>
      %c0_22 = arith.constant 0 : index
      %c0_23 = arith.constant 0 : index
      %c0_24 = arith.constant 0 : index
      %27 = vector.load %arg8[%c0_22, %c0_23, %c0_24] : memref<16x16x4xf32, #tpu.memory_space<vmem>>, vector<16x16x4xf32>
      %28 = arith.addf %27, %26 : vector<16x16x4xf32>
      %c0_25 = arith.constant 0 : index
      %c0_26 = arith.constant 0 : index
      %c0_27 = arith.constant 0 : index
      %29 = vector.load %arg8[%c0_25, %c0_26, %c0_27] : memref<16x16x4xf32, #tpu.memory_space<vmem>>, vector<16x16x4xf32>
      tpu.vector_store %arg8[%c0_25, %c0_26, %c0_27], %28 {strides = array<i32>} : memref<16x16x4xf32, #tpu.memory_space<vmem>>, vector<16x16x4xf32>,
      %30 = vector.extract_strided_slice %11 {offsets = [0, 2, 0], sizes = [1, 1, 4], strides = [1, 1, 1]} : vector<3x3x4xf32> to vector<1x1x4xf32>
      %31 = vector.shape_cast %30 : vector<1x1x4xf32> to vector<4xf32>
      %c0_28 = arith.constant 0 : index
      %c0_29 = arith.constant 0 : index
      %c2 = arith.constant 2 : index
      %c0_30 = arith.constant 0 : index
      %32 = vector.load %arg3[%c0_28, %c0_29, %c2, %c0_30] : memref<1x16x18x4xf32, #tpu.memory_space<vmem>>, vector<1x16x16x4xf32>
      %33 = vector.shape_cast %32 : vector<1x16x16x4xf32> to vector<16x16x4xf32>
      %34 = vector.shape_cast %31 : vector<4xf32> to vector<1x1x4xf32>
      %35 = vector.broadcast %34 : vector<1x1x4xf32> to vector<16x16x4xf32>
      %36 = arith.mulf %33, %35 : vector<16x16x4xf32>
      %c0_31 = arith.constant 0 : index
      %c0_32 = arith.constant 0 : index
      %c0_33 = arith.constant 0 : index
      %37 = vector.load %arg8[%c0_31, %c0_32, %c0_33] : memref<16x16x4xf32, #tpu.memory_space<vmem>>, vector<16x16x4xf32>
      %38 = arith.addf %37, %36 : vector<16x16x4xf32>
      %c0_34 = arith.constant 0 : index
      %c0_35 = arith.constant 0 : index
      %c0_36 = arith.constant 0 : index
      %39 = vector.load %arg8[%c0_34, %c0_35, %c0_36] : memref<16x16x4xf32, #tpu.memory_space<vmem>>, vector<16x16x4xf32>
      tpu.vector_store %arg8[%c0_34, %c0_35, %c0_36], %38 {strides = array<i32>} : memref<16x16x4xf32, #tpu.memory_space<vmem>>, vector<16x16x4xf32>,
      %40 = vector.extract_strided_slice %11 {offsets = [1, 0, 0], sizes = [1, 1, 4], strides = [1, 1, 1]} : vector<3x3x4xf32> to vector<1x1x4xf32>
      %41 = vector.shape_cast %40 : vector<1x1x4xf32> to vector<4xf32>
      %c0_37 = arith.constant 0 : index
      %c1_38 = arith.constant 1 : index
      %c0_39 = arith.constant 0 : index
      %c0_40 = arith.constant 0 : index
      %42 = vector.load %arg3[%c0_37, %c1_38, %c0_39, %c0_40] : memref<1x16x18x4xf32, #tpu.memory_space<vmem>>, vector<1x15x16x4xf32>
      %43 = vector.shape_cast %42 : vector<1x15x16x4xf32> to vector<15x16x4xf32>
      %44 = vector.shape_cast %41 : vector<4xf32> to vector<1x1x4xf32>
      %45 = vector.broadcast %44 : vector<1x1x4xf32> to vector<15x16x4xf32>
      %46 = arith.mulf %43, %45 : vector<15x16x4xf32>
      %c0_41 = arith.constant 0 : index
      %c0_42 = arith.constant 0 : index
      %c0_43 = arith.constant 0 : index
      %47 = vector.load %arg8[%c0_41, %c0_42, %c0_43] : memref<16x16x4xf32, #tpu.memory_space<vmem>>, vector<15x16x4xf32>
      %48 = arith.addf %47, %46 : vector<15x16x4xf32>
      %c0_44 = arith.constant 0 : index
      %c0_45 = arith.constant 0 : index
      %c0_46 = arith.constant 0 : index
      %49 = vector.load %arg8[%c0_44, %c0_45, %c0_46] : memref<16x16x4xf32, #tpu.memory_space<vmem>>, vector<15x16x4xf32>
      tpu.vector_store %arg8[%c0_44, %c0_45, %c0_46], %48 {strides = array<i32>} : memref<16x16x4xf32, #tpu.memory_space<vmem>>, vector<15x16x4xf32>,
      %c0_47 = arith.constant 0 : index
      %c0_48 = arith.constant 0 : index
      %c0_49 = arith.constant 0 : index
      %c0_50 = arith.constant 0 : index
      %c0_51 = arith.constant 0 : index
      %50 = vector.load %arg4[%c0_47, %c0_48, %c0_49, %c0_50, %c0_51] : memref<1x1x2x18x4xf32, #tpu.memory_space<vmem>>, vector<1x1x1x16x4xf32>
      %51 = vector.shape_cast %50 : vector<1x1x1x16x4xf32> to vector<1x16x4xf32>
      %c15 = arith.constant 15 : index
      %c0_52 = arith.constant 0 : index
      %c0_53 = arith.constant 0 : index
      %52 = vector.load %arg8[%c15, %c0_52, %c0_53] : memref<16x16x4xf32, #tpu.memory_space<vmem>>, vector<1x16x4xf32>
      %53 = vector.shape_cast %41 : vector<4xf32> to vector<1x1x4xf32>
      %54 = vector.broadcast %53 : vector<1x1x4xf32> to vector<1x16x4xf32>
      %55 = arith.mulf %51, %54 : vector<1x16x4xf32>
      %56 = arith.addf %52, %55 : vector<1x16x4xf32>
      %c15_54 = arith.constant 15 : index
      %c0_55 = arith.constant 0 : index
      %c0_56 = arith.constant 0 : index
      %57 = vector.load %arg8[%c15_54, %c0_55, %c0_56] : memref<16x16x4xf32, #tpu.memory_space<vmem>>, vector<1x16x4xf32>
      tpu.vector_store %arg8[%c15_54, %c0_55, %c0_56], %56 {strides = array<i32>} : memref<16x16x4xf32, #tpu.memory_space<vmem>>, vector<1x16x4xf32>,
      %58 = vector.extract_strided_slice %11 {offsets = [1, 1, 0], sizes = [1, 1, 4], strides = [1, 1, 1]} : vector<3x3x4xf32> to vector<1x1x4xf32>
      %59 = vector.shape_cast %58 : vector<1x1x4xf32> to vector<4xf32>
      %c0_57 = arith.constant 0 : index
      %c1_58 = arith.constant 1 : index
      %c1_59 = arith.constant 1 : index
      %c0_60 = arith.constant 0 : index
      %60 = vector.load %arg3[%c0_57, %c1_58, %c1_59, %c0_60] : memref<1x16x18x4xf32, #tpu.memory_space<vmem>>, vector<1x15x16x4xf32>
      %61 = vector.shape_cast %60 : vector<1x15x16x4xf32> to vector<15x16x4xf32>
      %62 = vector.shape_cast %59 : vector<4xf32> to vector<1x1x4xf32>
      %63 = vector.broadcast %62 : vector<1x1x4xf32> to vector<15x16x4xf32>
      %64 = arith.mulf %61, %63 : vector<15x16x4xf32>
      %c0_61 = arith.constant 0 : index
      %c0_62 = arith.constant 0 : index
      %c0_63 = arith.constant 0 : index
      %65 = vector.load %arg8[%c0_61, %c0_62, %c0_63] : memref<16x16x4xf32, #tpu.memory_space<vmem>>, vector<15x16x4xf32>
      %66 = arith.addf %65, %64 : vector<15x16x4xf32>
      %c0_64 = arith.constant 0 : index
      %c0_65 = arith.constant 0 : index
      %c0_66 = arith.constant 0 : index
      %67 = vector.load %arg8[%c0_64, %c0_65, %c0_66] : memref<16x16x4xf32, #tpu.memory_space<vmem>>, vector<15x16x4xf32>
      tpu.vector_store %arg8[%c0_64, %c0_65, %c0_66], %66 {strides = array<i32>} : memref<16x16x4xf32, #tpu.memory_space<vmem>>, vector<15x16x4xf32>,
      %c0_67 = arith.constant 0 : index
      %c0_68 = arith.constant 0 : index
      %c0_69 = arith.constant 0 : index
      %c1_70 = arith.constant 1 : index
      %c0_71 = arith.constant 0 : index
      %68 = vector.load %arg4[%c0_67, %c0_68, %c0_69, %c1_70, %c0_71] : memref<1x1x2x18x4xf32, #tpu.memory_space<vmem>>, vector<1x1x1x16x4xf32>
      %69 = vector.shape_cast %68 : vector<1x1x1x16x4xf32> to vector<1x16x4xf32>
      %c15_72 = arith.constant 15 : index
      %c0_73 = arith.constant 0 : index
      %c0_74 = arith.constant 0 : index
      %70 = vector.load %arg8[%c15_72, %c0_73, %c0_74] : memref<16x16x4xf32, #tpu.memory_space<vmem>>, vector<1x16x4xf32>
      %71 = vector.shape_cast %59 : vector<4xf32> to vector<1x1x4xf32>
      %72 = vector.broadcast %71 : vector<1x1x4xf32> to vector<1x16x4xf32>
      %73 = arith.mulf %69, %72 : vector<1x16x4xf32>
      %74 = arith.addf %70, %73 : vector<1x16x4xf32>
      %c15_75 = arith.constant 15 : index
      %c0_76 = arith.constant 0 : index
      %c0_77 = arith.constant 0 : index
      %75 = vector.load %arg8[%c15_75, %c0_76, %c0_77] : memref<16x16x4xf32, #tpu.memory_space<vmem>>, vector<1x16x4xf32>
      tpu.vector_store %arg8[%c15_75, %c0_76, %c0_77], %74 {strides = array<i32>} : memref<16x16x4xf32, #tpu.memory_space<vmem>>, vector<1x16x4xf32>,
      %76 = vector.extract_strided_slice %11 {offsets = [1, 2, 0], sizes = [1, 1, 4], strides = [1, 1, 1]} : vector<3x3x4xf32> to vector<1x1x4xf32>
      %77 = vector.shape_cast %76 : vector<1x1x4xf32> to vector<4xf32>
      %c0_78 = arith.constant 0 : index
      %c1_79 = arith.constant 1 : index
      %c2_80 = arith.constant 2 : index
      %c0_81 = arith.constant 0 : index
      %78 = vector.load %arg3[%c0_78, %c1_79, %c2_80, %c0_81] : memref<1x16x18x4xf32, #tpu.memory_space<vmem>>, vector<1x15x16x4xf32>
      %79 = vector.shape_cast %78 : vector<1x15x16x4xf32> to vector<15x16x4xf32>
      %80 = vector.shape_cast %77 : vector<4xf32> to vector<1x1x4xf32>
      %81 = vector.broadcast %80 : vector<1x1x4xf32> to vector<15x16x4xf32>
      %82 = arith.mulf %79, %81 : vector<15x16x4xf32>
      %c0_82 = arith.constant 0 : index
      %c0_83 = arith.constant 0 : index
      %c0_84 = arith.constant 0 : index
      %83 = vector.load %arg8[%c0_82, %c0_83, %c0_84] : memref<16x16x4xf32, #tpu.memory_space<vmem>>, vector<15x16x4xf32>
      %84 = arith.addf %83, %82 : vector<15x16x4xf32>
      %c0_85 = arith.constant 0 : index
      %c0_86 = arith.constant 0 : index
      %c0_87 = arith.constant 0 : index
      %85 = vector.load %arg8[%c0_85, %c0_86, %c0_87] : memref<16x16x4xf32, #tpu.memory_space<vmem>>, vector<15x16x4xf32>
      tpu.vector_store %arg8[%c0_85, %c0_86, %c0_87], %84 {strides = array<i32>} : memref<16x16x4xf32, #tpu.memory_space<vmem>>, vector<15x16x4xf32>,
      %c0_88 = arith.constant 0 : index
      %c0_89 = arith.constant 0 : index
      %c0_90 = arith.constant 0 : index
      %c2_91 = arith.constant 2 : index
      %c0_92 = arith.constant 0 : index
      %86 = vector.load %arg4[%c0_88, %c0_89, %c0_90, %c2_91, %c0_92] : memref<1x1x2x18x4xf32, #tpu.memory_space<vmem>>, vector<1x1x1x16x4xf32>
      %87 = vector.shape_cast %86 : vector<1x1x1x16x4xf32> to vector<1x16x4xf32>
      %c15_93 = arith.constant 15 : index
      %c0_94 = arith.constant 0 : index
      %c0_95 = arith.constant 0 : index
      %88 = vector.load %arg8[%c15_93, %c0_94, %c0_95] : memref<16x16x4xf32, #tpu.memory_space<vmem>>, vector<1x16x4xf32>
      %89 = vector.shape_cast %77 : vector<4xf32> to vector<1x1x4xf32>
      %90 = vector.broadcast %89 : vector<1x1x4xf32> to vector<1x16x4xf32>
      %91 = arith.mulf %87, %90 : vector<1x16x4xf32>
      %92 = arith.addf %88, %91 : vector<1x16x4xf32>
      %c15_96 = arith.constant 15 : index
      %c0_97 = arith.constant 0 : index
      %c0_98 = arith.constant 0 : index
      %93 = vector.load %arg8[%c15_96, %c0_97, %c0_98] : memref<16x16x4xf32, #tpu.memory_space<vmem>>, vector<1x16x4xf32>
      tpu.vector_store %arg8[%c15_96, %c0_97, %c0_98], %92 {strides = array<i32>} : memref<16x16x4xf32, #tpu.memory_space<vmem>>, vector<1x16x4xf32>,
      %94 = vector.extract_strided_slice %11 {offsets = [2, 0, 0], sizes = [1, 1, 4], strides = [1, 1, 1]} : vector<3x3x4xf32> to vector<1x1x4xf32>
      %95 = vector.shape_cast %94 : vector<1x1x4xf32> to vector<4xf32>
      %c0_99 = arith.constant 0 : index
      %c2_100 = arith.constant 2 : index
      %c0_101 = arith.constant 0 : index
      %c0_102 = arith.constant 0 : index
      %96 = vector.load %arg3[%c0_99, %c2_100, %c0_101, %c0_102] : memref<1x16x18x4xf32, #tpu.memory_space<vmem>>, vector<1x14x16x4xf32>
      %97 = vector.shape_cast %96 : vector<1x14x16x4xf32> to vector<14x16x4xf32>
      %98 = vector.shape_cast %95 : vector<4xf32> to vector<1x1x4xf32>
      %99 = vector.broadcast %98 : vector<1x1x4xf32> to vector<14x16x4xf32>
      %100 = arith.mulf %97, %99 : vector<14x16x4xf32>
      %c0_103 = arith.constant 0 : index
      %c0_104 = arith.constant 0 : index
      %c0_105 = arith.constant 0 : index
      %101 = vector.load %arg8[%c0_103, %c0_104, %c0_105] : memref<16x16x4xf32, #tpu.memory_space<vmem>>, vector<14x16x4xf32>
      %102 = arith.addf %101, %100 : vector<14x16x4xf32>
      %c0_106 = arith.constant 0 : index
      %c0_107 = arith.constant 0 : index
      %c0_108 = arith.constant 0 : index
      %103 = vector.load %arg8[%c0_106, %c0_107, %c0_108] : memref<16x16x4xf32, #tpu.memory_space<vmem>>, vector<14x16x4xf32>
      tpu.vector_store %arg8[%c0_106, %c0_107, %c0_108], %102 {strides = array<i32>} : memref<16x16x4xf32, #tpu.memory_space<vmem>>, vector<14x16x4xf32>,
      %c0_109 = arith.constant 0 : index
      %c0_110 = arith.constant 0 : index
      %c0_111 = arith.constant 0 : index
      %c0_112 = arith.constant 0 : index
      %c0_113 = arith.constant 0 : index
      %104 = vector.load %arg4[%c0_109, %c0_110, %c0_111, %c0_112, %c0_113] : memref<1x1x2x18x4xf32, #tpu.memory_space<vmem>>, vector<1x1x2x16x4xf32>
      %105 = vector.shape_cast %104 : vector<1x1x2x16x4xf32> to vector<2x16x4xf32>
      %c14 = arith.constant 14 : index
      %c0_114 = arith.constant 0 : index
      %c0_115 = arith.constant 0 : index
      %106 = vector.load %arg8[%c14, %c0_114, %c0_115] : memref<16x16x4xf32, #tpu.memory_space<vmem>>, vector<2x16x4xf32>
      %107 = vector.shape_cast %95 : vector<4xf32> to vector<1x1x4xf32>
      %108 = vector.broadcast %107 : vector<1x1x4xf32> to vector<2x16x4xf32>
      %109 = arith.mulf %105, %108 : vector<2x16x4xf32>
      %110 = arith.addf %106, %109 : vector<2x16x4xf32>
      %c14_116 = arith.constant 14 : index
      %c0_117 = arith.constant 0 : index
      %c0_118 = arith.constant 0 : index
      %111 = vector.load %arg8[%c14_116, %c0_117, %c0_118] : memref<16x16x4xf32, #tpu.memory_space<vmem>>, vector<2x16x4xf32>
      tpu.vector_store %arg8[%c14_116, %c0_117, %c0_118], %110 {strides = array<i32>} : memref<16x16x4xf32, #tpu.memory_space<vmem>>, vector<2x16x4xf32>,
      %112 = vector.extract_strided_slice %11 {offsets = [2, 1, 0], sizes = [1, 1, 4], strides = [1, 1, 1]} : vector<3x3x4xf32> to vector<1x1x4xf32>
      %113 = vector.shape_cast %112 : vector<1x1x4xf32> to vector<4xf32>
      %c0_119 = arith.constant 0 : index
      %c2_120 = arith.constant 2 : index
      %c1_121 = arith.constant 1 : index
      %c0_122 = arith.constant 0 : index
      %114 = vector.load %arg3[%c0_119, %c2_120, %c1_121, %c0_122] : memref<1x16x18x4xf32, #tpu.memory_space<vmem>>, vector<1x14x16x4xf32>
      %115 = vector.shape_cast %114 : vector<1x14x16x4xf32> to vector<14x16x4xf32>
      %116 = vector.shape_cast %113 : vector<4xf32> to vector<1x1x4xf32>
      %117 = vector.broadcast %116 : vector<1x1x4xf32> to vector<14x16x4xf32>
      %118 = arith.mulf %115, %117 : vector<14x16x4xf32>
      %c0_123 = arith.constant 0 : index
      %c0_124 = arith.constant 0 : index
      %c0_125 = arith.constant 0 : index
      %119 = vector.load %arg8[%c0_123, %c0_124, %c0_125] : memref<16x16x4xf32, #tpu.memory_space<vmem>>, vector<14x16x4xf32>
      %120 = arith.addf %119, %118 : vector<14x16x4xf32>
      %c0_126 = arith.constant 0 : index
      %c0_127 = arith.constant 0 : index
      %c0_128 = arith.constant 0 : index
      %121 = vector.load %arg8[%c0_126, %c0_127, %c0_128] : memref<16x16x4xf32, #tpu.memory_space<vmem>>, vector<14x16x4xf32>
      tpu.vector_store %arg8[%c0_126, %c0_127, %c0_128], %120 {strides = array<i32>} : memref<16x16x4xf32, #tpu.memory_space<vmem>>, vector<14x16x4xf32>,
      %c0_129 = arith.constant 0 : index
      %c0_130 = arith.constant 0 : index
      %c0_131 = arith.constant 0 : index
      %c1_132 = arith.constant 1 : index
      %c0_133 = arith.constant 0 : index
      %122 = vector.load %arg4[%c0_129, %c0_130, %c0_131, %c1_132, %c0_133] : memref<1x1x2x18x4xf32, #tpu.memory_space<vmem>>, vector<1x1x2x16x4xf32>
      %123 = vector.shape_cast %122 : vector<1x1x2x16x4xf32> to vector<2x16x4xf32>
      %c14_134 = arith.constant 14 : index
      %c0_135 = arith.constant 0 : index
      %c0_136 = arith.constant 0 : index
      %124 = vector.load %arg8[%c14_134, %c0_135, %c0_136] : memref<16x16x4xf32, #tpu.memory_space<vmem>>, vector<2x16x4xf32>
      %125 = vector.shape_cast %113 : vector<4xf32> to vector<1x1x4xf32>
      %126 = vector.broadcast %125 : vector<1x1x4xf32> to vector<2x16x4xf32>
      %127 = arith.mulf %123, %126 : vector<2x16x4xf32>
      %128 = arith.addf %124, %127 : vector<2x16x4xf32>
      %c14_137 = arith.constant 14 : index
      %c0_138 = arith.constant 0 : index
      %c0_139 = arith.constant 0 : index
      %129 = vector.load %arg8[%c14_137, %c0_138, %c0_139] : memref<16x16x4xf32, #tpu.memory_space<vmem>>, vector<2x16x4xf32>
      tpu.vector_store %arg8[%c14_137, %c0_138, %c0_139], %128 {strides = array<i32>} : memref<16x16x4xf32, #tpu.memory_space<vmem>>, vector<2x16x4xf32>,
      %130 = vector.extract_strided_slice %11 {offsets = [2, 2, 0], sizes = [1, 1, 4], strides = [1, 1, 1]} : vector<3x3x4xf32> to vector<1x1x4xf32>
      %131 = vector.shape_cast %130 : vector<1x1x4xf32> to vector<4xf32>
      %c0_140 = arith.constant 0 : index
      %c2_141 = arith.constant 2 : index
      %c2_142 = arith.constant 2 : index
      %c0_143 = arith.constant 0 : index
      %132 = vector.load %arg3[%c0_140, %c2_141, %c2_142, %c0_143] : memref<1x16x18x4xf32, #tpu.memory_space<vmem>>, vector<1x14x16x4xf32>
      %133 = vector.shape_cast %132 : vector<1x14x16x4xf32> to vector<14x16x4xf32>
      %134 = vector.shape_cast %131 : vector<4xf32> to vector<1x1x4xf32>
      %135 = vector.broadcast %134 : vector<1x1x4xf32> to vector<14x16x4xf32>
      %136 = arith.mulf %133, %135 : vector<14x16x4xf32>
      %c0_144 = arith.constant 0 : index
      %c0_145 = arith.constant 0 : index
      %c0_146 = arith.constant 0 : index
      %137 = vector.load %arg8[%c0_144, %c0_145, %c0_146] : memref<16x16x4xf32, #tpu.memory_space<vmem>>, vector<14x16x4xf32>
      %138 = arith.addf %137, %136 : vector<14x16x4xf32>
      %c0_147 = arith.constant 0 : index
      %c0_148 = arith.constant 0 : index
      %c0_149 = arith.constant 0 : index
      %139 = vector.load %arg8[%c0_147, %c0_148, %c0_149] : memref<16x16x4xf32, #tpu.memory_space<vmem>>, vector<14x16x4xf32>
      tpu.vector_store %arg8[%c0_147, %c0_148, %c0_149], %138 {strides = array<i32>} : memref<16x16x4xf32, #tpu.memory_space<vmem>>, vector<14x16x4xf32>,
      %c0_150 = arith.constant 0 : index
      %c0_151 = arith.constant 0 : index
      %c0_152 = arith.constant 0 : index
      %c2_153 = arith.constant 2 : index
      %c0_154 = arith.constant 0 : index
      %140 = vector.load %arg4[%c0_150, %c0_151, %c0_152, %c2_153, %c0_154] : memref<1x1x2x18x4xf32, #tpu.memory_space<vmem>>, vector<1x1x2x16x4xf32>
      %141 = vector.shape_cast %140 : vector<1x1x2x16x4xf32> to vector<2x16x4xf32>
      %c14_155 = arith.constant 14 : index
      %c0_156 = arith.constant 0 : index
      %c0_157 = arith.constant 0 : index
      %142 = vector.load %arg8[%c14_155, %c0_156, %c0_157] : memref<16x16x4xf32, #tpu.memory_space<vmem>>, vector<2x16x4xf32>
      %143 = vector.shape_cast %131 : vector<4xf32> to vector<1x1x4xf32>
      %144 = vector.broadcast %143 : vector<1x1x4xf32> to vector<2x16x4xf32>
      %145 = arith.mulf %141, %144 : vector<2x16x4xf32>
      %146 = arith.addf %142, %145 : vector<2x16x4xf32>
      %c14_158 = arith.constant 14 : index
      %c0_159 = arith.constant 0 : index
      %c0_160 = arith.constant 0 : index
      %147 = vector.load %arg8[%c14_158, %c0_159, %c0_160] : memref<16x16x4xf32, #tpu.memory_space<vmem>>, vector<2x16x4xf32>
      tpu.vector_store %arg8[%c14_158, %c0_159, %c0_160], %146 {strides = array<i32>} : memref<16x16x4xf32, #tpu.memory_space<vmem>>, vector<2x16x4xf32>,
    } else {
    }
    %c0 = arith.constant 0 : index
    %c0_1 = arith.constant 0 : index
    %3 = vector.load %arg6[%c0, %c0_1] : memref<4x128xf32, #tpu.memory_space<vmem>>, vector<4x128xf32>
    %c0_2 = arith.constant 0 : index
    %c0_3 = arith.constant 0 : index
    %c0_4 = arith.constant 0 : index
    %4 = vector.load %arg8[%c0_2, %c0_3, %c0_4] : memref<16x16x4xf32, #tpu.memory_space<vmem>>, vector<16x16x4xf32>
    %5 = vector.shape_cast %4 : vector<16x16x4xf32> to vector<256x4xf32>
    %cst = arith.constant dense<0.000000e+00> : vector<256x128xf32>
    %6 = tpu.matmul %5, %3, %cst {dimension_numbers = #tpu.dot_dimension_numbers<[1], [0], [0], [1], [0, 0, 1, 1], [], []>} : vector<256x4xf32>, vector<4x128xf32>, vector<256x128xf32> -> vector<256x128xf32>
    %7 = vector.shape_cast %6 : vector<256x128xf32> to vector<16x16x128xf32>
    %c0_5 = arith.constant 0 : index
    %c0_6 = arith.constant 0 : index
    %c0_7 = arith.constant 0 : index
    %c0_8 = arith.constant 0 : index
    %8 = vector.load %arg7[%c0_5, %c0_6, %c0_7, %c0_8] : memref<1x16x16x128xf32, #tpu.memory_space<vmem>>, vector<1x16x16x128xf32>
    %9 = vector.shape_cast %8 : vector<1x16x16x128xf32> to vector<16x16x128xf32>
    %10 = vector.shape_cast %7 : vector<16x16x128xf32> to vector<1x16x16x128xf32>
    tpu.vector_store %arg7[%c0_5, %c0_6, %c0_7, %c0_8], %10 {strides = array<i32>} : memref<1x16x16x128xf32, #tpu.memory_space<vmem>>, vector<1x16x16x128xf32>,
    return
  }
  func.func @transform_0(%arg0: i32, %arg1: i32, %arg2: i32) -> (i32, i32, i32, i32) {
    %c0_i32 = arith.constant 0 : i32
    %c0_i32_0 = arith.constant 0 : i32
    %c0_i32_1 = arith.constant 0 : i32
    return %arg0, %arg1, %c0_i32, %c0_i32_0 : i32, i32, i32, i32
  }
  func.func @transform_1(%arg0: i32, %arg1: i32, %arg2: i32) -> (i32, i32, i32, i32, i32) {
    %c0_i32 = arith.constant 0 : i32
    %c0_i32_0 = arith.constant 0 : i32
    %c0_i32_1 = arith.constant 0 : i32
    %c0_i32_2 = arith.constant 0 : i32
    return %arg0, %arg1, %c0_i32, %c0_i32_0, %c0_i32_1 : i32, i32, i32, i32, i32
  }
  func.func @transform_2(%arg0: i32, %arg1: i32, %arg2: i32) -> (i32, i32, i32) {
    %c0_i32 = arith.constant 0 : i32
    %c0_i32_0 = arith.constant 0 : i32
    %c0_i32_1 = arith.constant 0 : i32
    %c0_i32_2 = arith.constant 0 : i32
    return %c0_i32, %c0_i32_0, %c0_i32_1 : i32, i32, i32
  }
  func.func @transform_3(%arg0: i32, %arg1: i32, %arg2: i32) -> (i32, i32) {
    %c0_i32 = arith.constant 0 : i32
    %c0_i32_0 = arith.constant 0 : i32
    return %c0_i32, %arg2 : i32, i32
  }
  func.func @transform_4(%arg0: i32, %arg1: i32, %arg2: i32) -> (i32, i32, i32, i32) {
    %c0_i32 = arith.constant 0 : i32
    %c0_i32_0 = arith.constant 0 : i32
    return %arg0, %arg1, %c0_i32, %arg2 : i32, i32, i32, i32
  }
}

</mosaic_0001>

<bundles_post_ra>
// kernel: tpu_custom_call.1
= control target key start
LH: loop header
LB: loop body
LE: loop exit
PB: predicated region body
PF: predicated region fallthrough
CT: control target
= control target key end

     0   :  { %s4672_s0 = inlined_call_operand.hbm [shape: f32[2,18,18,4], index: 0, kind: input, shape index: {}]   ;;  %s4673_s1 = inlined_call_operand.hbm [shape: f32[2,1,2,18,4], index: 1, kind: input, shape index: {}]   ;;  %s4674_s2 = inlined_call_operand.hbm [shape: f32[3,3,4], index: 2, kind: input, shape index: {}]   ;;  %s4675_s3 = inlined_call_operand.hbm [shape: f32[4,128], index: 3, kind: input, shape index: {}]   ;;  %s4676_s4 = inlined_call_operand.hbm [shape: f32[2,16,16,128], index: 4, kind: output, shape index: {}]  }
   0x1   :  { %4681 = sst [smem:[#allocation28_spill]] %s4672_s0 }
   0x2   :  { %4682 = sst [smem:[#allocation29_spill]] %s4674_s2 }
   0x3   :  { %4683 = sst [smem:[#allocation30_spill]] %s4675_s3 }
   0x4   :  { %9 = vsyncpa [#allocation4], 0 }
   0x5   :  { %11 = vsyncpa [#allocation4 + $0x1], 0 }
   0x6   :  { %12 = vsyncpa [#allocation7], 0 }
   0x7   :  { %14 = vsyncpa [#allocation7 + $0x1], 0 }
   0x8   :  { %15 = vsyncpa [#allocation10], 0 }
   0x9   :  { %16 = vsyncpa [#allocation5], 0 }
   0xa   :  { %18 = vsyncpa [#allocation5 + $0x1], 0  ;;  %s2966_s15 = smov 0   ;;  %s2968_s16 = smov 0  }
   0xb   :  { %s2970_s17 = smov 0   ;;  %s2972_s18 = smov 0  }
   0xc   :  { %s2974_s19 = smov 0   ;;  %s2976_s20 = smov 0  }
   0xd LB: > { %s2997_s21 = sadd.s32 4294967295, %s2928_s20   ;;  %s2309_s22 = sadd.s32 4294967294, %s2928_s20   ;;  %s2928_s20 = sphi %s2976_s20, %s24_s20   ;;  %s2924_s19 = sphi %s2974_s19, %s4728_s19   ;;  %s2920_s18 = sphi %s2972_s18, %s4727_s18   ;;  %s2916_s17 = sphi %s2970_s17, %s4726_s17   ;;  %s2912_s16 = sphi %s2968_s16, %s4725_s16   ;;  %s2908_s15 = sphi %s2966_s15, %s4724_s15  }
   0xe   : > { %p65_p0 = scmp.ne.s32.totalorder %s2912_s16, %s2908_s15  ;;  %p4677_p1 = scmp.eq.s32.totalorder %s2997_s21, 0 }
   0xf   : > { %p174_p3 = scmp.eq.s32.totalorder %s2309_s22, 1  ;;  %p2310_p5 = scmp.ge.s32.totalorder %s2928_s20, 1 }
  0x10   : > { %p3006_p4 = por %p4677_p1, %p65_p0  ;;  %p181_p7 = scmp.lt.s32.totalorder %s2928_s20, 3 }
  0x11   : > { %p3011_p6 = por %p174_p3, %p65_p0  ;;  %s2930_s26 = smov [#allocation8]  }
  0x12   : > { %s4684_s23 = scalar_select %p3006_p4, 1, 0 }
  0x13   : > { %s4685_s24 = scalar_select %p3011_p6, 1, 0 }
  0x14   : > { %p3016_p8 = pnand %p2310_p5, %p181_p7  ;;  %s193_s27 = sshll.u32 %s2930_s26, 4  ;;  %s3020_s27 = int_to_ptr.vmem [resolvable:$true] %s193_s27 }
  0x15   : > { %s2931_s29 = smov [#allocation9]   ;;  %s4688_s2 = sld [smem:[#allocation29_spill]] }
  0x16   : > { %p2638_p9 = pneg %p3016_p8  ;;  %s209_s30 = sshll.u32 %s2931_s29, 4  ;;  %s3031_s30 = int_to_ptr.vmem [resolvable:$true] %s209_s30 }
  0x18   : > { %p3027_p11 = pnand %p2638_p9, %p4677_p1 }
  0x1a   : > { %p2720_p13 = pneg %p3027_p11 }
  0x1b   : > { %s2718_s7 = scalar_lea.hbm %s4688_s2, 192 }
  0x1c   : > { %p2719_p12 = scmp.ne.s32.totalorder %s4688_s2, %s2718_s7  ;;  %p2725_p5 = scmp.lt.u32.totalorder %s2718_s7, %s4688_s2 }
  0x1e   : > { %p2721_p0 = pnand %p2720_p13, %p2719_p12 }
  0x20   : > { %p2722_p3 = pneg %p2721_p0 }
  0x22   : > { %p2727_p7 = pnand %p2725_p5, %p2722_p3 }
  0x24   : > { %2730 = shalt.err (!%p2727_p7)
}
  0x25   : > { %s2731_s12 = scalar_lea.vmem %s3020_s27, 192  ;;  %p2739_p2 = scmp.lt.s32.totalorder %s3020_s27, %s3020_s27 }
  0x26   : > { %p2732_p9 = scmp.ne.s32.totalorder %s3020_s27, %s2731_s12  ;;  %p2740_p12 = scmp.lt.s32.totalorder %s2731_s12, %s2731_s12 }
  0x28   : > { %p2734_p10 = pnand %p2732_p9, %p2720_p13  ;;  %p2741_p0 = por %p2740_p12, %p2739_p2 }
  0x2a   : > { %p2735_p1 = pneg %p2734_p10 }
  0x2c   : > { %p2742_p6 = pnand %p2741_p0, %p2735_p1 }
  0x2e   : > { %2745 = shalt.err (!%p2742_p6)
}
  0x2f   : > { %s2932_s13 = smov 64   ;;  %s2933_s14 = smov 4  }
  0x30   : > { %2641 = dma.hbm_to_vmem [thread:$0]  (!%p3027_p11), %s4688_s2, 192, %s3020_s27, [#allocation7], %s2932_s13, %s2932_s13, %s2933_s14  }
  0x31   : > { %s4689_s3 = sld [smem:[#allocation30_spill]] }
  0x37   : > { %s2746_s6 = scalar_lea.hbm %s4689_s3, 64 }
  0x38   : > { %p2747_p2 = scmp.ne.s32.totalorder %s4689_s3, %s2746_s6  ;;  %p2753_p10 = scmp.lt.u32.totalorder %s2746_s6, %s4689_s3 }
  0x3a   : > { %p2749_p1 = pnand %p2747_p2, %p2720_p13 }
  0x3c   : > { %p2750_p6 = pneg %p2749_p1 }
  0x3e   : > { %p2755_p3 = pnand %p2753_p10, %p2750_p6 }
  0x40   : > { %2758 = shalt.err (!%p2755_p3)
}
  0x41   : > { %s2759_s27 = scalar_lea.vmem %s3031_s30, 64  ;;  %p2767_p12 = scmp.lt.s32.totalorder %s3031_s30, %s3031_s30 }
  0x42   : > { %p2760_p5 = scmp.ne.s32.totalorder %s3031_s30, %s2759_s27  ;;  %p2768_p0 = scmp.lt.s32.totalorder %s2759_s27, %s2759_s27 }
  0x44   : > { %p2762_p7 = pnand %p2760_p5, %p2720_p13  ;;  %p2769_p2 = por %p2768_p0, %p2767_p12 }
  0x46   : > { %p2763_p9 = pneg %p2762_p7 }
  0x48   : > { %p2770_p1 = pnand %p2769_p2, %p2763_p9 }
  0x4a   : > { %2773 = shalt.err (!%p2770_p1)
}
  0x4b   : > { %2644 = dma.hbm_to_vmem [thread:$0]  (!%p3027_p11), %s4689_s3, 64, %s3031_s30, [#allocation10]  }
  0x4c   : > { %s43_s13 = sadd.s32 1, %s2924_s19  ;;  %s52_s14 = sadd.s32 1, %s2916_s17 }
  0x4d   : > { %p45_p13 = scmp.ge.s32.totalorder %s43_s13, 2  ;;  %p59_p6 = scmp.ne.s32.totalorder %s2916_s17, %s2912_s16 }
  0x4e   : > { %p60_p10 = scmp.eq.s32.totalorder %s2928_s20, 0  ;;  %p2658_p3 = scmp.lt.s32.totalorder %s2928_s20, 2 }
  0x4f   : > { %s4730_s13 = smov (%p45_p13, %s43_s13), 0  ;;  %p4691_p7 = scmp.eq.s32.totalorder %s2997_s21, 1 }
  0x50   : > { %4690 = sst [smem:[#allocation17_spill]] %s4730_s13  ;;  %p61_p5 = por %p60_p10, %p59_p6 }
  0x51   : > { %p3095_p9 = por %p4691_p7, %p59_p6  ;;  %s47_s22 = ssub.s32 %s2924_s19, %s4730_s13 }
  0x52   : > { %s3102_s26 = sand.u32 1, %s2916_s17   ;;  %p50_p11 = scmp.eq.s32.totalorder %s47_s22, 0 }
  0x53   : > { %s4692_s28 = scalar_select %p3095_p9, 1, 0 }
  0x54   : > { %s2618_s30 = smul.u32 384, %s3102_s26  ;;  %p3105_p12 = pnand %p2658_p3, %p61_p5 }
  0x55   : > { %s3110_s5 = scalar_select %p50_p11, %s2916_s17, %s52_s14  }
  0x56   : > { %s2619_s6 = smul.u32 6912, %s2924_s19  ;;  %s224_s7 = scalar_lea.vmem [#allocation3], %s2618_s30 }
  0x57   : > { %s242_s8 = sshll.u32 %s224_s7, 4  ;;  %s4694_s0 = sld [smem:[#allocation28_spill]]  ;;  %s3118_s8 = int_to_ptr.vmem [resolvable:$true] %s242_s8 }
  0x58   : > { %s221_s11 = scalar_lea.sflag [#allocation4], %s3102_s26  ;;  %p2776_p2 = pneg %p3105_p12 }
  0x5d   : > { %s3116_s27 = scalar_lea.hbm %s4694_s0, %s2619_s6  ;;  %s2779_s30 = scalar_lea.hbm %s4694_s0, 13824 }
  0x5e   : > { %s2774_s12 = scalar_lea.hbm %s3116_s27, 6144  ;;  %p2780_p6 = scmp.lt.u32.totalorder %s3116_s27, %s4694_s0 }
  0x5f   : > { %p2775_p0 = scmp.ne.s32.totalorder %s3116_s27, %s2774_s12  ;;  %p2781_p10 = scmp.lt.u32.totalorder %s2779_s30, %s2774_s12 }
  0x60   : > { %p2783_p5 = scmp.lt.u32.totalorder %s2774_s12, %s3116_s27 }
  0x61   : > { %p2777_p1 = pnand %p2776_p2, %p2775_p0  ;;  %p2782_p3 = por %p2781_p10, %p2780_p6 }
  0x63   : > { %p2778_p13 = pneg %p2777_p1  ;;  %p2784_p7 = por %p2783_p5, %p2782_p3 }
  0x65   : > { %p2785_p11 = pnand %p2784_p7, %p2778_p13 }
  0x67   : > { %2788 = shalt.err (!%p2785_p11)
}
  0x68   : > { %s2789_s9 = scalar_lea.vmem %s3118_s8, 6144  ;;  %s2934_s10 = smov [#allocation3]  }
  0x69   : > { %p2790_p0 = scmp.ne.s32.totalorder %s3118_s8, %s2789_s9  ;;  %s2794_s14 = sshll.u32 %s2934_s10, 4  ;;  %s2795_s14 = int_to_ptr.vmem [resolvable:$false] %s2794_s14 }
  0x6a   : > { %s2796_s22 = scalar_lea.vmem %s2795_s14, 12288  ;;  %p2797_p4 = scmp.lt.s32.totalorder %s3118_s8, %s2795_s14 }
  0x6b   : > { %p2792_p1 = pnand %p2790_p0, %p2776_p2  ;;  %p2798_p6 = scmp.lt.s32.totalorder %s2796_s22, %s2789_s9 }
  0x6d   : > { %p2793_p9 = pneg %p2792_p1  ;;  %p2799_p10 = por %p2798_p6, %p2797_p4 }
  0x6f   : > { %p2800_p3 = pnand %p2799_p10, %p2793_p9 }
  0x71   : > { %2803 = shalt.err (!%p2800_p3)
}
  0x72   : > { %s2935_s12 = smov 128   ;;  %s2936_s30 = smov 8  }
  0x73   : > { %2648 = dma.hbm_to_vmem [thread:$0]  (!%p3105_p12), %s3116_s27, 6144, %s3118_s8, %s221_s11, %s2935_s12, %s2935_s12, %s2936_s30  }
  0x74   : > { %s252_s6 = sand.u32 1, %s2928_s20   ;;  %s2620_s7 = smul.u32 48, %s3102_s26 }
  0x75   : > { %s2621_s9 = smul.u32 768, %s2924_s19  ;;  %s3161_s3 = scalar_lea.sflag [#allocation7], %s252_s6 }
  0x76   : > { %s256_s0 = scalar_lea.vmem [#allocation6], %s2620_s7  ;;  %s2809_s27 = scalar_lea.hbm %s4673_s1, 1536 }
  0x77   : > { %s3157_s22 = scalar_lea.hbm %s4673_s1, %s2621_s9  ;;  %s265_s2 = sshll.u32 %s256_s0, 4  ;;  %s3159_s2 = int_to_ptr.vmem [resolvable:$true] %s265_s2 }
  0x78   : > { %s2804_s13 = scalar_lea.hbm %s3157_s22, 768  ;;  %p2810_p5 = scmp.lt.u32.totalorder %s3157_s22, %s4673_s1 }
  0x79   : > { %p2805_p4 = scmp.ne.s32.totalorder %s3157_s22, %s2804_s13  ;;  %p2811_p7 = scmp.lt.u32.totalorder %s2809_s27, %s2804_s13 }
  0x7a   : > { %p2813_p0 = scmp.lt.u32.totalorder %s2804_s13, %s3157_s22 }
  0x7b   : > { %p2807_p9 = pnand %p2805_p4, %p2776_p2  ;;  %p2812_p11 = por %p2811_p7, %p2810_p5 }
  0x7d   : > { %p2808_p13 = pneg %p2807_p9  ;;  %p2814_p1 = por %p2813_p0, %p2812_p11 }
  0x7f   : > { %p2815_p6 = pnand %p2814_p1, %p2808_p13 }
  0x81   : > { %2818 = shalt.err (!%p2815_p6)
}
  0x82   : > { %s2819_s0 = scalar_lea.vmem %s3159_s2, 768  ;;  %s2937_s6 = smov [#allocation6]  }
  0x83   : > { %p2820_p10 = scmp.ne.s32.totalorder %s3159_s2, %s2819_s0  ;;  %s2824_s7 = sshll.u32 %s2937_s6, 4  ;;  %s2825_s7 = int_to_ptr.vmem [resolvable:$false] %s2824_s7 }
  0x84   : > { %s2826_s10 = scalar_lea.vmem %s2825_s7, 1536  ;;  %p2827_p9 = scmp.lt.s32.totalorder %s3159_s2, %s2825_s7 }
  0x85   : > { %p2822_p3 = pnand %p2820_p10, %p2776_p2  ;;  %p2828_p5 = scmp.lt.s32.totalorder %s2826_s10, %s2819_s0 }
  0x87   : > { %p2823_p4 = pneg %p2822_p3  ;;  %p2829_p7 = por %p2828_p5, %p2827_p9 }
  0x89   : > { %p2830_p11 = pnand %p2829_p7, %p2823_p4 }
  0x8b   : > { %2833 = shalt.err (!%p2830_p11)
}
  0x8c   : > { %2651 = dma.hbm_to_vmem [thread:$0]  (!%p3105_p12), %s3157_s22, 768, %s3159_s2, %s3161_s3, %s2935_s12, %s2935_s12, %s2936_s30  }
  0x8d   : > { %277 = sbr.rel (%p3016_p8) target bundleno = 624 (0x270), region = 36 }
  0x94   : > { %s3193_s13 = sand.u32 1, %s2912_s16   ;;  %p4695_p2 = scmp.ne.s32.totalorder %s4684_s23, 0 }
  0x95   : > { %s2622_s14 = smul.u32 384, %s3193_s13  ;;  %s280_s26 = scalar_lea.sflag [#allocation4], %s3193_s13 }
  0x97   : > { %s3197_s8 = scalar_lea.vmem [#allocation3], %s2622_s14 }
  0x98   : > { %2887 = dma.done.wait (%p4695_p2), %s280_s26, 6144  }
  0x99   : > { %2889 = vsyncadd (%p4695_p2), %s280_s26, 4294961152  ;;  %s288_s2 = sand.u32 1, %s2997_s21   ;;  %s2623_s3 = smul.u32 48, %s3193_s13 }
  0x9a   : > { %s289_s25 = scalar_lea.sflag [#allocation7], %s288_s2 }
  0x9b   : > { %s3205_s29 = scalar_lea.vmem [#allocation6], %s2623_s3 }
  0x9c   : > { %2891 = dma.done.wait (%p4695_p2), %s289_s25, 768  }
  0x9d   : > { %2893 = vsyncadd (%p4695_p2), %s289_s25, 4294966528  ;;  %p4696_p8 = scmp.eq.s32.totalorder %s2997_s21, 0 }
  0x9f   : > { %2895 = dma.done.wait (%p4696_p8), [#allocation7], 192   ;;  %p4697_p12 = pmov %p4696_p8 }
  0xa0   : > { %p4698_p13 = pmov %p4696_p8 }
  0xa1   : > { %2897 = vsyncadd (%p4697_p12), [#allocation7], 4294967104 }
  0xa2   : > { %2899 = dma.done.wait (%p4698_p13), [#allocation10], 64   ;;  %p4699_p0 = pmov %p4696_p8 }
  0xa3   : > { %v376_v0 = vlaneseq  ;;  %vm1891_vm0 = vcmask 1043456   ;;  %v1761_v3 = vld [vmem:[#allocation9] sm:$0xf]  ;;  %v341_v4 = vld [vmem:[#allocation8] sm:$0x7]  ;;  %vm412_vm1 = vcmask 31744  }
  0xa4   : > { %2901 = vsyncadd (%p4699_p0), [#allocation10], 4294967232  ;;  %2566 = vmatprep.subr.msk.mxu0 %vm1891_vm0, %v1761_v3  ;;  %2616 = vmatprep.subr.msk.mxu1 %vm1891_vm0, %v1761_v3  ;;  %v344_v5 = vld [vmem:[%s3197_s8] sm:$0xff]  ;;  %v3234_v11 = vld [vmem:[%s3197_s8 + $0x18] sm:$0xff]  ;;  %s2319_s21 = sshll.u32 %s3193_s13, 8  ;;  %s2532_s12 = sshll.u32 %s2920_s18, 12 }
  0xa5   : > { %v377_v1 = vshrl.u32 %v376_v0, 7  ;;  %2567 = vmatpush3.msk.msra.mxu0 %vm1891_vm0, %v1761_v3  ;;  %2617 = vmatpush3.msk.msra.mxu1 %vm1891_vm0, %v1761_v3  ;;  %v360_v9 = vld [vmem:[%s3197_s8 + $0xc0] sm:$0xff]  ;;  %v345_v14 = vld [vmem:[%s3197_s8 + $0x8] sm:$0xff]  ;;  %v3255_v23 = vld [vmem:[%s3197_s8 + $0xd8] sm:$0xff]  ;;  %s4582_s23 = scalar_lea.vmem [#allocation11], %s2319_s21  ;;  %s4619_s11 = scalar_lea.hbm %s4676_s4, %s2532_s12 }
  0xa6   : > { %v445_v13 = vld [vmem:[%s3197_s8 + $0x1] sm:$0xff]  ;;  %v3251_v21 = vld [vmem:[%s3197_s8 + $0x19] sm:$0xff]  ;;  %v446_v24 = vld [vmem:[%s3197_s8 + $0x9] sm:$0xff]  ;;  %s2170_s30 = sshll.u32 %s4582_s23, 4  ;;  %s2153_s9 = scalar_lea.sflag [#allocation5], %s3193_s13  ;;  %s4621_s30 = int_to_ptr.vmem [resolvable:$true] %s2170_s30 }
  0xa7   : > { %v3219_v2 = vsub.s32 0, %v377_v1  ;;  %v3225_v7 = vsub.s32 1, %v377_v1  ;;  %v461_v15 = vld [vmem:[%s3197_s8 + $0xc1] sm:$0xff]  ;;  %v3248_v20 = vsub.s32 2, %v377_v1  ;;  %v462_v31 = vld [vmem:[%s3197_s8 + $0xc9] sm:$0xff]  ;;  %v3275_v37 = vld [vmem:[%s3197_s8 + $0xd9] sm:$0xff] }
  0xa8   : > { %v361_v19 = vld [vmem:[%s3197_s8 + $0xc8] sm:$0xff]  ;;  %v3262_v30 = vld [vmem:[%s3197_s8 + $0x20] sm:$0xff]  ;;  %v3289_v48 = vld [vmem:[%s3197_s8 + $0x30] sm:$0xff]  ;;  %s2834_s18 = scalar_lea.vmem %s4621_s30, 4096  ;;  %p4720_p6 = scmp.ne.s32.totalorder %s4692_s28, 0 }
  0xa9   : > { %v3223_v6 = vrot.slane %v341_v4, %v3219_v2  ;;  %v3231_v10 = vrot.slane %v341_v4, %v3225_v7  ;;  %v3271_v34 = vrot.slane %v341_v4, %v3248_v20  ;;  %v609_v36 = vld [vmem:[%s3197_s8 + $0x2] sm:$0xff]  ;;  %v2380_v53 = vld [vmem:[%s3197_s8 + $0x1a] sm:$0xff]  ;;  %v610_v55 = vld [vmem:[%s3197_s8 + $0xa] sm:$0xff]  ;;  %p2835_p1 = scmp.ne.s32.totalorder %s4621_s30, %s2834_s18  ;;  %s2938_s0 = smov [#allocation11]  }
  0xaa   : > { %v3281_v40 = vld [vmem:[%s3197_s8 + $0xe0] sm:$0xff]  ;;  %v343_v57 = vld [vmem:[#allocation8 + $0x8] sm:$0x7]  ;;  %v3308_v61 = vld [vmem:[%s3197_s8 + $0xf0] sm:$0xff]  ;;  %s2838_s6 = sshll.u32 %s2938_s0, 4  ;;  %s2839_s6 = int_to_ptr.vmem [resolvable:$false] %s2838_s6 }
  0xab   : > { %v380_v8 = vmul.f32 %v3223_v6, %v344_v5  ;;  %v396_v12 = vmul.f32 %v3223_v6, %v360_v9  ;;  %v381_v16 = vmul.f32 %v3223_v6, %v345_v14  ;;  %v382_v17 = vmul.f32 %v3234_v11, %v3223_v6  ;;  %v625_v43 = vld [vmem:[%s3197_s8 + $0xc2] sm:$0xff]  ;;  %p2836_p10 = pnand %p2835_p1, %p4720_p6  ;;  %s2840_s7 = scalar_lea.vmem %s2839_s6, 8192 }
  0xac   : > { %v481_v18 = vmul.f32 %v3231_v10, %v445_v13  ;;  %v497_v22 = vmul.f32 %v3231_v10, %v461_v15  ;;  %v397_v25 = vmul.f32 %v3223_v6, %v361_v19  ;;  %v482_v29 = vmul.f32 %v3231_v10, %v446_v24  ;;  %v342_v46 = vld [vmem:[#allocation8 + $0x4] sm:$0x7]  ;;  %p2841_p4 = scmp.lt.s32.totalorder %s4621_s30, %s2839_s6  ;;  %p2842_p9 = scmp.lt.s32.totalorder %s2840_s7, %s2834_s18 }
  0xad   : > { %413 = vst.msk [vmem:[#allocation2] sm:$0xff] %vm412_vm1, %v380_v8  ;;  %429 = vst.msk [vmem:[#allocation2 + $0x80] sm:$0xff] %vm412_vm1, %v396_v12  ;;  %v483_v32 = vmul.f32 %v3251_v21, %v3231_v10  ;;  %v398_v33 = vmul.f32 %v3255_v23, %v3223_v6  ;;  %v498_v39 = vmul.f32 %v3231_v10, %v462_v31  ;;  %v3293_v49 = vld [vmem:[%s3197_s8 + $0x21] sm:$0xff]  ;;  %v626_v8 = vld [vmem:[%s3197_s8 + $0xca] sm:$0xff]  ;;  %p2837_p3 = pneg %p2836_p10 }
  0xae   : > { %414 = vst.msk [vmem:[#allocation2 + $0x8] sm:$0xff] %vm412_vm1, %v381_v16  ;;  %415 = vst.msk [vmem:[#allocation2 + $0x10] sm:$0xff] %vm412_vm1, %v382_v17  ;;  %v383_v42 = vmul.f32 %v3262_v30, %v3223_v6  ;;  %v645_v47 = vmul.f32 %v3271_v34, %v609_v36  ;;  %v499_v51 = vmul.f32 %v3275_v37, %v3231_v10  ;;  %v3312_v62 = vld [vmem:[%s3197_s8 + $0xe1] sm:$0xff]  ;;  %v3333_v16 = vld [vmem:[%s3197_s8 + $0x31] sm:$0xff]  ;;  %p2843_p5 = por %p2842_p9, %p2841_p4 }
  0xaf   : > { %430 = vst.msk [vmem:[#allocation2 + $0x88] sm:$0xff] %vm412_vm1, %v397_v25  ;;  %431 = vst.msk [vmem:[#allocation2 + $0x90] sm:$0xff] %vm412_vm1, %v398_v33  ;;  %v399_v52 = vmul.f32 %v3281_v40, %v3223_v6  ;;  %v661_v54 = vmul.f32 %v3271_v34, %v625_v43  ;;  %v3305_v60 = vrot.slane %v342_v46, %v3219_v2 }
  0xb0   : > { %416 = vst.msk [vmem:[#allocation2 + $0x18] sm:$0xff] %vm412_vm1, %v383_v42  ;;  %v484_v0 = vmul.f32 %v3293_v49, %v3231_v10  ;;  %v384_v1 = vmul.f32 %v3289_v48, %v3223_v6  ;;  %v3319_v3 = vrot.slane %v342_v46, %v3225_v7  ;;  %v646_v5 = vmul.f32 %v3271_v34, %v610_v55  ;;  %v3382_v42 = vld [vmem:[%s3197_s8 + $0x32] sm:$0xff]  ;;  %p2844_p7 = pnand %p2843_p5, %p2837_p3 }
  0xb1   : > { %432 = vst.msk [vmem:[#allocation2 + $0x98] sm:$0xff] %vm412_vm1, %v399_v52  ;;  %v647_v9 = vmul.f32 %v2380_v53, %v3271_v34  ;;  %v3326_v13 = vrot.slane %v342_v46, %v3248_v20  ;;  %v3329_v14 = vrot.slane %v343_v57, %v3219_v2  ;;  %v3336_v17 = vrot.slane %v343_v57, %v3225_v7  ;;  %v2396_v7 = vld [vmem:[%s3197_s8 + $0xda] sm:$0xff]  ;;  %v3399_v52 = vld [vmem:[%s3197_s8 + $0xf2] sm:$0xff] }
  0xb2   : > { %417 = vst.msk [vmem:[#allocation2 + $0x20] sm:$0xff] %vm412_vm1, %v384_v1  ;;  %v400_v2 = vmul.f32 %v3308_v61, %v3223_v6  ;;  %v3347_v24 = vrot.slane %v343_v57, %v3248_v20  ;;  %v3356_v31 = vmul.f32 %v3251_v21, %v3319_v3  ;;  %v3359_v20 = vld [vmem:[%s3197_s8 + $0xf8] sm:$0xff]  ;;  %v485_v21 = vmul.f32 %v3333_v16, %v3231_v10 }
  0xb3   : > { %v3367_v36 = vmul.f32 %v3289_v48, %v3329_v14  ;;  %v824_v43 = vmul.f32 %v3255_v23, %v3305_v60  ;;  %v663_v46 = vmul.f32 %v2396_v7, %v3271_v34  ;;  %v3412_v57 = vmul.f32 %v3308_v61, %v3329_v14 }
  0xb4   : > { %v513_v26 = vld [vmem:[#allocation2] sm:$0xff]  ;;  %433 = vst.msk [vmem:[#allocation2 + $0xa0] sm:$0xff] %vm412_vm1, %v400_v2  ;;  %v3426_v1 = vmul.f32 %v3399_v52, %v3347_v24 }
  0xb5   : > { %v545_v27 = vadd.f32 %v513_v26, %v481_v18  ;;  %v529_v28 = vld [vmem:[#allocation2 + $0x80] sm:$0xff]  ;;  %v514_v38 = vld [vmem:[#allocation2 + $0x8] sm:$0xff]  ;;  %v515_v41 = vld [vmem:[#allocation2 + $0x10] sm:$0xff]  ;;  %v662_v26 = vmul.f32 %v3271_v34, %v626_v8 }
  0xb6   : > { %v561_v35 = vadd.f32 %v529_v28, %v497_v22  ;;  %v546_v44 = vadd.f32 %v514_v38, %v482_v29  ;;  %v547_v45 = vadd.f32 %v515_v41, %v483_v32  ;;  %v530_v50 = vld [vmem:[#allocation2 + $0x88] sm:$0xff]  ;;  %v531_v63 = vld [vmem:[#allocation2 + $0x90] sm:$0xff]  ;;  %v3339_v18 = vld [vmem:[%s3197_s8 + $0x38] sm:$0xff]  ;;  %v500_v22 = vmul.f32 %v3312_v62, %v3231_v10  ;;  %4700 = vst [vmem:[#allocation18_spill] sm:$0xff] %v3426_v1 }
  0xb7   : > { %577 = vst.msk [vmem:[#allocation2] sm:$0xff] %vm412_vm1, %v545_v27  ;;  %v562_v56 = vadd.f32 %v530_v50, %v498_v39  ;;  %v563_v12 = vadd.f32 %v531_v63, %v499_v51  ;;  %v516_v19 = vld [vmem:[#allocation2 + $0x18] sm:$0xff]  ;;  %v808_v29 = vmul.f32 %v3234_v11, %v3305_v60  ;;  %v385_v39 = vmul.f32 %v3339_v18, %v3223_v6 }
  0xb8   : > { %593 = vst.msk [vmem:[#allocation2 + $0x80] sm:$0xff] %vm412_vm1, %v561_v35  ;;  %578 = vst.msk [vmem:[#allocation2 + $0x8] sm:$0xff] %vm412_vm1, %v546_v44  ;;  %v548_v28 = vadd.f32 %v516_v19, %v484_v0  ;;  %v3363_v35 = vmul.f32 %v2380_v53, %v3326_v13  ;;  %v3370_v38 = vld [vmem:[%s3197_s8 + $0xf1] sm:$0xff]  ;;  %v3379_v41 = vmul.f32 %v3333_v16, %v3336_v17  ;;  %v2381_v44 = vld [vmem:[%s3197_s8 + $0x22] sm:$0xff] }
  0xb9   : > { %579 = vst.msk [vmem:[#allocation2 + $0x10] sm:$0xff] %vm412_vm1, %v547_v45  ;;  %594 = vst.msk [vmem:[#allocation2 + $0x88] sm:$0xff] %vm412_vm1, %v562_v56  ;;  %v532_v11 = vld [vmem:[#allocation2 + $0x98] sm:$0xff]  ;;  %v3392_v50 = vmul.f32 %v3382_v42, %v3347_v24  ;;  %v3396_v51 = vmul.f32 %v3275_v37, %v3319_v3  ;;  %v3402_v53 = vld [vmem:[%s3197_s8 + $0x48] sm:$0xff]  ;;  %v3408_v56 = vmul.f32 %v2396_v7, %v3326_v13 }
  0xba   : > { %595 = vst.msk [vmem:[#allocation2 + $0x90] sm:$0xff] %vm412_vm1, %v563_v12  ;;  %580 = vst.msk [vmem:[#allocation2 + $0x18] sm:$0xff] %vm412_vm1, %v548_v28  ;;  %v3416_v37 = vmul.f32 %v3370_v38, %v3336_v17  ;;  %v501_v63 = vmul.f32 %v3370_v38, %v3231_v10  ;;  %v648_v8 = vmul.f32 %v2381_v44, %v3271_v34  ;;  %v3435_v19 = vld [vmem:[%s3197_s8 + $0xf9] sm:$0xff]  ;;  %v3440_v7 = vld [vmem:[%s3197_s8 + $0x108] sm:$0xff] }
  0xbb   : > { %418 = vst.msk [vmem:[#allocation2 + $0x28] sm:$0xff] %vm412_vm1, %v385_v39 }
  0xbe   : > { %v677_v58 = vld [vmem:[#allocation2] sm:$0xff] }
  0xbf   : > { %v709_v59 = vadd.f32 %v677_v58, %v645_v47  ;;  %v693_v4 = vld [vmem:[#allocation2 + $0x80] sm:$0xff]  ;;  %v678_v25 = vld [vmem:[#allocation2 + $0x8] sm:$0xff]  ;;  %v564_v47 = vadd.f32 %v532_v11, %v500_v22  ;;  %v810_v22 = vmul.f32 %v3289_v48, %v3305_v60 }
  0xc0   : > { %v725_v15 = vadd.f32 %v693_v4, %v661_v54  ;;  %v679_v27 = vld [vmem:[#allocation2 + $0x10] sm:$0xff]  ;;  %v710_v32 = vadd.f32 %v678_v25, %v646_v5  ;;  %v694_v45 = vld [vmem:[#allocation2 + $0x88] sm:$0xff]  ;;  %v401_v54 = vmul.f32 %v3359_v20, %v3223_v6  ;;  %v3419_v58 = vld [vmem:[%s3197_s8 + $0x39] sm:$0xff]  ;;  %v386_v25 = vmul.f32 %v3402_v53, %v3223_v6 }
  0xc1   : > { %741 = vst.msk [vmem:[#allocation2] sm:$0xff] %vm412_vm1, %v709_v59  ;;  %v711_v33 = vadd.f32 %v679_v27, %v647_v9  ;;  %v726_v23 = vadd.f32 %v694_v45, %v662_v26  ;;  %596 = vst.msk [vmem:[#allocation2 + $0x98] sm:$0xff] %vm412_vm1, %v564_v47  ;;  %v517_v59 = vld [vmem:[#allocation2 + $0x20] sm:$0xff]  ;;  %v695_v5 = vld [vmem:[#allocation2 + $0x90] sm:$0xff]  ;;  %v3447_v27 = vmul.f32 %v3293_v49, %v3319_v3 }
  0xc2   : > { %757 = vst.msk [vmem:[#allocation2 + $0x80] sm:$0xff] %vm412_vm1, %v725_v15  ;;  %742 = vst.msk [vmem:[#allocation2 + $0x8] sm:$0xff] %vm412_vm1, %v710_v32  ;;  %v2397_v4 = vld [vmem:[%s3197_s8 + $0xe2] sm:$0xff]  ;;  %v549_v9 = vadd.f32 %v517_v59, %v485_v21  ;;  %v809_v15 = vmul.f32 %v3262_v30, %v3305_v60  ;;  %v727_v2 = vadd.f32 %v695_v5, %v663_v46  ;;  %v3464_v49 = vld [vmem:[%s3197_s8 + $0x3a] sm:$0xff] }
  0xc3   : > { %743 = vst.msk [vmem:[#allocation2 + $0x10] sm:$0xff] %vm412_vm1, %v711_v33  ;;  %758 = vst.msk [vmem:[#allocation2 + $0x88] sm:$0xff] %vm412_vm1, %v726_v23  ;;  %v3450_v30 = vmul.f32 %v2381_v44, %v3326_v13  ;;  %v533_v48 = vld [vmem:[#allocation2 + $0xa0] sm:$0xff]  ;;  %v486_v28 = vmul.f32 %v3419_v58, %v3231_v10  ;;  %v3461_v32 = vmul.f32 %v3419_v58, %v3336_v17  ;;  %v680_v33 = vld [vmem:[#allocation2 + $0x18] sm:$0xff] }
  0xc4   : > { %434 = vst.msk [vmem:[#allocation2 + $0xa8] sm:$0xff] %vm412_vm1, %v401_v54  ;;  %581 = vst.msk [vmem:[#allocation2 + $0x20] sm:$0xff] %vm412_vm1, %v549_v9  ;;  %v664_v11 = vmul.f32 %v2397_v4, %v3271_v34  ;;  %v565_v21 = vadd.f32 %v533_v48, %v501_v63  ;;  %v3473_v45 = vld [vmem:[%s3197_s8 + $0x49] sm:$0xff]  ;;  %v712_v46 = vadd.f32 %v680_v33, %v648_v8 }
  0xc5   : > { %759 = vst.msk [vmem:[#allocation2 + $0x90] sm:$0xff] %vm412_vm1, %v727_v2  ;;  %419 = vst.msk [vmem:[#allocation2 + $0x30] sm:$0xff] %vm412_vm1, %v386_v25  ;;  %v502_v47 = vmul.f32 %v3435_v19, %v3231_v10  ;;  %v402_v23 = vmul.f32 %v3440_v7, %v3223_v6  ;;  %v3485_v59 = vmul.f32 %v3312_v62, %v3319_v3  ;;  %v3488_v63 = vld [vmem:[%s3197_s8 + $0x50] sm:$0xff] }
  0xc6   : > { %597 = vst.msk [vmem:[#allocation2 + $0xa0] sm:$0xff] %vm412_vm1, %v565_v21  ;;  %v3492_v5 = vmul.f32 %v2397_v4, %v3326_v13  ;;  %v3496_v8 = vmul.f32 %v3333_v16, %v3319_v3  ;;  %744 = vst.msk [vmem:[#allocation2 + $0x18] sm:$0xff] %vm412_vm1, %v712_v46  ;;  %v649_v62 = vmul.f32 %v3382_v42, %v3271_v34  ;;  %v3523_v21 = vld [vmem:[%s3197_s8 + $0x110] sm:$0xff] }
  0xc7   : > { %435 = vst.msk [vmem:[#allocation2 + $0xb0] sm:$0xff] %vm412_vm1, %v402_v23  ;;  %v3505_v4 = vmul.f32 %v3359_v20, %v3329_v14  ;;  %v826_v16 = vmul.f32 %v3308_v61, %v3305_v60  ;;  %v3520_v33 = vmul.f32 %v3382_v42, %v3326_v13  ;;  %v387_v61 = vmul.f32 %v3488_v63, %v3223_v6 }
  0xc8   : > { %v838_v55 = vld [vmem:[#allocation2] sm:$0xff]  ;;  %v696_v9 = vld [vmem:[#allocation2 + $0x98] sm:$0xff]  ;;  %v3538_v42 = vmul.f32 %v3402_v53, %v3329_v14 }
  0xc9   : > { %v868_v0 = vadd.f32 %v838_v55, %v808_v29  ;;  %v854_v12 = vld [vmem:[#allocation2 + $0x80] sm:$0xff]  ;;  %v3457_v29 = vmul.f32 %v3339_v18, %v3329_v14  ;;  %v839_v39 = vld [vmem:[#allocation2 + $0x8] sm:$0xff]  ;;  %v3481_v55 = vmul.f32 %v3464_v49, %v3347_v24  ;;  %v728_v2 = vadd.f32 %v696_v9, %v664_v11  ;;  %420 = vst.msk [vmem:[#allocation2 + $0x38] sm:$0xff] %vm412_vm1, %v387_v61 }
  0xca   : > { %v884_v26 = vadd.f32 %v854_v12, %v824_v43  ;;  %v825_v43 = vmul.f32 %v3281_v40, %v3305_v60  ;;  %v840_v44 = vld [vmem:[#allocation2 + $0x10] sm:$0xff]  ;;  %v869_v54 = vadd.f32 %v839_v39, %v809_v15  ;;  %v855_v15 = vld [vmem:[#allocation2 + $0x88] sm:$0xff] }
  0xcb   : > { %898 = vst.msk [vmem:[#allocation2] sm:$0xff] %vm412_vm1, %v868_v0  ;;  %4701 = vst [vmem:[#allocation19_spill] sm:$0xff] %v3481_v55  ;;  %v870_v40 = vadd.f32 %v840_v44, %v810_v22  ;;  %v518_v0 = vld [vmem:[#allocation2 + $0x28] sm:$0xff]  ;;  %v3530_v44 = vmul.f32 %v3435_v19, %v3336_v17  ;;  %v681_v46 = vld [vmem:[#allocation2 + $0x20] sm:$0xff] }
  0xcc   : > { %914 = vst.msk [vmem:[#allocation2 + $0x80] sm:$0xff] %vm412_vm1, %v884_v26  ;;  %v550_v12 = vadd.f32 %v518_v0, %v486_v28  ;;  %899 = vst.msk [vmem:[#allocation2 + $0x8] sm:$0xff] %vm412_vm1, %v869_v54  ;;  %v3511_v22 = vld [vmem:[%s3197_s8 + $0x109] sm:$0xff]  ;;  %v487_v26 = vmul.f32 %v3473_v45, %v3231_v10  ;;  %v885_v48 = vadd.f32 %v855_v15, %v825_v43  ;;  %v3516_v28 = vld [vmem:[%s3197_s8 + $0xfa] sm:$0xff] }
  0xcd   : > { %900 = vst.msk [vmem:[#allocation2 + $0x10] sm:$0xff] %vm412_vm1, %v870_v40  ;;  %v534_v25 = vld [vmem:[#allocation2 + $0xa8] sm:$0xff]  ;;  %v3534_v43 = vmul.f32 %v3516_v28, %v3347_v24  ;;  %760 = vst.msk [vmem:[#allocation2 + $0x98] sm:$0xff] %vm412_vm1, %v728_v2  ;;  %v856_v54 = vld [vmem:[#allocation2 + $0x90] sm:$0xff]  ;;  %v811_v40 = vmul.f32 %v3339_v18, %v3305_v60  ;;  %v713_v0 = vadd.f32 %v681_v46, %v649_v62 }
  0xce   : > { %582 = vst.msk [vmem:[#allocation2 + $0x28] sm:$0xff] %vm412_vm1, %v550_v12  ;;  %v566_v39 = vadd.f32 %v534_v25, %v502_v47  ;;  %v665_v47 = vmul.f32 %v3399_v52, %v3271_v34  ;;  %915 = vst.msk [vmem:[#allocation2 + $0x88] sm:$0xff] %vm412_vm1, %v885_v48  ;;  %v519_v9 = vld [vmem:[#allocation2 + $0x30] sm:$0xff]  ;;  %v503_v12 = vmul.f32 %v3511_v22, %v3231_v10 }
  0xcf   : > { %4702 = vst [vmem:[#allocation20_spill] sm:$0xff] %v3534_v43  ;;  %v3556_v2 = vld [vmem:[%s3197_s8 + $0x4a] sm:$0xff]  ;;  %v886_v25 = vadd.f32 %v856_v54, %v826_v16  ;;  %v551_v18 = vadd.f32 %v519_v9, %v487_v26  ;;  %v403_v62 = vmul.f32 %v3523_v21, %v3223_v6  ;;  %745 = vst.msk [vmem:[#allocation2 + $0x20] sm:$0xff] %vm412_vm1, %v713_v0  ;;  %v3575_v16 = vld [vmem:[%s3197_s8 + $0x60] sm:$0xff] }
  0xd0   : > { %598 = vst.msk [vmem:[#allocation2 + $0xa8] sm:$0xff] %vm412_vm1, %v566_v39  ;;  %v3559_v48 = vld [vmem:[%s3197_s8 + $0x51] sm:$0xff]  ;;  %v3567_v61 = vmul.f32 %v3556_v2, %v3347_v24  ;;  %v697_v26 = vld [vmem:[#allocation2 + $0xa0] sm:$0xff]  ;;  %v650_v46 = vmul.f32 %v3464_v49, %v3271_v34  ;;  %v827_v54 = vmul.f32 %v3359_v20, %v3305_v60 }
  0xd1   : > { %916 = vst.msk [vmem:[#allocation2 + $0x90] sm:$0xff] %vm412_vm1, %v886_v25  ;;  %v729_v0 = vadd.f32 %v697_v26, %v665_v47  ;;  %583 = vst.msk [vmem:[#allocation2 + $0x30] sm:$0xff] %vm412_vm1, %v551_v18  ;;  %v535_v9 = vld [vmem:[#allocation2 + $0xb0] sm:$0xff]  ;;  %v488_v20 = vmul.f32 %v3559_v48, %v3231_v10  ;;  %v388_v26 = vmul.f32 %v3575_v16, %v3223_v6 }
  0xd2   : > { %v1003_v11 = vld [vmem:[#allocation2] sm:$0xff]  ;;  %4703 = vst [vmem:[#allocation21_spill] sm:$0xff] %v3567_v61  ;;  %436 = vst.msk [vmem:[#allocation2 + $0xb8] sm:$0xff] %vm412_vm1, %v403_v62  ;;  %v3594_v43 = vld [vmem:[%s3197_s8 + $0x111] sm:$0xff]  ;;  %v666_v61 = vmul.f32 %v3516_v28, %v3271_v34  ;;  %v567_v55 = vadd.f32 %v535_v9, %v503_v12  ;;  %v3604_v62 = vmul.f32 %v3511_v22, %v3336_v17 }
  0xd3   : > { %v1033_v23 = vadd.f32 %v1003_v11, %v3356_v31  ;;  %v1019_v15 = vld [vmem:[#allocation2 + $0x80] sm:$0xff]  ;;  %v3553_v31 = vmul.f32 %v3473_v45, %v3336_v17  ;;  %v3571_v11 = vmul.f32 %v3370_v38, %v3319_v3  ;;  %v841_v38 = vld [vmem:[#allocation2 + $0x18] sm:$0xff]  ;;  %761 = vst.msk [vmem:[#allocation2 + $0xa0] sm:$0xff] %vm412_vm1, %v729_v0  ;;  %421 = vst.msk [vmem:[#allocation2 + $0x40] sm:$0xff] %vm412_vm1, %v388_v26 }
  0xd4   : > { %v1049_v39 = vadd.f32 %v1019_v15, %v3396_v51  ;;  %v3582_v51 = vmul.f32 %v3399_v52, %v3326_v13  ;;  %v1004_v15 = vld [vmem:[#allocation2 + $0x8] sm:$0xff]  ;;  %v1005_v52 = vld [vmem:[#allocation2 + $0x10] sm:$0xff]  ;;  %v871_v25 = vadd.f32 %v841_v38, %v811_v40  ;;  %4704 = vst [vmem:[#allocation22_spill] sm:$0xff] %v3604_v62  ;;  %v812_v38 = vmul.f32 %v3402_v53, %v3305_v60  ;;  %v3624_v0 = vld [vmem:[%s3197_s8 + $0x120] sm:$0xff] }
  0xd5   : > { %1063 = vst.msk [vmem:[#allocation2] sm:$0xff] %vm412_vm1, %v1033_v23  ;;  %v3586_v23 = vmul.f32 %v3440_v7, %v3329_v14  ;;  %v1034_v47 = vadd.f32 %v1004_v15, %v3447_v27  ;;  %v1035_v18 = vadd.f32 %v1005_v52, %v3496_v8  ;;  %v682_v40 = vld [vmem:[#allocation2 + $0x28] sm:$0xff]  ;;  %v3619_v27 = vmul.f32 %v3419_v58, %v3319_v3  ;;  %v857_v8 = vld [vmem:[#allocation2 + $0x98] sm:$0xff] }
  0xd6   : > { %1079 = vst.msk [vmem:[#allocation2 + $0x80] sm:$0xff] %vm412_vm1, %v1049_v39  ;;  %v3607_v39 = vld [vmem:[%s3197_s8 + $0x10a] sm:$0xff]  ;;  %901 = vst.msk [vmem:[#allocation2 + $0x18] sm:$0xff] %vm412_vm1, %v871_v25  ;;  %v714_v9 = vadd.f32 %v682_v40, %v650_v46  ;;  %v3631_v58 = vmul.f32 %v3464_v49, %v3326_v13  ;;  %v887_v52 = vadd.f32 %v857_v8, %v827_v54  ;;  %v3644_v49 = vld [vmem:[%s3197_s8 + $0x52] sm:$0xff] }
  0xd7   : > { %v3614_v12 = vmul.f32 %v3607_v39, %v3347_v24  ;;  %599 = vst.msk [vmem:[#allocation2 + $0xb0] sm:$0xff] %vm412_vm1, %v567_v55  ;;  %1064 = vst.msk [vmem:[#allocation2 + $0x8] sm:$0xff] %vm412_vm1, %v1034_v47  ;;  %v1020_v15 = vld [vmem:[#allocation2 + $0x88] sm:$0xff]  ;;  %v651_v53 = vmul.f32 %v3556_v2, %v3271_v34  ;;  %v504_v46 = vmul.f32 %v3594_v43, %v3231_v10  ;;  %v842_v26 = vld [vmem:[#allocation2 + $0x20] sm:$0xff] }
  0xd8   : > { %1065 = vst.msk [vmem:[#allocation2 + $0x10] sm:$0xff] %vm412_vm1, %v1035_v18  ;;  %v698_v25 = vld [vmem:[#allocation2 + $0xa8] sm:$0xff]  ;;  %v1050_v55 = vadd.f32 %v1020_v15, %v3485_v59  ;;  %v3641_v47 = vmul.f32 %v3488_v63, %v3329_v14  ;;  %746 = vst.msk [vmem:[#allocation2 + $0x28] sm:$0xff] %vm412_vm1, %v714_v9  ;;  %v3652_v1 = vmul.f32 %v3559_v48, %v3336_v17 }
  0xd9   : > { %4705 = vst [vmem:[#allocation23_spill] sm:$0xff] %v3614_v12  ;;  %v520_v12 = vld [vmem:[#allocation2 + $0x38] sm:$0xff]  ;;  %v3647_v54 = vld [vmem:[%s3197_s8 + $0x61] sm:$0xff]  ;;  %v730_v18 = vadd.f32 %v698_v25, %v666_v61  ;;  %v3656_v59 = vmul.f32 %v3644_v49, %v3347_v24  ;;  %917 = vst.msk [vmem:[#allocation2 + $0x98] sm:$0xff] %vm412_vm1, %v887_v52  ;;  %v828_v15 = vmul.f32 %v3440_v7, %v3305_v60 }
  0xda   : > { %v552_v40 = vadd.f32 %v520_v12, %v488_v20  ;;  %4706 = vst [vmem:[#allocation24_spill] sm:$0xff] %v3652_v1  ;;  %v3662_v62 = vld [vmem:[%s3197_s8 + $0x68] sm:$0xff]  ;;  %v404_v61 = vmul.f32 %v3624_v0, %v3223_v6  ;;  %1080 = vst.msk [vmem:[#allocation2 + $0x88] sm:$0xff] %vm412_vm1, %v1050_v55  ;;  %v1021_v12 = vld [vmem:[#allocation2 + $0x90] sm:$0xff]  ;;  %v992_v9 = vmul.f32 %v3435_v19, %v3319_v3 }
  0xdb   : > { %4707 = vst [vmem:[#allocation25_spill] sm:$0xff] %v3656_v59  ;;  %v872_v25 = vadd.f32 %v842_v26, %v812_v38  ;;  %762 = vst.msk [vmem:[#allocation2 + $0xa8] sm:$0xff] %vm412_vm1, %v730_v18  ;;  %v683_v52 = vld [vmem:[#allocation2 + $0x30] sm:$0xff]  ;;  %v667_v7 = vmul.f32 %v3607_v39, %v3271_v34  ;;  %v536_v59 = vld [vmem:[#allocation2 + $0xb8] sm:$0xff]  ;;  %v489_v19 = vmul.f32 %v3647_v54, %v3231_v10 }
  0xdc   : > { %v1167_v8 = vld [vmem:[#allocation2] sm:$0xff]  ;;  %584 = vst.msk [vmem:[#allocation2 + $0x38] sm:$0xff] %vm412_vm1, %v552_v40  ;;  %v715_v55 = vadd.f32 %v683_v52, %v651_v53  ;;  %437 = vst.msk [vmem:[#allocation2 + $0xc0] sm:$0xff] %vm412_vm1, %v404_v61  ;;  %v3682_v18 = vmul.f32 %v3516_v28, %v3326_v13  ;;  %v3685_v40 = vld [vmem:[%s3197_s8 + $0x112] sm:$0xff]  ;;  %v3702_v28 = vmul.f32 %v3594_v43, %v3336_v17 }
  0xdd   : > { %v1197_v20 = vadd.f32 %v1167_v8, %v3363_v35  ;;  %v1183_v1 = vld [vmem:[#allocation2 + $0x80] sm:$0xff]  ;;  %v1051_v35 = vadd.f32 %v1021_v12, %v3571_v11  ;;  %v568_v8 = vadd.f32 %v536_v59, %v504_v46  ;;  %902 = vst.msk [vmem:[#allocation2 + $0x20] sm:$0xff] %vm412_vm1, %v872_v25  ;;  %v813_v46 = vmul.f32 %v3488_v63, %v3305_v60  ;;  %v3709_v63 = vld [vmem:[%s3197_s8 + $0x128] sm:$0xff] }
  0xde   : > { %v1213_v38 = vadd.f32 %v1183_v1, %v3408_v56  ;;  %v858_v11 = vld [vmem:[#allocation2 + $0xa0] sm:$0xff]  ;;  %v389_v59 = vmul.f32 %v3662_v62, %v3223_v6  ;;  %v1006_v56 = vld [vmem:[#allocation2 + $0x18] sm:$0xff]  ;;  %v3698_v1 = vmul.f32 %v3523_v21, %v3329_v14  ;;  %4708 = vst [vmem:[#allocation26_spill] sm:$0xff] %v3702_v28  ;;  %v3706_v26 = vmul.f32 %v3685_v40, %v3347_v24  ;;  %v1168_v12 = vld [vmem:[#allocation2 + $0x8] sm:$0xff] }
  0xdf   : > { %1227 = vst.msk [vmem:[#allocation2] sm:$0xff] %vm412_vm1, %v1197_v20  ;;  %v3689_v53 = vld [vmem:[%s3197_s8 + $0x121] sm:$0xff]  ;;  %1081 = vst.msk [vmem:[#allocation2 + $0x90] sm:$0xff] %vm412_vm1, %v1051_v35  ;;  %v888_v61 = vadd.f32 %v858_v11, %v828_v15  ;;  %v699_v20 = vld [vmem:[#allocation2 + $0xb0] sm:$0xff]  ;;  %v1036_v52 = vadd.f32 %v1006_v56, %v3619_v27  ;;  %v829_v35 = vmul.f32 %v3523_v21, %v3305_v60 }
  0xe0   : > { %4709 = vst [vmem:[#allocation27_spill] sm:$0xff] %v3706_v26  ;;  %747 = vst.msk [vmem:[#allocation2 + $0x30] sm:$0xff] %vm412_vm1, %v715_v55  ;;  %v1169_v25 = vld [vmem:[#allocation2 + $0x10] sm:$0xff]  ;;  %v731_v28 = vadd.f32 %v699_v20, %v667_v7  ;;  %v652_v15 = vmul.f32 %v3644_v49, %v3271_v34  ;;  %v521_v11 = vld [vmem:[#allocation2 + $0x40] sm:$0xff]  ;;  %v1198_v55 = vadd.f32 %v1168_v12, %v3450_v30 }
  0xe1   : > { %600 = vst.msk [vmem:[#allocation2 + $0xb8] sm:$0xff] %vm412_vm1, %v568_v8  ;;  %1243 = vst.msk [vmem:[#allocation2 + $0x80] sm:$0xff] %vm412_vm1, %v1213_v38  ;;  %v1199_v8 = vadd.f32 %v1169_v25, %v3520_v33  ;;  %v843_v38 = vld [vmem:[#allocation2 + $0x28] sm:$0xff]  ;;  %v553_v27 = vadd.f32 %v521_v11, %v489_v19  ;;  %v505_v21 = vmul.f32 %v3689_v53, %v3231_v10  ;;  %v1022_v7 = vld [vmem:[#allocation2 + $0x98] sm:$0xff] }
  0xe2   : > { %422 = vst.msk [vmem:[#allocation2 + $0x48] sm:$0xff] %vm412_vm1, %v389_v59  ;;  %918 = vst.msk [vmem:[#allocation2 + $0xa0] sm:$0xff] %vm412_vm1, %v888_v61  ;;  %v3724_v26 = vld [vmem:[%s3197_s8 + $0x69] sm:$0xff]  ;;  %v977_v56 = vmul.f32 %v3473_v45, %v3319_v3  ;;  %v3733_v30 = vmul.f32 %v3556_v2, %v3326_v13  ;;  %v873_v33 = vadd.f32 %v843_v38, %v813_v46  ;;  %v3736_v59 = vld [vmem:[%s3197_s8 + $0x78] sm:$0xff] }
  0xe3   : > { %1066 = vst.msk [vmem:[#allocation2 + $0x18] sm:$0xff] %vm412_vm1, %v1036_v52  ;;  %763 = vst.msk [vmem:[#allocation2 + $0xb0] sm:$0xff] %vm412_vm1, %v731_v28  ;;  %v405_v19 = vmul.f32 %v3709_v63, %v3223_v6  ;;  %v1184_v61 = vld [vmem:[#allocation2 + $0x88] sm:$0xff]  ;;  %v1052_v20 = vadd.f32 %v1022_v7, %v992_v9  ;;  %v3745_v45 = vmul.f32 %v3575_v16, %v3329_v14  ;;  %v684_v12 = vld [vmem:[#allocation2 + $0x38] sm:$0xff] }
  0xe4   : > { %1228 = vst.msk [vmem:[#allocation2 + $0x8] sm:$0xff] %vm412_vm1, %v1198_v55  ;;  %1229 = vst.msk [vmem:[#allocation2 + $0x10] sm:$0xff] %vm412_vm1, %v1199_v8  ;;  %v859_v2 = vld [vmem:[#allocation2 + $0xa8] sm:$0xff]  ;;  %v814_v46 = vmul.f32 %v3575_v16, %v3305_v60  ;;  %v668_v28 = vmul.f32 %v3685_v40, %v3271_v34  ;;  %v1214_v25 = vadd.f32 %v1184_v61, %v3492_v5  ;;  %v537_v55 = vld [vmem:[#allocation2 + $0xc0] sm:$0xff] }
  0xe5   : > { %585 = vst.msk [vmem:[#allocation2 + $0x40] sm:$0xff] %vm412_vm1, %v553_v27  ;;  %v3754_v52 = vld [vmem:[%s3197_s8 + $0x62] sm:$0xff]  ;;  %903 = vst.msk [vmem:[#allocation2 + $0x28] sm:$0xff] %vm412_vm1, %v873_v33  ;;  %v889_v9 = vadd.f32 %v859_v2, %v829_v35  ;;  %v716_v11 = vadd.f32 %v684_v12, %v652_v15  ;;  %v490_v8 = vmul.f32 %v3724_v26, %v3231_v10 }
  0xe6   : > { %438 = vst.msk [vmem:[#allocation2 + $0xc8] sm:$0xff] %vm412_vm1, %v405_v19  ;;  %v1328_v16 = vld [vmem:[#allocation2] sm:$0xff]  ;;  %1082 = vst.msk [vmem:[#allocation2 + $0x98] sm:$0xff] %vm412_vm1, %v1052_v20  ;;  %v3763_v27 = vmul.f32 %v3647_v54, %v3336_v17  ;;  %v3767_v5 = vmul.f32 %v3754_v52, %v3347_v24  ;;  %v993_v35 = vmul.f32 %v3511_v22, %v3319_v3  ;;  %v3772_v15 = vld [vmem:[%s3197_s8 + $0x129] sm:$0xff] }
  0xe7   : > { %v1007_v38 = vld [vmem:[#allocation2 + $0x20] sm:$0xff]  ;;  %v569_v7 = vadd.f32 %v537_v55, %v505_v21  ;;  %v1356_v33 = vadd.f32 %v1328_v16, %v3367_v36  ;;  %1244 = vst.msk [vmem:[#allocation2 + $0x88] sm:$0xff] %vm412_vm1, %v1214_v25  ;;  %v1185_v19 = vld [vmem:[#allocation2 + $0x90] sm:$0xff]  ;;  %919 = vst.msk [vmem:[#allocation2 + $0xa8] sm:$0xff] %vm412_vm1, %v889_v9  ;;  %v830_v2 = vmul.f32 %v3624_v0, %v3305_v60 }
  0xe8   : > { %v1037_v61 = vadd.f32 %v1007_v38, %v977_v56  ;;  %v844_v20 = vld [vmem:[#allocation2 + $0x30] sm:$0xff]  ;;  %748 = vst.msk [vmem:[#allocation2 + $0x38] sm:$0xff] %vm412_vm1, %v716_v11  ;;  %v700_v12 = vld [vmem:[#allocation2 + $0xb8] sm:$0xff]  ;;  %v390_v22 = vmul.f32 %v3736_v59, %v3223_v6  ;;  %v1344_v21 = vld [vmem:[#allocation2 + $0x80] sm:$0xff]  ;;  %v1215_v36 = vadd.f32 %v1185_v19, %v3582_v51  ;;  %v653_v9 = vmul.f32 %v3754_v52, %v3271_v34 }
  0xe9   : > { %v3784_v55 = vld [vmem:[%s3197_s8 + $0x122] sm:$0xff]  ;;  %v874_v25 = vadd.f32 %v844_v20, %v814_v46  ;;  %v732_v56 = vadd.f32 %v700_v12, %v668_v28  ;;  %601 = vst.msk [vmem:[#allocation2 + $0xc0] sm:$0xff] %vm412_vm1, %v569_v7  ;;  %1384 = vst.msk [vmem:[#allocation2] sm:$0xff] %vm412_vm1, %v1356_v33  ;;  %v1372_v11 = vadd.f32 %v1344_v21, %v3412_v57  ;;  %v3795_v19 = vld [vmem:[%s3197_s8 + $0x138] sm:$0xff] }
  0xea   : > { %v522_v16 = vld [vmem:[#allocation2 + $0x48] sm:$0xff]  ;;  %1067 = vst.msk [vmem:[#allocation2 + $0x20] sm:$0xff] %vm412_vm1, %v1037_v61  ;;  %v1023_v38 = vld [vmem:[#allocation2 + $0xa0] sm:$0xff]  ;;  %v978_v51 = vmul.f32 %v3559_v48, %v3319_v3  ;;  %v506_v28 = vmul.f32 %v3772_v15, %v3231_v10  ;;  %423 = vst.msk [vmem:[#allocation2 + $0x50] sm:$0xff] %vm412_vm1, %v390_v22  ;;  %v3803_v57 = vmul.f32 %v3607_v39, %v3326_v13 }
  0xeb   : > { %v554_v46 = vadd.f32 %v522_v16, %v490_v8  ;;  %1245 = vst.msk [vmem:[#allocation2 + $0x90] sm:$0xff] %vm412_vm1, %v1215_v36  ;;  %v1170_v7 = vld [vmem:[#allocation2 + $0x18] sm:$0xff]  ;;  %v1053_v33 = vadd.f32 %v1023_v38, %v993_v35  ;;  %v3807_v61 = vmul.f32 %v3624_v0, %v3329_v14  ;;  %v994_v48 = vmul.f32 %v3594_v43, %v3319_v3  ;;  %v860_v20 = vld [vmem:[#allocation2 + $0xb0] sm:$0xff]  ;;  %v1329_v35 = vld [vmem:[#allocation2 + $0x8] sm:$0xff] }
  0xec   : > { %904 = vst.msk [vmem:[#allocation2 + $0x30] sm:$0xff] %vm412_vm1, %v874_v25  ;;  %v3813_v8 = vld [vmem:[%s3197_s8 + $0x79] sm:$0xff]  ;;  %764 = vst.msk [vmem:[#allocation2 + $0xb8] sm:$0xff] %vm412_vm1, %v732_v56  ;;  %v1330_v39 = vld [vmem:[#allocation2 + $0x10] sm:$0xff]  ;;  %v1200_v12 = vadd.f32 %v1170_v7, %v3631_v58  ;;  %v890_v22 = vadd.f32 %v860_v20, %v830_v2  ;;  %v815_v0 = vmul.f32 %v3662_v62, %v3305_v60 }
  0xed   : > { %1400 = vst.msk [vmem:[#allocation2 + $0x80] sm:$0xff] %vm412_vm1, %v1372_v11  ;;  %v685_v21 = vld [vmem:[#allocation2 + $0x40] sm:$0xff]  ;;  %v669_v43 = vmul.f32 %v3784_v55, %v3271_v34  ;;  %586 = vst.msk [vmem:[#allocation2 + $0x48] sm:$0xff] %vm412_vm1, %v554_v46  ;;  %v1357_v36 = vadd.f32 %v1329_v35, %v3457_v29  ;;  %v1358_v25 = vadd.f32 %v1330_v39, %v3538_v42  ;;  %v1008_v56 = vld [vmem:[#allocation2 + $0x28] sm:$0xff] }
  0xee   : > { %1083 = vst.msk [vmem:[#allocation2 + $0xa0] sm:$0xff] %vm412_vm1, %v1053_v33  ;;  %v3827_v16 = vld [vmem:[%s3197_s8 + $0x6a] sm:$0xff]  ;;  %v717_v58 = vadd.f32 %v685_v21, %v653_v9  ;;  %v406_v11 = vmul.f32 %v3795_v19, %v3223_v6  ;;  %1230 = vst.msk [vmem:[#allocation2 + $0x18] sm:$0xff] %vm412_vm1, %v1200_v12  ;;  %v1186_v38 = vld [vmem:[#allocation2 + $0x98] sm:$0xff]  ;;  %v3834_v46 = vmul.f32 %v3689_v53, %v3336_v17 }
  0xef   : > { %v538_v2 = vld [vmem:[#allocation2 + $0xc8] sm:$0xff]  ;;  %v1038_v29 = vadd.f32 %v1008_v56, %v978_v51  ;;  %920 = vst.msk [vmem:[#allocation2 + $0xb0] sm:$0xff] %vm412_vm1, %v890_v22  ;;  %v3838_v42 = vld [vmem:[%s3197_s8 + $0x80] sm:$0xff]  ;;  %v491_v9 = vmul.f32 %v3813_v8, %v3231_v10  ;;  %1385 = vst.msk [vmem:[#allocation2 + $0x8] sm:$0xff] %vm412_vm1, %v1357_v36  ;;  %v1216_v20 = vadd.f32 %v1186_v38, %v3682_v18 }
  0xf0   : > { %v570_v7 = vadd.f32 %v538_v2, %v506_v28  ;;  %v1345_v33 = vld [vmem:[#allocation2 + $0x88] sm:$0xff]  ;;  %1386 = vst.msk [vmem:[#allocation2 + $0x10] sm:$0xff] %vm412_vm1, %v1358_v25  ;;  %v3847_v51 = vmul.f32 %v3784_v55, %v3347_v24  ;;  %v979_v28 = vmul.f32 %v3647_v54, %v3319_v3  ;;  %v845_v39 = vld [vmem:[#allocation2 + $0x38] sm:$0xff]  ;;  %v831_v12 = vmul.f32 %v3709_v63, %v3305_v60  ;;  %v701_v56 = vld [vmem:[#allocation2 + $0xc0] sm:$0xff] }
  0xf1   : > { %v1024_v35 = vld [vmem:[#allocation2 + $0xa8] sm:$0xff]  ;;  %749 = vst.msk [vmem:[#allocation2 + $0x40] sm:$0xff] %vm412_vm1, %v717_v58  ;;  %439 = vst.msk [vmem:[#allocation2 + $0xd0] sm:$0xff] %vm412_vm1, %v406_v11  ;;  %v1373_v22 = vadd.f32 %v1345_v33, %v3505_v4  ;;  %v3861_v36 = vld [vmem:[%s3197_s8 + $0x139] sm:$0xff]  ;;  %v875_v25 = vadd.f32 %v845_v39, %v815_v0  ;;  %v654_v54 = vmul.f32 %v3827_v16, %v3271_v34 }
  0xf2   : > { %1068 = vst.msk [vmem:[#allocation2 + $0x28] sm:$0xff] %vm412_vm1, %v1038_v29  ;;  %v1054_v18 = vadd.f32 %v1024_v35, %v994_v48  ;;  %v3858_v21 = vld [vmem:[%s3197_s8 + $0x12a] sm:$0xff]  ;;  %602 = vst.msk [vmem:[#allocation2 + $0xc8] sm:$0xff] %vm412_vm1, %v570_v7  ;;  %v1493_v2 = vld [vmem:[#allocation2] sm:$0xff]  ;;  %v1142_v4 = vmul.f32 %v3644_v49, %v3326_v13  ;;  %v3871_v48 = vmul.f32 %v3662_v62, %v3329_v14 }
  0xf3   : > { %1246 = vst.msk [vmem:[#allocation2 + $0x98] sm:$0xff] %vm412_vm1, %v1216_v20  ;;  %v1171_v58 = vld [vmem:[#allocation2 + $0x20] sm:$0xff]  ;;  %v733_v11 = vadd.f32 %v701_v56, %v669_v43  ;;  %v523_v38 = vld [vmem:[#allocation2 + $0x50] sm:$0xff]  ;;  %v391_v0 = vmul.f32 %v3838_v42, %v3223_v6  ;;  %v1521_v29 = vadd.f32 %v1493_v2, %v3379_v41  ;;  %1401 = vst.msk [vmem:[#allocation2 + $0x88] sm:$0xff] %vm412_vm1, %v1373_v22 }
  0xf4   : > { %v1346_v7 = vld [vmem:[#allocation2 + $0x90] sm:$0xff]  ;;  %v1201_v33 = vadd.f32 %v1171_v58, %v3733_v30  ;;  %1084 = vst.msk [vmem:[#allocation2 + $0xa8] sm:$0xff] %vm412_vm1, %v1054_v18  ;;  %v995_v62 = vmul.f32 %v3689_v53, %v3319_v3  ;;  %905 = vst.msk [vmem:[#allocation2 + $0x38] sm:$0xff] %vm412_vm1, %v875_v25  ;;  %v861_v43 = vld [vmem:[#allocation2 + $0xb8] sm:$0xff]  ;;  %v555_v20 = vadd.f32 %v523_v38, %v491_v9 }
  0xf5   : > { %v1009_v49 = vld [vmem:[#allocation2 + $0x30] sm:$0xff]  ;;  %v1509_v35 = vld [vmem:[#allocation2 + $0x80] sm:$0xff]  ;;  %v1374_v39 = vadd.f32 %v1346_v7, %v3586_v23  ;;  %v891_v56 = vadd.f32 %v861_v43, %v831_v12  ;;  %v816_v30 = vmul.f32 %v3736_v59, %v3305_v60  ;;  %765 = vst.msk [vmem:[#allocation2 + $0xc0] sm:$0xff] %vm412_vm1, %v733_v11  ;;  %v686_v18 = vld [vmem:[#allocation2 + $0x48] sm:$0xff]  ;;  %v670_v12 = vmul.f32 %v3858_v21, %v3271_v34 }
  0xf6   : > { %v1039_v41 = vadd.f32 %v1009_v49, %v979_v28  ;;  %v3884_v22 = vld [vmem:[%s3197_s8 + $0x140] sm:$0xff]  ;;  %424 = vst.msk [vmem:[#allocation2 + $0x58] sm:$0xff] %vm412_vm1, %v391_v0  ;;  %1549 = vst.msk [vmem:[#allocation2] sm:$0xff] %vm412_vm1, %v1521_v29  ;;  %v1537_v53 = vadd.f32 %v1509_v35, %v3416_v37  ;;  %v718_v28 = vadd.f32 %v686_v18, %v654_v54  ;;  %v1331_v2 = vld [vmem:[#allocation2 + $0x18] sm:$0xff] }
  0xf7   : > { %1231 = vst.msk [vmem:[#allocation2 + $0x20] sm:$0xff] %vm412_vm1, %v1201_v33  ;;  %v1187_v23 = vld [vmem:[#allocation2 + $0xa0] sm:$0xff]  ;;  %587 = vst.msk [vmem:[#allocation2 + $0x50] sm:$0xff] %vm412_vm1, %v555_v20  ;;  %v507_v25 = vmul.f32 %v3861_v36, %v3231_v10  ;;  %v3905_v37 = vmul.f32 %v3724_v26, %v3336_v17  ;;  %v1158_v54 = vmul.f32 %v3685_v40, %v3326_v13  ;;  %v1025_v38 = vld [vmem:[#allocation2 + $0xb0] sm:$0xff] }
  0xf8   : > { %v3894_v9 = vld [vmem:[%s3197_s8 + $0x81] sm:$0xff]  ;;  %1402 = vst.msk [vmem:[#allocation2 + $0x90] sm:$0xff] %vm412_vm1, %v1374_v39  ;;  %v1217_v58 = vadd.f32 %v1187_v23, %v3803_v57  ;;  %1069 = vst.msk [vmem:[#allocation2 + $0x30] sm:$0xff] %vm412_vm1, %v1039_v41  ;;  %v980_v0 = vmul.f32 %v3724_v26, %v3319_v3  ;;  %v1495_v29 = vld [vmem:[#allocation2 + $0x10] sm:$0xff]  ;;  %v1359_v7 = vadd.f32 %v1331_v2, %v3641_v47 }
  0xf9   : > { %v3911_v11 = vld [vmem:[%s3197_s8 + $0x7a] sm:$0xff]  ;;  %921 = vst.msk [vmem:[#allocation2 + $0xb8] sm:$0xff] %vm412_vm1, %v891_v56  ;;  %1565 = vst.msk [vmem:[#allocation2 + $0x80] sm:$0xff] %vm412_vm1, %v1537_v53  ;;  %v1494_v57 = vld [vmem:[#allocation2 + $0x8] sm:$0xff]  ;;  %v1055_v33 = vadd.f32 %v1025_v38, %v995_v62  ;;  %v832_v40 = vmul.f32 %v3795_v19, %v3305_v60  ;;  %v407_v26 = vmul.f32 %v3884_v22, %v3223_v6 }
  0xfa   : > { %v846_v49 = vld [vmem:[#allocation2 + $0x40] sm:$0xff]  ;;  %750 = vst.msk [vmem:[#allocation2 + $0x48] sm:$0xff] %vm412_vm1, %v718_v28  ;;  %v1522_v43 = vadd.f32 %v1494_v57, %v3461_v32  ;;  %v1523_v20 = vadd.f32 %v1495_v29, %v3553_v31  ;;  %1247 = vst.msk [vmem:[#allocation2 + $0xa0] sm:$0xff] %vm412_vm1, %v1217_v58  ;;  %v1172_v35 = vld [vmem:[#allocation2 + $0x28] sm:$0xff]  ;;  %v492_v41 = vmul.f32 %v3894_v9, %v3231_v10 }
  0xfb   : > { %v876_v47 = vadd.f32 %v846_v49, %v816_v30  ;;  %v702_v62 = vld [vmem:[#allocation2 + $0xc8] sm:$0xff]  ;;  %v539_v39 = vld [vmem:[#allocation2 + $0xd0] sm:$0xff]  ;;  %1387 = vst.msk [vmem:[#allocation2 + $0x18] sm:$0xff] %vm412_vm1, %v1359_v7  ;;  %v1347_v56 = vld [vmem:[#allocation2 + $0x98] sm:$0xff]  ;;  %v1202_v18 = vadd.f32 %v1172_v35, %v1142_v4  ;;  %v655_v23 = vmul.f32 %v3911_v11, %v3271_v34  ;;  %v3944_v2 = vmul.f32 %v3827_v16, %v3347_v24 }
  0xfc   : > { %1085 = vst.msk [vmem:[#allocation2 + $0xb0] sm:$0xff] %vm412_vm1, %v1055_v33  ;;  %v3931_v53 = vld [vmem:[%s3197_s8 + $0x141] sm:$0xff]  ;;  %v3934_v32 = vld [vmem:[%s3197_s8 + $0x90] sm:$0xff]  ;;  %v734_v31 = vadd.f32 %v702_v62, %v670_v12  ;;  %v571_v30 = vadd.f32 %v539_v39, %v507_v25  ;;  %440 = vst.msk [vmem:[#allocation2 + $0xd8] sm:$0xff] %vm412_vm1, %v407_v26  ;;  %v1375_v4 = vadd.f32 %v1347_v56, %v3698_v1 }
  0xfd   : > { %1550 = vst.msk [vmem:[#allocation2 + $0x8] sm:$0xff] %vm412_vm1, %v1522_v43  ;;  %v1510_v28 = vld [vmem:[#allocation2 + $0x88] sm:$0xff]  ;;  %1551 = vst.msk [vmem:[#allocation2 + $0x10] sm:$0xff] %vm412_vm1, %v1523_v20  ;;  %v1143_v12 = vmul.f32 %v3754_v52, %v3326_v13  ;;  %v1010_v38 = vld [vmem:[#allocation2 + $0x38] sm:$0xff]  ;;  %v996_v25 = vmul.f32 %v3772_v15, %v3319_v3  ;;  %v817_v49 = vmul.f32 %v3838_v42, %v3305_v60 }
  0xfe   : > { %v1188_v58 = vld [vmem:[#allocation2 + $0xa8] sm:$0xff]  ;;  %906 = vst.msk [vmem:[#allocation2 + $0x40] sm:$0xff] %vm412_vm1, %v876_v47  ;;  %v1538_v57 = vadd.f32 %v1510_v28, %v3530_v44  ;;  %1232 = vst.msk [vmem:[#allocation2 + $0x28] sm:$0xff] %vm412_vm1, %v1202_v18  ;;  %v3954_v1 = vld [vmem:[%s3197_s8 + $0x13a] sm:$0xff]  ;;  %v1040_v7 = vadd.f32 %v1010_v38, %v980_v0  ;;  %v1159_v44 = vmul.f32 %v3784_v55, %v3326_v13 }
  0xff   : > { %v1218_v29 = vadd.f32 %v1188_v58, %v1158_v54  ;;  %v862_v33 = vld [vmem:[#allocation2 + $0xc0] sm:$0xff]  ;;  %766 = vst.msk [vmem:[#allocation2 + $0xc8] sm:$0xff] %vm412_vm1, %v734_v31  ;;  %603 = vst.msk [vmem:[#allocation2 + $0xd0] sm:$0xff] %vm412_vm1, %v571_v30  ;;  %v524_v52 = vld [vmem:[#allocation2 + $0x58] sm:$0xff]  ;;  %v508_v0 = vmul.f32 %v3931_v53, %v3231_v10 }
 0x100   : > { %v1657_v26 = vld [vmem:[#allocation2] sm:$0xff]  ;;  %1403 = vst.msk [vmem:[#allocation2 + $0x98] sm:$0xff] %vm412_vm1, %v1375_v4  ;;  %v892_v54 = vadd.f32 %v862_v33, %v832_v40  ;;  %v687_v20 = vld [vmem:[#allocation2 + $0x50] sm:$0xff]  ;;  %v556_v35 = vadd.f32 %v524_v52, %v492_v41  ;;  %1566 = vst.msk [vmem:[#allocation2 + $0x88] sm:$0xff] %vm412_vm1, %v1538_v57  ;;  %v392_v41 = vmul.f32 %v3934_v32, %v3223_v6 }
 0x101   : > { %v1332_v43 = vld [vmem:[#allocation2 + $0x20] sm:$0xff]  ;;  %v1685_v47 = vadd.f32 %v1657_v26, %v3392_v50  ;;  %v1511_v62 = vld [vmem:[#allocation2 + $0x90] sm:$0xff]  ;;  %1248 = vst.msk [vmem:[#allocation2 + $0xa8] sm:$0xff] %vm412_vm1, %v1218_v29  ;;  %1070 = vst.msk [vmem:[#allocation2 + $0x38] sm:$0xff] %vm412_vm1, %v1040_v7  ;;  %v719_v40 = vadd.f32 %v687_v20, %v655_v23  ;;  %v833_v29 = vmul.f32 %v3884_v22, %v3305_v60 }
 0x102   : > { %v1360_v39 = vadd.f32 %v1332_v43, %v3745_v45  ;;  %v1173_v56 = vld [vmem:[#allocation2 + $0x30] sm:$0xff]  ;;  %v1026_v55 = vld [vmem:[#allocation2 + $0xb8] sm:$0xff]  ;;  %v1673_v18 = vld [vmem:[#allocation2 + $0x80] sm:$0xff]  ;;  %v981_v45 = vmul.f32 %v3813_v8, %v3319_v3  ;;  %922 = vst.msk [vmem:[#allocation2 + $0xc0] sm:$0xff] %vm412_vm1, %v892_v54  ;;  %v671_v7 = vmul.f32 %v3954_v1, %v3271_v34  ;;  %v1321_v26 = vmul.f32 %v3709_v63, %v3329_v14 }
 0x103   : > { %v4710_v31 = vld [vmem:[#allocation22_spill] sm:$0xff]  ;;  %v1203_v30 = vadd.f32 %v1173_v56, %v1143_v12  ;;  %v1056_v28 = vadd.f32 %v1026_v55, %v996_v25  ;;  %v847_v4 = vld [vmem:[#allocation2 + $0x48] sm:$0xff]  ;;  %588 = vst.msk [vmem:[#allocation2 + $0x58] sm:$0xff] %vm412_vm1, %v556_v35  ;;  %1713 = vst.msk [vmem:[#allocation2] sm:$0xff] %vm412_vm1, %v1685_v47  ;;  %v1144_v43 = vmul.f32 %v3827_v16, %v3326_v13 }
 0x104   : > { %v1539_v50 = vadd.f32 %v1511_v62, %v4710_v31  ;;  %v4711_v58 = vld [vmem:[#allocation18_spill] sm:$0xff]  ;;  %1388 = vst.msk [vmem:[#allocation2 + $0x20] sm:$0xff] %vm412_vm1, %v1360_v39  ;;  %v1348_v38 = vld [vmem:[#allocation2 + $0xa0] sm:$0xff]  ;;  %v877_v25 = vadd.f32 %v847_v4, %v817_v49  ;;  %751 = vst.msk [vmem:[#allocation2 + $0x50] sm:$0xff] %vm412_vm1, %v719_v40  ;;  %v997_v20 = vmul.f32 %v3861_v36, %v3319_v3 }
 0x105   : > { %v1701_v23 = vadd.f32 %v1673_v18, %v4711_v58  ;;  %v3981_v57 = vld [vmem:[%s3197_s8 + $0x82] sm:$0xff]  ;;  %v3984_v12 = vld [vmem:[%s3197_s8 + $0x150] sm:$0xff]  ;;  %425 = vst.msk [vmem:[#allocation2 + $0x60] sm:$0xff] %vm412_vm1, %v392_v41  ;;  %v1496_v33 = vld [vmem:[#allocation2 + $0x18] sm:$0xff]  ;;  %v1376_v52 = vadd.f32 %v1348_v38, %v3807_v61  ;;  %v818_v16 = vmul.f32 %v3934_v32, %v3305_v60 }
 0x106   : > { %1567 = vst.msk [vmem:[#allocation2 + $0x90] sm:$0xff] %vm412_vm1, %v1539_v50  ;;  %1233 = vst.msk [vmem:[#allocation2 + $0x30] sm:$0xff] %vm412_vm1, %v1203_v30  ;;  %v1189_v49 = vld [vmem:[#allocation2 + $0xb0] sm:$0xff]  ;;  %v540_v35 = vld [vmem:[#allocation2 + $0xd8] sm:$0xff] }
 0x107   : > { %1086 = vst.msk [vmem:[#allocation2 + $0xb8] sm:$0xff] %vm412_vm1, %v1056_v28  ;;  %v4001_v54 = vld [vmem:[%s3197_s8 + $0x91] sm:$0xff]  ;;  %1729 = vst.msk [vmem:[#allocation2 + $0x80] sm:$0xff] %vm412_vm1, %v1701_v23  ;;  %v1658_v61 = vld [vmem:[#allocation2 + $0x8] sm:$0xff]  ;;  %v1219_v39 = vadd.f32 %v1189_v49, %v1159_v44  ;;  %v572_v55 = vadd.f32 %v540_v35, %v508_v0  ;;  %v656_v44 = vmul.f32 %v3981_v57, %v3271_v34 }
 0x108   : > { %v1659_v47 = vld [vmem:[#allocation2 + $0x10] sm:$0xff]  ;;  %v4712_v62 = vld [vmem:[#allocation24_spill] sm:$0xff]  ;;  %907 = vst.msk [vmem:[#allocation2 + $0x48] sm:$0xff] %vm412_vm1, %v877_v25  ;;  %v4713_v40 = vld [vmem:[#allocation19_spill] sm:$0xff]  ;;  %v1306_v35 = vmul.f32 %v3736_v59, %v3329_v14 }
 0x109   : > { %v1524_v63 = vadd.f32 %v1496_v33, %v4712_v62  ;;  %v1011_v56 = vld [vmem:[#allocation2 + $0x40] sm:$0xff]  ;;  %v1686_v41 = vadd.f32 %v1658_v61, %v4713_v40  ;;  %v4714_v18 = vld [vmem:[#allocation21_spill] sm:$0xff]  ;;  %1404 = vst.msk [vmem:[#allocation2 + $0xa0] sm:$0xff] %vm412_vm1, %v1376_v52  ;;  %v703_v4 = vld [vmem:[#allocation2 + $0xd0] sm:$0xff]  ;;  %v982_v61 = vmul.f32 %v3894_v9, %v3319_v3 }
 0x10a   : > { %v1687_v31 = vadd.f32 %v1659_v47, %v4714_v18  ;;  %v1333_v50 = vld [vmem:[#allocation2 + $0x28] sm:$0xff]  ;;  %v1041_v30 = vadd.f32 %v1011_v56, %v981_v45  ;;  %v1512_v58 = vld [vmem:[#allocation2 + $0x98] sm:$0xff]  ;;  %1249 = vst.msk [vmem:[#allocation2 + $0xb0] sm:$0xff] %vm412_vm1, %v1219_v39  ;;  %v735_v25 = vadd.f32 %v703_v4, %v671_v7  ;;  %604 = vst.msk [vmem:[#allocation2 + $0xd8] sm:$0xff] %vm412_vm1, %v572_v55 }
 0x10b   : > { %v863_v28 = vld [vmem:[#allocation2 + $0xc8] sm:$0xff]  ;;  %1552 = vst.msk [vmem:[#allocation2 + $0x18] sm:$0xff] %vm412_vm1, %v1524_v63  ;;  %v1361_v23 = vadd.f32 %v1333_v50, %v3871_v48  ;;  %v408_v45 = vmul.f32 %v3984_v12, %v3223_v6  ;;  %1714 = vst.msk [vmem:[#allocation2 + $0x8] sm:$0xff] %vm412_vm1, %v1686_v41  ;;  %v4715_v52 = vld [vmem:[#allocation26_spill] sm:$0xff]  ;;  %v1160_v7 = vmul.f32 %v3858_v21, %v3326_v13 }
 0x10c   : > { %v4019_v0 = vld [vmem:[%s3197_s8 + $0x142] sm:$0xff]  ;;  %v893_v38 = vadd.f32 %v863_v28, %v833_v29  ;;  %1715 = vst.msk [vmem:[#allocation2 + $0x10] sm:$0xff] %vm412_vm1, %v1687_v31  ;;  %v1540_v48 = vadd.f32 %v1512_v58, %v4715_v52  ;;  %v1174_v29 = vld [vmem:[#allocation2 + $0x38] sm:$0xff]  ;;  %1071 = vst.msk [vmem:[#allocation2 + $0x40] sm:$0xff] %vm412_vm1, %v1041_v30  ;;  %v493_v41 = vmul.f32 %v4001_v54, %v3231_v10 }
 0x10d   : > { %v1674_v33 = vld [vmem:[#allocation2 + $0x88] sm:$0xff]  ;;  %v4716_v47 = vld [vmem:[#allocation20_spill] sm:$0xff]  ;;  %1389 = vst.msk [vmem:[#allocation2 + $0x28] sm:$0xff] %vm412_vm1, %v1361_v23  ;;  %v1204_v39 = vadd.f32 %v1174_v29, %v1144_v43  ;;  %v4037_v55 = vld [vmem:[%s3197_s8 + $0x151] sm:$0xff]  ;;  %v4050_v43 = vmul.f32 %v3772_v15, %v3336_v17  ;;  %v1322_v31 = vmul.f32 %v3795_v19, %v3329_v14 }
 0x10e   : > { %v1349_v49 = vld [vmem:[#allocation2 + $0xa8] sm:$0xff]  ;;  %v1702_v62 = vadd.f32 %v1674_v33, %v4716_v47  ;;  %v1027_v56 = vld [vmem:[#allocation2 + $0xc0] sm:$0xff]  ;;  %v4040_v40 = vld [vmem:[%s3197_s8 + $0x98] sm:$0xff]  ;;  %923 = vst.msk [vmem:[#allocation2 + $0xc8] sm:$0xff] %vm412_vm1, %v893_v38  ;;  %v1145_v38 = vmul.f32 %v3911_v11, %v3326_v13  ;;  %v834_v47 = vmul.f32 %v3984_v12, %v3305_v60 }
 0x10f   : > { %v1377_v63 = vadd.f32 %v1349_v49, %v1321_v26  ;;  %767 = vst.msk [vmem:[#allocation2 + $0xd0] sm:$0xff] %vm412_vm1, %v735_v25  ;;  %v688_v59 = vld [vmem:[#allocation2 + $0x58] sm:$0xff]  ;;  %441 = vst.msk [vmem:[#allocation2 + $0xe0] sm:$0xff] %vm412_vm1, %v408_v45  ;;  %v1762_v18 = vld [vmem:[#allocation2] sm:$0xff]  ;;  %v1057_v50 = vadd.f32 %v1027_v56, %v997_v20  ;;  %v672_v20 = vmul.f32 %v4019_v0, %v3271_v34 }
 0x110   : > { %1568 = vst.msk [vmem:[#allocation2 + $0x98] sm:$0xff] %vm412_vm1, %v1540_v48  ;;  %v1497_v26 = vld [vmem:[#allocation2 + $0x20] sm:$0xff]  ;;  %v848_v30 = vld [vmem:[#allocation2 + $0x50] sm:$0xff]  ;;  %v720_v28 = vadd.f32 %v688_v59, %v656_v44  ;;  %2568 = vmatprep.mubr.msk.f32.mxu0 %vm412_vm1, %v1762_v18  ;;  %1730 = vst.msk [vmem:[#allocation2 + $0x88] sm:$0xff] %vm412_vm1, %v1702_v62  ;;  %v393_v49 = vmul.f32 %v4040_v40, %v3223_v6  ;;  %v4082_v56 = vmul.f32 %v3858_v21, %v3347_v24 }
 0x111   : > { %v1675_v4 = vld [vmem:[#allocation2 + $0x90] sm:$0xff]  ;;  %v1525_v58 = vadd.f32 %v1497_v26, %v3763_v27  ;;  %1405 = vst.msk [vmem:[#allocation2 + $0xa8] sm:$0xff] %vm412_vm1, %v1377_v63  ;;  %1234 = vst.msk [vmem:[#allocation2 + $0x38] sm:$0xff] %vm412_vm1, %v1204_v39  ;;  %v1190_v15 = vld [vmem:[#allocation2 + $0xb8] sm:$0xff]  ;;  %v878_v19 = vadd.f32 %v848_v30, %v818_v16 }
 0x112   : > { %v1334_v23 = vld [vmem:[#allocation2 + $0x30] sm:$0xff]  ;;  %v1778_v44 = vld [vmem:[#allocation2 + $0x80] sm:$0xff]  ;;  %v4717_v25 = vld [vmem:[#allocation23_spill] sm:$0xff]  ;;  %v1220_v52 = vadd.f32 %v1190_v15, %v1160_v7  ;;  %1087 = vst.msk [vmem:[#allocation2 + $0xc0] sm:$0xff] %vm412_vm1, %v1057_v50 }
 0x113   : > { %v1703_v45 = vadd.f32 %v1675_v4, %v4717_v25  ;;  %v1362_v33 = vadd.f32 %v1334_v23, %v1306_v35  ;;  %v1012_v27 = vld [vmem:[#allocation2 + $0x48] sm:$0xff]  ;;  %752 = vst.msk [vmem:[#allocation2 + $0x58] sm:$0xff] %vm412_vm1, %v720_v28  ;;  %v525_v48 = vld [vmem:[#allocation2 + $0x60] sm:$0xff]  ;;  %2592 = vmatprep.mubr.msk.f32.mxu1 %vm412_vm1, %v1778_v44  ;;  %1553 = vst.msk [vmem:[#allocation2 + $0x20] sm:$0xff] %vm412_vm1, %v1525_v58  ;;  %v998_v35 = vmul.f32 %v3931_v53, %v3319_v3 }
 0x114   : > { %v1513_v16 = vld [vmem:[#allocation2 + $0xa0] sm:$0xff]  ;;  %v1042_v29 = vadd.f32 %v1012_v27, %v982_v61  ;;  %v4073_v7 = vld [vmem:[%s3197_s8 + $0x158] sm:$0xff]  ;;  %908 = vst.msk [vmem:[#allocation2 + $0x50] sm:$0xff] %vm412_vm1, %v878_v19  ;;  %v557_v62 = vadd.f32 %v525_v48, %v493_v41  ;;  %v4087_v61 = vmul.f32 %v3813_v8, %v3336_v17  ;;  %v1350_v59 = vld [vmem:[#allocation2 + $0xb0] sm:$0xff]  ;;  %v1307_v8 = vmul.f32 %v3838_v42, %v3329_v14 }
 0x115   : > { %1731 = vst.msk [vmem:[#allocation2 + $0x90] sm:$0xff] %vm412_vm1, %v1703_v45  ;;  %v1660_v63 = vld [vmem:[#allocation2 + $0x18] sm:$0xff]  ;;  %v1541_v39 = vadd.f32 %v1513_v16, %v3834_v46  ;;  %1390 = vst.msk [vmem:[#allocation2 + $0x30] sm:$0xff] %vm412_vm1, %v1362_v33  ;;  %v509_v46 = vmul.f32 %v4037_v55, %v3231_v10  ;;  %v1763_v21 = vld [vmem:[#allocation2 + $0x8] sm:$0xff]  ;;  %v1378_v4 = vadd.f32 %v1350_v59, %v1322_v31 }
 0x116   : > { %1250 = vst.msk [vmem:[#allocation2 + $0xb8] sm:$0xff] %vm412_vm1, %v1220_v52  ;;  %v4091_v18 = vld [vmem:[%s3197_s8 + $0x92] sm:$0xff]  ;;  %426 = vst.msk [vmem:[#allocation2 + $0x68] sm:$0xff] %vm412_vm1, %v393_v49  ;;  %v4718_v30 = vld [vmem:[#allocation25_spill] sm:$0xff]  ;;  %2569 = vmatmul.mubr.msk.f32.vlgmr.msra.gmra.mrb[0].mxu0 %vm412_vm1, %v1763_v21  ;;  %v1161_v44 = vmul.f32 %v3954_v1, %v3326_v13  ;;  %v819_v42 = vmul.f32 %v4040_v40, %v3305_v60  ;;  %v983_v52 = vmul.f32 %v4001_v54, %v3319_v3 }
 0x117   : > { %v4094_v41 = vld [vmem:[%s3197_s8 + $0x99] sm:$0xff]  ;;  %v1764_v50 = vld [vmem:[#allocation2 + $0x10] sm:$0xff]  ;;  %v1688_v28 = vadd.f32 %v1660_v63, %v4718_v30  ;;  %1072 = vst.msk [vmem:[#allocation2 + $0x48] sm:$0xff] %vm412_vm1, %v1042_v29  ;;  %589 = vst.msk [vmem:[#allocation2 + $0x60] sm:$0xff] %vm412_vm1, %v557_v62 }
 0x118   : > { %v704_v26 = vld [vmem:[#allocation2 + $0xd8] sm:$0xff]  ;;  %v1175_v58 = vld [vmem:[#allocation2 + $0x40] sm:$0xff]  ;;  %1569 = vst.msk [vmem:[#allocation2 + $0xa0] sm:$0xff] %vm412_vm1, %v1541_v39  ;;  %v1498_v15 = vld [vmem:[#allocation2 + $0x28] sm:$0xff]  ;;  %2571 = vmatprep.mubr.msk.f32.mxu0 %vm412_vm1, %v1764_v50  ;;  %v494_v30 = vmul.f32 %v4094_v41, %v3231_v10 }
 0x119   : > { %v736_v23 = vadd.f32 %v704_v26, %v672_v20  ;;  %v1205_v19 = vadd.f32 %v1175_v58, %v1145_v38  ;;  %v1028_v31 = vld [vmem:[#allocation2 + $0xc8] sm:$0xff]  ;;  %v864_v25 = vld [vmem:[#allocation2 + $0xd0] sm:$0xff]  ;;  %v409_v20 = vmul.f32 %v4073_v7, %v3223_v6  ;;  %1716 = vst.msk [vmem:[#allocation2 + $0x18] sm:$0xff] %vm412_vm1, %v1688_v28  ;;  %v1676_v45 = vld [vmem:[#allocation2 + $0x98] sm:$0xff]  ;;  %v1526_v33 = vadd.f32 %v1498_v15, %v3905_v37 }
 0x11a   : > { %1406 = vst.msk [vmem:[#allocation2 + $0xb0] sm:$0xff] %vm412_vm1, %v1378_v4  ;;  %v1058_v38 = vadd.f32 %v1028_v31, %v998_v35  ;;  %v4119_v27 = vld [vmem:[%s3197_s8 + $0xa8] sm:$0xff]  ;;  %v894_v48 = vadd.f32 %v864_v25, %v834_v47  ;;  %v541_v49 = vld [vmem:[#allocation2 + $0xe0] sm:$0xff]  ;;  %v4719_v29 = vld [vmem:[#allocation27_spill] sm:$0xff]  ;;  %v1323_v37 = vmul.f32 %v3884_v22, %v3329_v14  ;;  %v1146_v35 = vmul.f32 %v3981_v57, %v3326_v13 }
 0x11b   : > { %768 = vst.msk [vmem:[#allocation2 + $0xd8] sm:$0xff] %vm412_vm1, %v736_v23  ;;  %v1779_v16 = vld [vmem:[#allocation2 + $0x88] sm:$0xff]  ;;  %v1704_v62 = vadd.f32 %v1676_v45, %v4719_v29  ;;  %v1335_v39 = vld [vmem:[#allocation2 + $0x38] sm:$0xff]  ;;  %1235 = vst.msk [vmem:[#allocation2 + $0x40] sm:$0xff] %vm412_vm1, %v1205_v19  ;;  %v573_v59 = vadd.f32 %v541_v49, %v509_v46  ;;  %v657_v46 = vmul.f32 %v4091_v18, %v3271_v34 }
 0x11c   : > { %v1514_v63 = vld [vmem:[#allocation2 + $0xa8] sm:$0xff]  ;;  %442 = vst.msk [vmem:[#allocation2 + $0xe8] sm:$0xff] %vm412_vm1, %v409_v20  ;;  %2593 = vmatmul.mubr.msk.f32.vlgmr.msra.gmra.mrb[0].mxu1 %vm412_vm1, %v1779_v16  ;;  %1554 = vst.msk [vmem:[#allocation2 + $0x28] sm:$0xff] %vm412_vm1, %v1526_v33  ;;  %v1363_v26 = vadd.f32 %v1335_v39, %v1307_v8  ;;  %v1191_v21 = vld [vmem:[#allocation2 + $0xc0] sm:$0xff]  ;;  %v1308_v4 = vmul.f32 %v3934_v32, %v3329_v14  ;;  %v835_v32 = vmul.f32 %v4073_v7, %v3305_v60 }
 0x11d   : > { %v1542_v47 = vadd.f32 %v1514_v63, %v4050_v43  ;;  %1088 = vst.msk [vmem:[#allocation2 + $0xc8] sm:$0xff] %vm412_vm1, %v1058_v38  ;;  %v4134_v22 = vld [vmem:[%s3197_s8 + $0x159] sm:$0xff]  ;;  %924 = vst.msk [vmem:[#allocation2 + $0xd0] sm:$0xff] %vm412_vm1, %v894_v48  ;;  %v1487_v43 = vmul.f32 %v3861_v36, %v3336_v17  ;;  %v1221_v8 = vadd.f32 %v1191_v21, %v1161_v44  ;;  %v1013_v23 = vld [vmem:[#allocation2 + $0x50] sm:$0xff] }
 0x11e   : > { %v849_v50 = vld [vmem:[#allocation2 + $0x58] sm:$0xff]  ;;  %1732 = vst.msk [vmem:[#allocation2 + $0x98] sm:$0xff] %vm412_vm1, %v1704_v62  ;;  %v1661_v28 = vld [vmem:[#allocation2 + $0x20] sm:$0xff]  ;;  %605 = vst.msk [vmem:[#allocation2 + $0xe0] sm:$0xff] %vm412_vm1, %v573_v59  ;;  %v1043_v36 = vadd.f32 %v1013_v23, %v983_v52  ;;  %v394_v44 = vmul.f32 %v4119_v27, %v3223_v6  ;;  %v1162_v33 = vmul.f32 %v4019_v0, %v3326_v13 }
 0x11f   : > { %v4147_v58 = vld [vmem:[%s3197_s8 + $0x152] sm:$0xff]  ;;  %v879_v15 = vadd.f32 %v849_v50, %v819_v42  ;;  %v1689_v31 = vadd.f32 %v1661_v28, %v3767_v5  ;;  %1570 = vst.msk [vmem:[#allocation2 + $0xa8] sm:$0xff] %vm412_vm1, %v1542_v47  ;;  %1391 = vst.msk [vmem:[#allocation2 + $0x38] sm:$0xff] %vm412_vm1, %v1363_v26  ;;  %v1176_v45 = vld [vmem:[#allocation2 + $0x48] sm:$0xff]  ;;  %v510_v48 = vmul.f32 %v4134_v22, %v3231_v10 }
 0x120   : > { %v1780_v19 = vld [vmem:[#allocation2 + $0x90] sm:$0xff]  ;;  %v1351_v20 = vld [vmem:[#allocation2 + $0xb8] sm:$0xff]  ;;  %1251 = vst.msk [vmem:[#allocation2 + $0xc0] sm:$0xff] %vm412_vm1, %v1221_v8  ;;  %v689_v38 = vld [vmem:[#allocation2 + $0x60] sm:$0xff]  ;;  %v1206_v16 = vadd.f32 %v1176_v45, %v1146_v35  ;;  %v999_v29 = vmul.f32 %v4037_v55, %v3319_v3  ;;  %v4180_v35 = vmul.f32 %v3911_v11, %v3347_v24  ;;  %v1472_v26 = vmul.f32 %v3894_v9, %v3336_v17 }
 0x121   : > { %v1499_v25 = vld [vmem:[#allocation2 + $0x30] sm:$0xff]  ;;  %2595 = vmatprep.mubr.msk.f32.mxu1 %vm412_vm1, %v1780_v19  ;;  %v1379_v5 = vadd.f32 %v1351_v20, %v1323_v37  ;;  %909 = vst.msk [vmem:[#allocation2 + $0x58] sm:$0xff] %vm412_vm1, %v879_v15  ;;  %v526_v52 = vld [vmem:[#allocation2 + $0x68] sm:$0xff]  ;;  %1717 = vst.msk [vmem:[#allocation2 + $0x20] sm:$0xff] %vm412_vm1, %v1689_v31  ;;  %v721_v63 = vadd.f32 %v689_v38, %v657_v46  ;;  %v673_v50 = vmul.f32 %v4147_v58, %v3271_v34 }
 0x122   : > { %v1527_v42 = vadd.f32 %v1499_v25, %v4087_v61  ;;  %v1677_v49 = vld [vmem:[#allocation2 + $0xa0] sm:$0xff]  ;;  %1073 = vst.msk [vmem:[#allocation2 + $0x50] sm:$0xff] %vm412_vm1, %v1043_v36  ;;  %v4168_v61 = vld [vmem:[%s3197_s8 + $0xa9] sm:$0xff]  ;;  %v558_v39 = vadd.f32 %v526_v52, %v494_v30  ;;  %427 = vst.msk [vmem:[#allocation2 + $0x70] sm:$0xff] %vm412_vm1, %v394_v44  ;;  %v1324_v30 = vmul.f32 %v3984_v12, %v3329_v14 }
 0x123   : > { %v4173_v62 = vld [vmem:[%s3197_s8 + $0x168] sm:$0xff]  ;;  %v1765_v37 = vld [vmem:[#allocation2 + $0x18] sm:$0xff]  ;;  %v1705_v59 = vadd.f32 %v1677_v49, %v3847_v51  ;;  %v1515_v47 = vld [vmem:[#allocation2 + $0xb0] sm:$0xff]  ;;  %1407 = vst.msk [vmem:[#allocation2 + $0xb8] sm:$0xff] %vm412_vm1, %v1379_v5  ;;  %v1147_v9 = vmul.f32 %v4091_v18, %v3326_v13  ;;  %v984_v19 = vmul.f32 %v4094_v41, %v3319_v3  ;;  %v495_v5 = vmul.f32 %v4168_v61, %v3231_v10 }
 0x124   : > { %1555 = vst.msk [vmem:[#allocation2 + $0x30] sm:$0xff] %vm412_vm1, %v1527_v42  ;;  %v865_v21 = vld [vmem:[#allocation2 + $0xd8] sm:$0xff]  ;;  %2572 = vmatmul.mubr.msk.f32.gmra.mrb[2].mxu0 %vm412_vm1, %v1765_v37  ;;  %v1543_v46 = vadd.f32 %v1515_v47, %v1487_v43  ;;  %v1336_v51 = vld [vmem:[#allocation2 + $0x40] sm:$0xff]  ;;  %1236 = vst.msk [vmem:[#allocation2 + $0x48] sm:$0xff] %vm412_vm1, %v1206_v16  ;;  %v410_v25 = vmul.f32 %v4173_v62, %v3223_v6  ;;  %v4214_v38 = vmul.f32 %v3954_v1, %v3347_v24 }
 0x125   : > { %v4192_v11 = vld [vmem:[%s3197_s8 + $0x9a] sm:$0xff]  ;;  %v895_v28 = vadd.f32 %v865_v21, %v835_v32  ;;  %753 = vst.msk [vmem:[#allocation2 + $0x60] sm:$0xff] %vm412_vm1, %v721_v63  ;;  %590 = vst.msk [vmem:[#allocation2 + $0x68] sm:$0xff] %vm412_vm1, %v558_v39  ;;  %v542_v8 = vld [vmem:[#allocation2 + $0xe8] sm:$0xff]  ;;  %v1364_v23 = vadd.f32 %v1336_v51, %v1308_v4  ;;  %v1309_v52 = vmul.f32 %v4040_v40, %v3329_v14 }
 0x126   : > { %1733 = vst.msk [vmem:[#allocation2 + $0xa0] sm:$0xff] %vm412_vm1, %v1705_v59  ;;  %v1662_v43 = vld [vmem:[#allocation2 + $0x28] sm:$0xff]  ;;  %v1029_v12 = vld [vmem:[#allocation2 + $0xd0] sm:$0xff]  ;;  %v574_v31 = vadd.f32 %v542_v8, %v510_v48  ;;  %v1781_v20 = vld [vmem:[#allocation2 + $0x98] sm:$0xff]  ;;  %v820_v63 = vmul.f32 %v4119_v27, %v3305_v60  ;;  %v658_v39 = vmul.f32 %v4192_v11, %v3271_v34 }
 0x127   : > { %v1192_v15 = vld [vmem:[#allocation2 + $0xc8] sm:$0xff]  ;;  %v1690_v36 = vadd.f32 %v1662_v43, %v3944_v2  ;;  %1571 = vst.msk [vmem:[#allocation2 + $0xb0] sm:$0xff] %vm412_vm1, %v1543_v46  ;;  %v1059_v44 = vadd.f32 %v1029_v12, %v999_v29  ;;  %v4206_v42 = vld [vmem:[%s3197_s8 + $0xb0] sm:$0xff]  ;;  %925 = vst.msk [vmem:[#allocation2 + $0xd8] sm:$0xff] %vm412_vm1, %v895_v28  ;;  %2596 = vmatmul.mubr.msk.f32.gmra.mrb[2].mxu1 %vm412_vm1, %v1781_v20  ;;  %v1000_v28 = vmul.f32 %v4134_v22, %v3319_v3 }
 0x128   : > { %v1222_v32 = vadd.f32 %v1192_v15, %v1162_v33  ;;  %v705_v4 = vld [vmem:[#allocation2 + $0xe0] sm:$0xff]  ;;  %v1678_v45 = vld [vmem:[#allocation2 + $0xa8] sm:$0xff]  ;;  %v1500_v2 = vld [vmem:[#allocation2 + $0x38] sm:$0xff]  ;;  %v1488_v33 = vmul.f32 %v3931_v53, %v3336_v17  ;;  %1392 = vst.msk [vmem:[#allocation2 + $0x40] sm:$0xff] %vm412_vm1, %v1364_v23 }
 0x129   : > { %v4222_v48 = vld [vmem:[%s3197_s8 + $0x15a] sm:$0xff]  ;;  %v737_v49 = vadd.f32 %v705_v4, %v673_v50  ;;  %606 = vst.msk [vmem:[#allocation2 + $0xe8] sm:$0xff] %vm412_vm1, %v574_v31  ;;  %443 = vst.msk [vmem:[#allocation2 + $0xf0] sm:$0xff] %vm412_vm1, %v410_v25  ;;  %v1706_v1 = vadd.f32 %v1678_v45, %v4082_v56  ;;  %v1528_v16 = vadd.f32 %v1500_v2, %v1472_v26  ;;  %v4231_v53 = vld [vmem:[%s3197_s8 + $0x169] sm:$0xff] }
 0x12a   : > { %1718 = vst.msk [vmem:[#allocation2 + $0x28] sm:$0xff] %vm412_vm1, %v1690_v36  ;;  %v1352_v29 = vld [vmem:[#allocation2 + $0xc0] sm:$0xff]  ;;  %1252 = vst.msk [vmem:[#allocation2 + $0xc8] sm:$0xff] %vm412_vm1, %v1222_v32  ;;  %v1014_v40 = vld [vmem:[#allocation2 + $0x58] sm:$0xff]  ;;  %v1473_v56 = vmul.f32 %v4001_v54, %v3336_v17  ;;  %v395_v50 = vmul.f32 %v4206_v42, %v3223_v6  ;;  %v1325_v54 = vmul.f32 %v4073_v7, %v3329_v14 }
 0x12b   : > { %1089 = vst.msk [vmem:[#allocation2 + $0xd0] sm:$0xff] %vm412_vm1, %v1059_v44  ;;  %v1766_v37 = vld [vmem:[#allocation2 + $0x20] sm:$0xff]  ;;  %v1380_v59 = vadd.f32 %v1352_v29, %v1324_v30  ;;  %v1177_v47 = vld [vmem:[#allocation2 + $0x50] sm:$0xff]  ;;  %v1044_v26 = vadd.f32 %v1014_v40, %v984_v19  ;;  %769 = vst.msk [vmem:[#allocation2 + $0xe0] sm:$0xff] %vm412_vm1, %v737_v49  ;;  %v674_v7 = vmul.f32 %v4222_v48, %v3271_v34 }
 0x12c   : > { %v527_v21 = vld [vmem:[#allocation2 + $0x70] sm:$0xff]  ;;  %2574 = vmatprep.mubr.msk.f32.mxu0 %vm412_vm1, %v1766_v37  ;;  %1734 = vst.msk [vmem:[#allocation2 + $0xa8] sm:$0xff] %vm412_vm1, %v1706_v1  ;;  %1556 = vst.msk [vmem:[#allocation2 + $0x38] sm:$0xff] %vm412_vm1, %v1528_v16  ;;  %v1516_v51 = vld [vmem:[#allocation2 + $0xb8] sm:$0xff]  ;;  %v1207_v30 = vadd.f32 %v1177_v47, %v1147_v9  ;;  %v511_v9 = vmul.f32 %v4231_v53, %v3231_v10  ;;  %v1489_v16 = vmul.f32 %v4037_v55, %v3336_v17 }
 0x12d   : > { %v1663_v46 = vld [vmem:[#allocation2 + $0x30] sm:$0xff]  ;;  %v559_v43 = vadd.f32 %v527_v21, %v495_v5  ;;  %v1544_v15 = vadd.f32 %v1516_v51, %v1488_v33  ;;  %1408 = vst.msk [vmem:[#allocation2 + $0xc0] sm:$0xff] %vm412_vm1, %v1380_v59  ;;  %v1337_v12 = vld [vmem:[#allocation2 + $0x48] sm:$0xff]  ;;  %1074 = vst.msk [vmem:[#allocation2 + $0x58] sm:$0xff] %vm412_vm1, %v1044_v26  ;;  %v1636_v5 = vmul.f32 %v3981_v57, %v3347_v24 }
 0x12e   : > { %v4250_v8 = vld [vmem:[%s3197_s8 + $0x170] sm:$0xff]  ;;  %v1691_v23 = vadd.f32 %v1663_v46, %v4180_v35  ;;  %v850_v19 = vld [vmem:[#allocation2 + $0x60] sm:$0xff]  ;;  %v690_v31 = vld [vmem:[#allocation2 + $0x68] sm:$0xff]  ;;  %428 = vst.msk [vmem:[#allocation2 + $0x78] sm:$0xff] %vm412_vm1, %v395_v50  ;;  %v1365_v20 = vadd.f32 %v1337_v12, %v1309_v52  ;;  %v1163_v35 = vmul.f32 %v4147_v58, %v3326_v13  ;;  %v836_v33 = vmul.f32 %v4173_v62, %v3305_v60 }
 0x12f   : > { %v1782_v25 = vld [vmem:[#allocation2 + $0xa0] sm:$0xff]  ;;  %1237 = vst.msk [vmem:[#allocation2 + $0x50] sm:$0xff] %vm412_vm1, %v1207_v30  ;;  %v4264_v36 = vld [vmem:[%s3197_s8 + $0xb1] sm:$0xff]  ;;  %v880_v32 = vadd.f32 %v850_v19, %v820_v63  ;;  %v722_v44 = vadd.f32 %v690_v31, %v658_v39  ;;  %591 = vst.msk [vmem:[#allocation2 + $0x70] sm:$0xff] %vm412_vm1, %v559_v43  ;;  %v411_v52 = vmul.f32 %v4250_v8, %v3223_v6 }
 0x130   : > { %2598 = vmatprep.mubr.msk.f32.mxu1 %vm412_vm1, %v1782_v25  ;;  %1719 = vst.msk [vmem:[#allocation2 + $0x30] sm:$0xff] %vm412_vm1, %v1691_v23  ;;  %v1679_v4 = vld [vmem:[#allocation2 + $0xb0] sm:$0xff]  ;;  %1572 = vst.msk [vmem:[#allocation2 + $0xb8] sm:$0xff] %vm412_vm1, %v1544_v15  ;;  %v1030_v2 = vld [vmem:[#allocation2 + $0xd8] sm:$0xff]  ;;  %v1148_v57 = vmul.f32 %v4192_v11, %v3326_v13  ;;  %v496_v55 = vmul.f32 %v4264_v36, %v3231_v10  ;;  %v1310_v21 = vmul.f32 %v4119_v27, %v3329_v14 }
 0x131   : > { %v4273_v45 = vld [vmem:[%s3197_s8 + $0xaa] sm:$0xff]  ;;  %v1707_v49 = vadd.f32 %v1679_v4, %v4214_v38  ;;  %v1501_v1 = vld [vmem:[#allocation2 + $0x40] sm:$0xff]  ;;  %1393 = vst.msk [vmem:[#allocation2 + $0x48] sm:$0xff] %vm412_vm1, %v1365_v20  ;;  %v1060_v29 = vadd.f32 %v1030_v2, %v1000_v28  ;;  %910 = vst.msk [vmem:[#allocation2 + $0x60] sm:$0xff] %vm412_vm1, %v880_v32  ;;  %v1652_v43 = vmul.f32 %v4019_v0, %v3347_v24 }
 0x132   : > { %754 = vst.msk [vmem:[#allocation2 + $0x68] sm:$0xff] %vm412_vm1, %v722_v44  ;;  %v706_v40 = vld [vmem:[#allocation2 + $0xe8] sm:$0xff]  ;;  %v543_v63 = vld [vmem:[#allocation2 + $0xf0] sm:$0xff]  ;;  %v1529_v39 = vadd.f32 %v1501_v1, %v1473_v56  ;;  %444 = vst.msk [vmem:[#allocation2 + $0xf8] sm:$0xff] %vm412_vm1, %v411_v52  ;;  %v659_v51 = vmul.f32 %v4273_v45, %v3271_v34  ;;  %v1474_v12 = vmul.f32 %v4094_v41, %v3336_v17 }
 0x133   : > { %v1767_v6 = vld [vmem:[#allocation2 + $0x28] sm:$0xff]  ;;  %v1193_v37 = vld [vmem:[#allocation2 + $0xd0] sm:$0xff]  ;;  %v738_v59 = vadd.f32 %v706_v40, %v674_v7  ;;  %v575_v47 = vadd.f32 %v543_v63, %v511_v9  ;;  %1735 = vst.msk [vmem:[#allocation2 + $0xb0] sm:$0xff] %vm412_vm1, %v1707_v49  ;;  %1090 = vst.msk [vmem:[#allocation2 + $0xd8] sm:$0xff] %vm412_vm1, %v1060_v29  ;;  %v985_v19 = vmul.f32 %v4168_v61, %v3319_v3 }
 0x134   : > { %v1353_v38 = vld [vmem:[#allocation2 + $0xc8] sm:$0xff]  ;;  %2575 = vmatmul.mubr.msk.f32.gmra.mrb[4].mxu0 %vm412_vm1, %v1767_v6  ;;  %v1223_v50 = vadd.f32 %v1193_v37, %v1163_v35  ;;  %v4296_v56 = vld [vmem:[%s3197_s8 + $0x171] sm:$0xff]  ;;  %v866_v46 = vld [vmem:[#allocation2 + $0xe0] sm:$0xff]  ;;  %1557 = vst.msk [vmem:[#allocation2 + $0x40] sm:$0xff] %vm412_vm1, %v1529_v39  ;;  %v821_v31 = vmul.f32 %v4206_v42, %v3305_v60  ;;  %v1326_v63 = vmul.f32 %v4173_v62, %v3329_v14 }
 0x135   : > { %v1381_v26 = vadd.f32 %v1353_v38, %v1325_v54  ;;  %v1783_v30 = vld [vmem:[#allocation2 + $0xa8] sm:$0xff]  ;;  %v1664_v28 = vld [vmem:[#allocation2 + $0x38] sm:$0xff]  ;;  %v896_v23 = vadd.f32 %v866_v46, %v836_v33  ;;  %770 = vst.msk [vmem:[#allocation2 + $0xe8] sm:$0xff] %vm412_vm1, %v738_v59  ;;  %607 = vst.msk [vmem:[#allocation2 + $0xf0] sm:$0xff] %vm412_vm1, %v575_v47  ;;  %v512_v41 = vmul.f32 %v4296_v56, %v3231_v10 }
 0x136   : > { %v4304_v54 = vld [vmem:[%s3197_s8 + $0x16a] sm:$0xff]  ;;  %2599 = vmatmul.mubr.msk.f32.gmra.mrb[4].mxu1 %vm412_vm1, %v1783_v30  ;;  %v1692_v27 = vadd.f32 %v1664_v28, %v1636_v5  ;;  %v1517_v15 = vld [vmem:[#allocation2 + $0xc0] sm:$0xff]  ;;  %1253 = vst.msk [vmem:[#allocation2 + $0xd0] sm:$0xff] %vm412_vm1, %v1223_v50  ;;  %v1178_v0 = vld [vmem:[#allocation2 + $0x58] sm:$0xff]  ;;  %v1637_v5 = vmul.f32 %v4091_v18, %v3347_v24  ;;  %v1164_v33 = vmul.f32 %v4222_v48, %v3326_v13 }
 0x137   : > { %1409 = vst.msk [vmem:[#allocation2 + $0xc8] sm:$0xff] %vm412_vm1, %v1381_v26  ;;  %v528_v7 = vld [vmem:[#allocation2 + $0x78] sm:$0xff]  ;;  %v1545_v9 = vadd.f32 %v1517_v15, %v1489_v16  ;;  %v1338_v25 = vld [vmem:[#allocation2 + $0x50] sm:$0xff]  ;;  %v1208_v20 = vadd.f32 %v1178_v0, %v1148_v57  ;;  %926 = vst.msk [vmem:[#allocation2 + $0xe0] sm:$0xff] %vm412_vm1, %v896_v23  ;;  %v1490_v10 = vmul.f32 %v4134_v22, %v3336_v17 }
 0x138   : > { %v691_v35 = vld [vmem:[#allocation2 + $0x70] sm:$0xff]  ;;  %v560_v32 = vadd.f32 %v528_v7, %v496_v55  ;;  %1720 = vst.msk [vmem:[#allocation2 + $0x38] sm:$0xff] %vm412_vm1, %v1692_v27  ;;  %v1680_v4 = vld [vmem:[#allocation2 + $0xb8] sm:$0xff]  ;;  %v1366_v2 = vadd.f32 %v1338_v25, %v1310_v21  ;;  %v1502_v1 = vld [vmem:[#allocation2 + $0x48] sm:$0xff]  ;;  %v837_v57 = vmul.f32 %v4250_v8, %v3305_v60  ;;  %v675_v29 = vmul.f32 %v4304_v54, %v3271_v34 }
 0x139   : > { %v1768_v44 = vld [vmem:[#allocation2 + $0x30] sm:$0xff]  ;;  %v723_v52 = vadd.f32 %v691_v35, %v659_v51  ;;  %v1708_v49 = vadd.f32 %v1680_v4, %v1652_v43  ;;  %1573 = vst.msk [vmem:[#allocation2 + $0xc0] sm:$0xff] %vm412_vm1, %v1545_v9  ;;  %1238 = vst.msk [vmem:[#allocation2 + $0x58] sm:$0xff] %vm412_vm1, %v1208_v20  ;;  %v1015_v16 = vld [vmem:[#allocation2 + $0x60] sm:$0xff]  ;;  %v1530_v40 = vadd.f32 %v1502_v1, %v1474_v12 }
 0x13a   : > { %2577 = vmatprep.mubr.msk.f32.mxu0 %vm412_vm1, %v1768_v44  ;;  %v851_v18 = vld [vmem:[#allocation2 + $0x68] sm:$0xff]  ;;  %592 = vst.msk [vmem:[#allocation2 + $0x78] sm:$0xff] %vm412_vm1, %v560_v32  ;;  %1394 = vst.msk [vmem:[#allocation2 + $0x50] sm:$0xff] %vm412_vm1, %v1366_v2  ;;  %v4339_v22 = vld [vmem:[%s3197_s8 + $0xb2] sm:$0xff]  ;;  %v1045_v6 = vadd.f32 %v1015_v16, %v985_v19  ;;  %v1001_v55 = vmul.f32 %v4231_v53, %v3319_v3  ;;  %v1653_v21 = vmul.f32 %v4147_v58, %v3347_v24 }
 0x13b   : > { %v881_v39 = vadd.f32 %v851_v18, %v821_v31  ;;  %755 = vst.msk [vmem:[#allocation2 + $0x70] sm:$0xff] %vm412_vm1, %v723_v52  ;;  %v544_v38 = vld [vmem:[#allocation2 + $0xf8] sm:$0xff]  ;;  %v1784_v37 = vld [vmem:[#allocation2 + $0xb0] sm:$0xff]  ;;  %1736 = vst.msk [vmem:[#allocation2 + $0xb8] sm:$0xff] %vm412_vm1, %v1708_v49  ;;  %v1311_v50 = vmul.f32 %v4206_v42, %v3329_v14  ;;  %v660_v58 = vmul.f32 %v4339_v22, %v3271_v34 }
 0x13c   : > { %v1194_v59 = vld [vmem:[#allocation2 + $0xd8] sm:$0xff]  ;;  %v4344_v47 = vld [vmem:[%s3197_s8 + $0xc0] sm:$0xff]  ;;  %v576_v26 = vadd.f32 %v544_v38, %v512_v41  ;;  %2601 = vmatprep.mubr.msk.f32.mxu1 %vm412_vm1, %v1784_v37  ;;  %1558 = vst.msk [vmem:[#allocation2 + $0x48] sm:$0xff] %vm412_vm1, %v1530_v40  ;;  %1075 = vst.msk [vmem:[#allocation2 + $0x60] sm:$0xff] %vm412_vm1, %v1045_v6  ;;  %v1475_v12 = vmul.f32 %v4168_v61, %v3336_v17  ;;  %v1638_v35 = vmul.f32 %v4192_v11, %v3347_v24 }
 0x13d   : > { %v1665_v62 = vld [vmem:[#allocation2 + $0x40] sm:$0xff]  ;;  %v1224_v46 = vadd.f32 %v1194_v59, %v1164_v33  ;;  %911 = vst.msk [vmem:[#allocation2 + $0x68] sm:$0xff] %vm412_vm1, %v881_v39  ;;  %v867_v51 = vld [vmem:[#allocation2 + $0xe8] sm:$0xff]  ;;  %v707_v30 = vld [vmem:[#allocation2 + $0xf0] sm:$0xff]  ;;  %v822_v7 = vmul.f32 %v4344_v47, %v3305_v60  ;;  %v1149_v41 = vmul.f32 %v4273_v45, %v3326_v13  ;;  %v986_v44 = vmul.f32 %v4264_v36, %v3319_v3 }
 0x13e   : > { %v1693_v28 = vadd.f32 %v1665_v62, %v1637_v5  ;;  %v1518_v43 = vld [vmem:[#allocation2 + $0xc8] sm:$0xff]  ;;  %v1354_v23 = vld [vmem:[#allocation2 + $0xd0] sm:$0xff]  ;;  %v897_v27 = vadd.f32 %v867_v51, %v837_v57  ;;  %v739_v15 = vadd.f32 %v707_v30, %v675_v29  ;;  %608 = vst.msk [vmem:[#allocation2 + $0xf8] sm:$0xff] %vm412_vm1, %v576_v26  ;;  %v1031_v31 = vld [vmem:[#allocation2 + $0xe0] sm:$0xff]  ;;  %v1327_v16 = vmul.f32 %v4250_v8, %v3329_v14 }
 0x13f   : > { %v1546_v42 = vadd.f32 %v1518_v43, %v1490_v10  ;;  %v1382_v0 = vadd.f32 %v1354_v23, %v1326_v63  ;;  %1254 = vst.msk [vmem:[#allocation2 + $0xd8] sm:$0xff] %vm412_vm1, %v1224_v46  ;;  %v4363_v19 = vld [vmem:[%s3197_s8 + $0x172] sm:$0xff]  ;;  %v1061_v25 = vadd.f32 %v1031_v31, %v1001_v55  ;;  %v1654_v29 = vmul.f32 %v4222_v48, %v3347_v24  ;;  %v4401_v37 = vld [vmem:[%s3197_s8 + $0xc8] sm:$0xff] }
 0x140   : > { %v1769_v9 = vld [vmem:[#allocation2 + $0x38] sm:$0xff]  ;;  %1721 = vst.msk [vmem:[#allocation2 + $0x40] sm:$0xff] %vm412_vm1, %v1693_v28  ;;  %v4369_v20 = vld [vmem:[%s3205_s29] sm:$0xff]  ;;  %927 = vst.msk [vmem:[#allocation2 + $0xe8] sm:$0xff] %vm412_vm1, %v897_v27  ;;  %v676_v11 = vmul.f32 %v4363_v19, %v3271_v34  ;;  %v1002_v63 = vmul.f32 %v4296_v56, %v3319_v3  ;;  %v1491_v39 = vmul.f32 %v4231_v53, %v3336_v17 }
 0x141   : > { %771 = vst.msk [vmem:[#allocation2 + $0xf0] sm:$0xff] %vm412_vm1, %v739_v15  ;;  %2578 = vmatmul.mubr.msk.f32.gmra.mrb[6].mxu0 %vm412_vm1, %v1769_v9  ;;  %v1681_v61 = vld [vmem:[#allocation2 + $0xc0] sm:$0xff]  ;;  %1574 = vst.msk [vmem:[#allocation2 + $0xc8] sm:$0xff] %vm412_vm1, %v1546_v42  ;;  %v1339_v32 = vld [vmem:[#allocation2 + $0x58] sm:$0xff]  ;;  %v933_v8 = vmul.f32 %v4369_v20, %v3305_v60  ;;  %v1165_v62 = vmul.f32 %v4304_v54, %v3326_v13  ;;  %v1476_v43 = vmul.f32 %v4264_v36, %v3336_v17 }
 0x142   : > { %1410 = vst.msk [vmem:[#allocation2 + $0xd0] sm:$0xff] %vm412_vm1, %v1382_v0  ;;  %v692_v4 = vld [vmem:[#allocation2 + $0x78] sm:$0xff]  ;;  %v1709_v5 = vadd.f32 %v1681_v61, %v1653_v21  ;;  %v1503_v2 = vld [vmem:[#allocation2 + $0x50] sm:$0xff]  ;;  %v1367_v33 = vadd.f32 %v1339_v32, %v1311_v50  ;;  %1091 = vst.msk [vmem:[#allocation2 + $0xe0] sm:$0xff] %vm412_vm1, %v1061_v25  ;;  %v823_v15 = vmul.f32 %v4401_v37, %v3305_v60 }
 0x143   : > { %v852_v52 = vld [vmem:[#allocation2 + $0x70] sm:$0xff]  ;;  %v724_v49 = vadd.f32 %v692_v4, %v660_v58  ;;  %v1785_v1 = vld [vmem:[#allocation2 + $0xb8] sm:$0xff]  ;;  %v1531_v10 = vadd.f32 %v1503_v2, %v1475_v12  ;;  %v1666_v57 = vld [vmem:[#allocation2 + $0x48] sm:$0xff]  ;;  %v1639_v42 = vmul.f32 %v4273_v45, %v3347_v24  ;;  %v1312_v61 = vmul.f32 %v4344_v47, %v3329_v14 }
 0x144   : > { %v882_v18 = vadd.f32 %v852_v52, %v822_v7  ;;  %2602 = vmatmul.mubr.msk.f32.gmra.mrb[6].mxu1 %vm412_vm1, %v1785_v1  ;;  %1737 = vst.msk [vmem:[#allocation2 + $0xc0] sm:$0xff] %vm412_vm1, %v1709_v5  ;;  %1395 = vst.msk [vmem:[#allocation2 + $0x58] sm:$0xff] %vm412_vm1, %v1367_v33  ;;  %v1179_v40 = vld [vmem:[#allocation2 + $0x60] sm:$0xff]  ;;  %v1016_v34 = vld [vmem:[#allocation2 + $0x68] sm:$0xff]  ;;  %v1694_v6 = vadd.f32 %v1666_v57, %v1638_v35  ;;  %v1150_v35 = vmul.f32 %v4339_v22, %v3326_v13 }
 0x145   : > { %756 = vst.msk [vmem:[#allocation2 + $0x78] sm:$0xff] %vm412_vm1, %v724_v49  ;;  %1559 = vst.msk [vmem:[#allocation2 + $0x50] sm:$0xff] %vm412_vm1, %v1531_v10  ;;  %v1209_v48 = vadd.f32 %v1179_v40, %v1149_v41  ;;  %v1046_v38 = vadd.f32 %v1016_v34, %v986_v44  ;;  %v708_v59 = vld [vmem:[#allocation2 + $0xf8] sm:$0xff]  ;;  %v4405_v26 = vld [vmem:[%s3197_s8 + $0xc1] sm:$0xff]  ;;  %v1492_v47 = vmul.f32 %v4296_v56, %v3336_v17 }
 0x146   : > { %912 = vst.msk [vmem:[#allocation2 + $0x70] sm:$0xff] %vm412_vm1, %v882_v18  ;;  %v1355_v55 = vld [vmem:[#allocation2 + $0xd8] sm:$0xff]  ;;  %v740_v21 = vadd.f32 %v708_v59, %v676_v11  ;;  %1722 = vst.msk [vmem:[#allocation2 + $0x48] sm:$0xff] %vm412_vm1, %v1694_v6  ;;  %v987_v36 = vmul.f32 %v4405_v26, %v3319_v3  ;;  %v1166_v10 = vmul.f32 %v4363_v19, %v3326_v13  ;;  %v4454_v57 = vld [vmem:[%s3197_s8 + $0xc9] sm:$0xff] }
 0x147   : > { %v1770_v50 = vld [vmem:[#allocation2 + $0x40] sm:$0xff]  ;;  %v1383_v46 = vadd.f32 %v1355_v55, %v1327_v16  ;;  %1239 = vst.msk [vmem:[#allocation2 + $0x60] sm:$0xff] %vm412_vm1, %v1209_v48  ;;  %1076 = vst.msk [vmem:[#allocation2 + $0x68] sm:$0xff] %vm412_vm1, %v1046_v38  ;;  %v1032_v53 = vld [vmem:[#allocation2 + $0xe8] sm:$0xff]  ;;  %v1640_v59 = vmul.f32 %v4339_v22, %v3347_v24 }
 0x148   : > { %v931_v51 = vld [vmem:[#allocation2 + $0xf0] sm:$0xff]  ;;  %2580 = vmatprep.mubr.msk.f32.mxu0 %vm412_vm1, %v1770_v50  ;;  %v1682_v30 = vld [vmem:[#allocation2 + $0xc8] sm:$0xff]  ;;  %v1062_v23 = vadd.f32 %v1032_v53, %v1002_v63  ;;  %772 = vst.msk [vmem:[#allocation2 + $0xf8] sm:$0xff] %vm412_vm1, %v740_v21  ;;  %v1421_v63 = vmul.f32 %v4369_v20, %v3329_v14  ;;  %v988_v20 = vmul.f32 %v4454_v57, %v3319_v3 }
 0x149   : > { %v1519_v28 = vld [vmem:[#allocation2 + $0xd0] sm:$0xff]  ;;  %v935_v27 = vadd.f32 %v933_v8, %v931_v51  ;;  %v1710_v58 = vadd.f32 %v1682_v30, %v1654_v29  ;;  %1411 = vst.msk [vmem:[#allocation2 + $0xd8] sm:$0xff] %vm412_vm1, %v1383_v46  ;;  %v1195_v0 = vld [vmem:[#allocation2 + $0xe0] sm:$0xff]  ;;  %v4422_v31 = vld [vmem:[%s3205_s29 + $0x8] sm:$0xff]  ;;  %v1477_v30 = vmul.f32 %v4405_v26, %v3336_v17  ;;  %v1656_v26 = vmul.f32 %v4363_v19, %v3347_v24 }
 0x14a   : > { %v1547_v12 = vadd.f32 %v1519_v28, %v1491_v39  ;;  %v1225_v7 = vadd.f32 %v1195_v0, %v1165_v62  ;;  %v4427_v9 = vld [vmem:[%s3205_s29 + $0x1] sm:$0xff]  ;;  %1092 = vst.msk [vmem:[#allocation2 + $0xe8] sm:$0xff] %vm412_vm1, %v1062_v23  ;;  %v934_v2 = vmul.f32 %v4422_v31, %v3305_v60  ;;  %v1655_v60 = vmul.f32 %v4304_v54, %v3347_v24  ;;  %v4472_v46 = vld [vmem:[%s3205_s29 + $0x9] sm:$0xff] }
 0x14b   : > { %937 = vst.msk [vmem:[#allocation2 + $0xf0] sm:$0xff] %vm412_vm1, %v935_v27  ;;  %v1786_v25 = vld [vmem:[#allocation2 + $0xc0] sm:$0xff]  ;;  %1738 = vst.msk [vmem:[#allocation2 + $0xc8] sm:$0xff] %vm412_vm1, %v1710_v58  ;;  %v1504_v45 = vld [vmem:[#allocation2 + $0x58] sm:$0xff]  ;;  %v1097_v16 = vmul.f32 %v4427_v9, %v3319_v3 }
 0x14c   : > { %1575 = vst.msk [vmem:[#allocation2 + $0xd0] sm:$0xff] %vm412_vm1, %v1547_v12  ;;  %v853_v32 = vld [vmem:[#allocation2 + $0x78] sm:$0xff]  ;;  %2604 = vmatprep.mubr.msk.f32.mxu1 %vm412_vm1, %v1786_v25  ;;  %v1667_v41 = vld [vmem:[#allocation2 + $0x50] sm:$0xff]  ;;  %v1532_v44 = vadd.f32 %v1504_v45, %v1476_v43  ;;  %1255 = vst.msk [vmem:[#allocation2 + $0xe0] sm:$0xff] %vm412_vm1, %v1225_v7  ;;  %v1313_v43 = vmul.f32 %v4401_v37, %v3329_v14  ;;  %v1098_v12 = vmul.f32 %v4472_v46, %v3319_v3 }
 0x14d   : > { %v1017_v4 = vld [vmem:[#allocation2 + $0x70] sm:$0xff]  ;;  %v883_v5 = vadd.f32 %v853_v32, %v823_v15  ;;  %v1695_v33 = vadd.f32 %v1667_v41, %v1639_v42  ;;  %v1771_v49 = vld [vmem:[#allocation2 + $0x48] sm:$0xff]  ;;  %v1422_v7 = vmul.f32 %v4422_v31, %v3329_v14  ;;  %v1585_v32 = vmul.f32 %v4427_v9, %v3336_v17  ;;  %v2424_v41 = vld [vmem:[%s3197_s8 + $0xd8] sm:$0xff] }
 0x14e   : > { %v1047_v52 = vadd.f32 %v1017_v4, %v987_v36  ;;  %1560 = vst.msk [vmem:[#allocation2 + $0x58] sm:$0xff] %vm412_vm1, %v1532_v44  ;;  %v1340_v11 = vld [vmem:[#allocation2 + $0x60] sm:$0xff]  ;;  %v1180_v1 = vld [vmem:[#allocation2 + $0x68] sm:$0xff]  ;;  %2581 = vmatmul.mubr.msk.f32.gmra.mrb[8].mxu0 %vm412_vm1, %v1771_v49 }
 0x14f   : > { %913 = vst.msk [vmem:[#allocation2 + $0x78] sm:$0xff] %vm412_vm1, %v883_v5  ;;  %1723 = vst.msk [vmem:[#allocation2 + $0x50] sm:$0xff] %vm412_vm1, %v1695_v33  ;;  %v1368_v56 = vadd.f32 %v1340_v11, %v1312_v61  ;;  %v1210_v18 = vadd.f32 %v1180_v1, %v1150_v35  ;;  %v932_v29 = vld [vmem:[#allocation2 + $0xf8] sm:$0xff]  ;;  %v4458_v34 = vld [vmem:[%s3197_s8 + $0xc2] sm:$0xff]  ;;  %v1314_v11 = vmul.f32 %v2424_v41, %v3329_v14 }
 0x150   : > { %1077 = vst.msk [vmem:[#allocation2 + $0x70] sm:$0xff] %vm412_vm1, %v1047_v52  ;;  %v1520_v40 = vld [vmem:[#allocation2 + $0xd8] sm:$0xff]  ;;  %v936_v8 = vadd.f32 %v934_v2, %v932_v29  ;;  %v1151_v53 = vmul.f32 %v4458_v34, %v3326_v13  ;;  %v4499_v61 = vld [vmem:[%s3197_s8 + $0xca] sm:$0xff] }
 0x151   : > { %v1548_v6 = vadd.f32 %v1520_v40, %v1492_v47  ;;  %1396 = vst.msk [vmem:[#allocation2 + $0x60] sm:$0xff] %vm412_vm1, %v1368_v56  ;;  %1240 = vst.msk [vmem:[#allocation2 + $0x68] sm:$0xff] %vm412_vm1, %v1210_v18  ;;  %v1196_v54 = vld [vmem:[#allocation2 + $0xe8] sm:$0xff]  ;;  %v1152_v52 = vmul.f32 %v4499_v61, %v3326_v13 }
 0x152   : > { %v1095_v39 = vld [vmem:[#allocation2 + $0xf0] sm:$0xff]  ;;  %v1787_v48 = vld [vmem:[#allocation2 + $0xc8] sm:$0xff]  ;;  %v1226_v55 = vadd.f32 %v1196_v54, %v1166_v10  ;;  %938 = vst.msk [vmem:[#allocation2 + $0xf8] sm:$0xff] %vm412_vm1, %v936_v8 }
 0x153   : > { %v1683_v38 = vld [vmem:[#allocation2 + $0xd0] sm:$0xff]  ;;  %v1099_v62 = vadd.f32 %v1097_v16, %v1095_v39  ;;  %2605 = vmatmul.mubr.msk.f32.gmra.mrb[8].mxu1 %vm412_vm1, %v1787_v48  ;;  %1576 = vst.msk [vmem:[#allocation2 + $0xd8] sm:$0xff] %vm412_vm1, %v1548_v6  ;;  %v1417_v50 = vld [vmem:[#allocation2 + $0xe0] sm:$0xff]  ;;  %v1641_v16 = vmul.f32 %v4458_v34, %v3347_v24  ;;  %v1414_v56 = vld [vmem:[%s3205_s29 + $0x18] sm:$0xff]  ;;  %v1586_v34 = vmul.f32 %v4472_v46, %v3336_v17 }
 0x154   : > { %v1711_v21 = vadd.f32 %v1683_v38, %v1655_v60  ;;  %v1425_v22 = vadd.f32 %v1421_v63, %v1417_v50  ;;  %1256 = vst.msk [vmem:[#allocation2 + $0xe8] sm:$0xff] %vm412_vm1, %v1226_v55  ;;  %v4482_v28 = vld [vmem:[%s3205_s29 + $0x2] sm:$0xff]  ;;  %v1742_v49 = vld [vmem:[%s3205_s29 + $0xa] sm:$0xff]  ;;  %v1478_v60 = vmul.f32 %v4454_v57, %v3336_v17  ;;  %v1423_v57 = vmul.f32 %v1414_v56, %v3329_v14 }
 0x155   : > { %1101 = vst.msk [vmem:[#allocation2 + $0xf0] sm:$0xff] %vm412_vm1, %v1099_v62  ;;  %v1668_v51 = vld [vmem:[#allocation2 + $0x58] sm:$0xff]  ;;  %v1261_v25 = vmul.f32 %v4482_v28, %v3326_v13  ;;  %v1262_v63 = vmul.f32 %v1742_v49, %v3326_v13  ;;  %v2425_v38 = vld [vmem:[%s3197_s8 + $0xe0] sm:$0xff]  ;;  %v1749_v13 = vmul.f32 %v4482_v28, %v3347_v24 }
 0x156   : > { %1739 = vst.msk [vmem:[#allocation2 + $0xd0] sm:$0xff] %vm412_vm1, %v1711_v21  ;;  %v1018_v23 = vld [vmem:[#allocation2 + $0x78] sm:$0xff]  ;;  %v1772_v27 = vld [vmem:[#allocation2 + $0x50] sm:$0xff]  ;;  %v1696_v15 = vadd.f32 %v1668_v51, %v1640_v59  ;;  %1429 = vst.msk [vmem:[#allocation2 + $0xe0] sm:$0xff] %vm412_vm1, %v1425_v22  ;;  %v1315_v22 = vmul.f32 %v2425_v38, %v3329_v14 }
 0x157   : > { %v1181_v58 = vld [vmem:[#allocation2 + $0x70] sm:$0xff]  ;;  %v1048_v42 = vadd.f32 %v1018_v23, %v988_v20  ;;  %2583 = vmatprep.mubr.msk.f32.mxu0 %vm412_vm1, %v1772_v27  ;;  %v2452_v62 = vld [vmem:[%s3197_s8 + $0xd9] sm:$0xff]  ;;  %v1642_v23 = vmul.f32 %v4499_v61, %v3347_v24 }
 0x158   : > { %v1211_v0 = vadd.f32 %v1181_v58, %v1151_v53  ;;  %1724 = vst.msk [vmem:[#allocation2 + $0x58] sm:$0xff] %vm412_vm1, %v1696_v15  ;;  %v1505_v37 = vld [vmem:[#allocation2 + $0x60] sm:$0xff]  ;;  %v1341_v36 = vld [vmem:[#allocation2 + $0x68] sm:$0xff] }
 0x159   : > { %1078 = vst.msk [vmem:[#allocation2 + $0x78] sm:$0xff] %vm412_vm1, %v1048_v42  ;;  %v1533_v3 = vadd.f32 %v1505_v37, %v1477_v30  ;;  %v1369_v45 = vadd.f32 %v1341_v36, %v1313_v43  ;;  %v1096_v19 = vld [vmem:[#allocation2 + $0xf8] sm:$0xff]  ;;  %v1479_v30 = vmul.f32 %v2452_v62, %v3336_v17  ;;  %v1415_v28 = vld [vmem:[%s3205_s29 + $0x20] sm:$0xff]  ;;  %v1750_v36 = vmul.f32 %v1742_v49, %v3347_v24 }
 0x15a   : > { %1241 = vst.msk [vmem:[#allocation2 + $0x70] sm:$0xff] %vm412_vm1, %v1211_v0  ;;  %v1684_v35 = vld [vmem:[#allocation2 + $0xd8] sm:$0xff]  ;;  %v1100_v44 = vadd.f32 %v1098_v12, %v1096_v19  ;;  %v1424_v12 = vmul.f32 %v1415_v28, %v3329_v14 }
 0x15b   : > { %v1712_v31 = vadd.f32 %v1684_v35, %v1656_v26  ;;  %1561 = vst.msk [vmem:[#allocation2 + $0x60] sm:$0xff] %vm412_vm1, %v1533_v3  ;;  %1397 = vst.msk [vmem:[#allocation2 + $0x68] sm:$0xff] %vm412_vm1, %v1369_v45  ;;  %v1418_v4 = vld [vmem:[#allocation2 + $0xe8] sm:$0xff]  ;;  %v2480_v61 = vld [vmem:[%s3197_s8 + $0xda] sm:$0xff] }
 0x15c   : > { %v1259_v5 = vld [vmem:[#allocation2 + $0xf0] sm:$0xff]  ;;  %v1426_v33 = vadd.f32 %v1422_v7, %v1418_v4  ;;  %1102 = vst.msk [vmem:[#allocation2 + $0xf8] sm:$0xff] %vm412_vm1, %v1100_v44  ;;  %v2453_v3 = vld [vmem:[%s3197_s8 + $0xe1] sm:$0xff]  ;;  %v1643_v4 = vmul.f32 %v2480_v61, %v3347_v24 }
 0x15d   : > { %v1788_v2 = vld [vmem:[#allocation2 + $0xd0] sm:$0xff]  ;;  %v1263_v47 = vadd.f32 %v1261_v25, %v1259_v5  ;;  %1740 = vst.msk [vmem:[#allocation2 + $0xd8] sm:$0xff] %vm412_vm1, %v1712_v31  ;;  %v1581_v9 = vld [vmem:[#allocation2 + $0xe0] sm:$0xff]  ;;  %v1480_v44 = vmul.f32 %v2453_v3, %v3336_v17 }
 0x15e   : > { %2607 = vmatprep.mubr.msk.f32.mxu1 %vm412_vm1, %v1788_v2  ;;  %v1589_v1 = vadd.f32 %v1585_v32, %v1581_v9  ;;  %1430 = vst.msk [vmem:[#allocation2 + $0xe8] sm:$0xff] %vm412_vm1, %v1426_v33  ;;  %v1579_v27 = vld [vmem:[%s3205_s29 + $0x19] sm:$0xff]  ;;  %v1580_v5 = vld [vmem:[%s3205_s29 + $0x21] sm:$0xff] }
 0x15f   : > { %1265 = vst.msk [vmem:[#allocation2 + $0xf0] sm:$0xff] %vm412_vm1, %v1263_v47  ;;  %v1773_v10 = vld [vmem:[#allocation2 + $0x58] sm:$0xff]  ;;  %v1587_v7 = vmul.f32 %v1579_v27, %v3336_v17  ;;  %v1588_v9 = vmul.f32 %v1580_v5, %v3336_v17 }
 0x160   : > { %v1182_v18 = vld [vmem:[#allocation2 + $0x78] sm:$0xff]  ;;  %2584 = vmatmul.mubr.msk.f32.gmra.mrb[10].mxu0 %vm412_vm1, %v1773_v10  ;;  %1593 = vst.msk [vmem:[#allocation2 + $0xe0] sm:$0xff] %vm412_vm1, %v1589_v1  ;;  %v2481_v10 = vld [vmem:[%s3197_s8 + $0xe2] sm:$0xff] }
 0x161   : > { %v1342_v29 = vld [vmem:[#allocation2 + $0x70] sm:$0xff]  ;;  %v1212_v40 = vadd.f32 %v1182_v18, %v1152_v52  ;;  %v1644_v17 = vmul.f32 %v2481_v10, %v3347_v24 }
 0x162   : > { %v1370_v8 = vadd.f32 %v1342_v29, %v1314_v11  ;;  %v1669_v6 = vld [vmem:[#allocation2 + $0x60] sm:$0xff]  ;;  %v1506_v54 = vld [vmem:[#allocation2 + $0x68] sm:$0xff] }
 0x163   : > { %1242 = vst.msk [vmem:[#allocation2 + $0x78] sm:$0xff] %vm412_vm1, %v1212_v40  ;;  %v1697_v39 = vadd.f32 %v1669_v6, %v1641_v16  ;;  %v1534_v48 = vadd.f32 %v1506_v54, %v1478_v60  ;;  %v1260_v59 = vld [vmem:[#allocation2 + $0xf8] sm:$0xff] }
 0x164   : > { %1398 = vst.msk [vmem:[#allocation2 + $0x70] sm:$0xff] %vm412_vm1, %v1370_v8  ;;  %v1789_v55 = vld [vmem:[#allocation2 + $0xd8] sm:$0xff]  ;;  %v1264_v20 = vadd.f32 %v1262_v63, %v1260_v59 }
 0x165   : > { %2608 = vmatmul.mubr.msk.f32.gmra.mrb[10].mxu1 %vm412_vm1, %v1789_v55  ;;  %1725 = vst.msk [vmem:[#allocation2 + $0x60] sm:$0xff] %vm412_vm1, %v1697_v39  ;;  %1562 = vst.msk [vmem:[#allocation2 + $0x68] sm:$0xff] %vm412_vm1, %v1534_v48  ;;  %v1582_v21 = vld [vmem:[#allocation2 + $0xe8] sm:$0xff] }
 0x166   : > { %v1419_v50 = vld [vmem:[#allocation2 + $0xf0] sm:$0xff]  ;;  %v1590_v46 = vadd.f32 %v1586_v34, %v1582_v21  ;;  %1266 = vst.msk [vmem:[#allocation2 + $0xf8] sm:$0xff] %vm412_vm1, %v1264_v20 }
 0x167   : > { %v1427_v53 = vadd.f32 %v1423_v57, %v1419_v50  ;;  %v1745_v51 = vld [vmem:[#allocation2 + $0xe0] sm:$0xff] }
 0x168   : > { %v1753_v43 = vadd.f32 %v1749_v13, %v1745_v51  ;;  %1594 = vst.msk [vmem:[#allocation2 + $0xe8] sm:$0xff] %vm412_vm1, %v1590_v46  ;;  %v1743_v2 = vld [vmem:[%s3205_s29 + $0x1a] sm:$0xff]  ;;  %v1744_v40 = vld [vmem:[%s3205_s29 + $0x22] sm:$0xff] }
 0x169   : > { %1431 = vst.msk [vmem:[#allocation2 + $0xf0] sm:$0xff] %vm412_vm1, %v1427_v53  ;;  %v1751_v1 = vmul.f32 %v1743_v2, %v3347_v24  ;;  %v1752_v54 = vmul.f32 %v1744_v40, %v3347_v24 }
 0x16a   : > { %v1343_v15 = vld [vmem:[#allocation2 + $0x78] sm:$0xff]  ;;  %1757 = vst.msk [vmem:[#allocation2 + $0xe0] sm:$0xff] %vm412_vm1, %v1753_v43 }
 0x16b   : > { %v1507_v58 = vld [vmem:[#allocation2 + $0x70] sm:$0xff]  ;;  %v1371_v42 = vadd.f32 %v1343_v15, %v1315_v22 }
 0x16c   : > { %v1535_v26 = vadd.f32 %v1507_v58, %v1479_v30  ;;  %v1774_v0 = vld [vmem:[#allocation2 + $0x60] sm:$0xff]  ;;  %v1670_v37 = vld [vmem:[#allocation2 + $0x68] sm:$0xff] }
 0x16d   : > { %1399 = vst.msk [vmem:[#allocation2 + $0x78] sm:$0xff] %vm412_vm1, %v1371_v42  ;;  %2586 = vmatprep.mubr.msk.f32.mxu0 %vm412_vm1, %v1774_v0  ;;  %v1698_v25 = vadd.f32 %v1670_v37, %v1642_v23  ;;  %v1420_v45 = vld [vmem:[#allocation2 + $0xf8] sm:$0xff] }
 0x16e   : > { %1563 = vst.msk [vmem:[#allocation2 + $0x70] sm:$0xff] %vm412_vm1, %v1535_v26  ;;  %v1428_v14 = vadd.f32 %v1424_v12, %v1420_v45 }
 0x16f   : > { %1726 = vst.msk [vmem:[#allocation2 + $0x68] sm:$0xff] %vm412_vm1, %v1698_v25  ;;  %v1746_v19 = vld [vmem:[#allocation2 + $0xe8] sm:$0xff] }
 0x170   : > { %v1583_v35 = vld [vmem:[#allocation2 + $0xf0] sm:$0xff]  ;;  %v1754_v32 = vadd.f32 %v1750_v36, %v1746_v19  ;;  %1432 = vst.msk [vmem:[#allocation2 + $0xf8] sm:$0xff] %vm412_vm1, %v1428_v14 }
 0x171   : > { %v1591_v41 = vadd.f32 %v1587_v7, %v1583_v35  ;;  %v1790_v31 = vld [vmem:[#allocation2 + $0xe0] sm:$0xff] }
 0x172   : > { %2610 = vmatprep.mubr.msk.f32.mxu1 %vm412_vm1, %v1790_v31  ;;  %1758 = vst.msk [vmem:[#allocation2 + $0xe8] sm:$0xff] %vm412_vm1, %v1754_v32 }
 0x173   : > { %1595 = vst.msk [vmem:[#allocation2 + $0xf0] sm:$0xff] %vm412_vm1, %v1591_v41 }
 0x174   : > { %v1508_v33 = vld [vmem:[#allocation2 + $0x78] sm:$0xff] }
 0x175   : > { %v1671_v47 = vld [vmem:[#allocation2 + $0x70] sm:$0xff]  ;;  %v1536_v52 = vadd.f32 %v1508_v33, %v1480_v44 }
 0x176   : > { %v1699_v49 = vadd.f32 %v1671_v47, %v1643_v4  ;;  %v1775_v11 = vld [vmem:[#allocation2 + $0x68] sm:$0xff] }
 0x177   : > { %1564 = vst.msk [vmem:[#allocation2 + $0x78] sm:$0xff] %vm412_vm1, %v1536_v52  ;;  %2587 = vmatmul.mubr.msk.f32.gmra.mrb[12].mxu0 %vm412_vm1, %v1775_v11  ;;  %v1584_v16 = vld [vmem:[#allocation2 + $0xf8] sm:$0xff] }
 0x178   : > { %1727 = vst.msk [vmem:[#allocation2 + $0x70] sm:$0xff] %vm412_vm1, %v1699_v49  ;;  %v1592_v60 = vadd.f32 %v1588_v9, %v1584_v16 }
 0x179   : > { %v1791_v56 = vld [vmem:[#allocation2 + $0xe8] sm:$0xff] }
 0x17a   : > { %v1747_v18 = vld [vmem:[#allocation2 + $0xf0] sm:$0xff]  ;;  %2611 = vmatmul.mubr.msk.f32.gmra.mrb[12].mxu1 %vm412_vm1, %v1791_v56  ;;  %1596 = vst.msk [vmem:[#allocation2 + $0xf8] sm:$0xff] %vm412_vm1, %v1592_v60 }
 0x17b   : > { %v1755_v29 = vadd.f32 %v1751_v1, %v1747_v18 }
 0x17d   : > { %1759 = vst.msk [vmem:[#allocation2 + $0xf0] sm:$0xff] %vm412_vm1, %v1755_v29 }
 0x17e   : > { %v1672_v63 = vld [vmem:[#allocation2 + $0x78] sm:$0xff] }
 0x17f   : > { %v1776_v8 = vld [vmem:[#allocation2 + $0x70] sm:$0xff]  ;;  %v1700_v6 = vadd.f32 %v1672_v63, %v1644_v17 }
 0x180   : > { %2589 = vmatprep.mubr.msk.f32.mxu0 %vm412_vm1, %v1776_v8 }
 0x181   : > { %1728 = vst.msk [vmem:[#allocation2 + $0x78] sm:$0xff] %vm412_vm1, %v1700_v6  ;;  %v1748_v34 = vld [vmem:[#allocation2 + $0xf8] sm:$0xff] }
 0x182   : > { %v1756_v57 = vadd.f32 %v1752_v54, %v1748_v34 }
 0x184   : > { %v1792_v39 = vld [vmem:[#allocation2 + $0xf0] sm:$0xff]  ;;  %1760 = vst.msk [vmem:[#allocation2 + $0xf8] sm:$0xff] %vm412_vm1, %v1756_v57 }
 0x185   : > { %2613 = vmatprep.mubr.msk.f32.mxu1 %vm412_vm1, %v1792_v39 }
 0x188   : > { %v1777_v48 = vld [vmem:[#allocation2 + $0x78] sm:$0xff] }
 0x189   : > { %2590 = vmatmul.mubr.msk.f32.gmra.mrb[14].mxu0 %vm412_vm1, %v1777_v48 }
 0x18b   : > { %v1793_v38 = vld [vmem:[#allocation2 + $0xf8] sm:$0xff] }
 0x18c   : > { %2614 = vmatmul.mubr.msk.f32.gmra.mrb[14].mxu1 %vm412_vm1, %v1793_v38 }
 0x1e9   : > { %v2570_v59 = vpop.f32.mrb[0].mxu0 }
 0x1ea   : > { %2121 = vst [vmem:[%s4582_s23 + $0x8] sm:$0xff] %v2570_v59  ;;  %v1961_v24 = vpop.f32.mrb[1].mxu0 }
 0x1eb   : > { %2120 = vst [vmem:[%s4582_s23] sm:$0xff] %v1961_v24 }
 0x1ef   : > { %v2594_v55 = vpop.f32.mrb[0].mxu1 }
 0x1f0   : > { %2137 = vst [vmem:[%s4582_s23 + $0x88] sm:$0xff] %v2594_v55  ;;  %v2041_v13 = vpop.f32.mrb[1].mxu1 }
 0x1f1   : > { %2136 = vst [vmem:[%s4582_s23 + $0x80] sm:$0xff] %v2041_v13 }
 0x1f7   : > { %v2573_v62 = vpop.f32.mrb[2].mxu0 }
 0x1f8   : > { %2123 = vst [vmem:[%s4582_s23 + $0x18] sm:$0xff] %v2573_v62  ;;  %v1971_v20 = vpop.f32.mrb[3].mxu0 }
 0x1f9   : > { %2122 = vst [vmem:[%s4582_s23 + $0x10] sm:$0xff] %v1971_v20 }
 0x1fa   : > { %v2597_v21 = vpop.f32.mrb[2].mxu1 }
 0x1fb   : > { %2139 = vst [vmem:[%s4582_s23 + $0x98] sm:$0xff] %v2597_v21  ;;  %v2051_v50 = vpop.f32.mrb[3].mxu1 }
 0x1fc   : > { %2138 = vst [vmem:[%s4582_s23 + $0x90] sm:$0xff] %v2051_v50 }
 0x207   : > { %v2576_v46 = vpop.f32.mrb[4].mxu0 }
 0x208   : > { %2125 = vst [vmem:[%s4582_s23 + $0x28] sm:$0xff] %v2576_v46  ;;  %v1981_v53 = vpop.f32.mrb[5].mxu0 }
 0x209   : > { %v2600_v22 = vpop.f32.mrb[4].mxu1  ;;  %2124 = vst [vmem:[%s4582_s23 + $0x20] sm:$0xff] %v1981_v53 }
 0x20a   : > { %2141 = vst [vmem:[%s4582_s23 + $0xa8] sm:$0xff] %v2600_v22  ;;  %v2061_v51 = vpop.f32.mrb[5].mxu1 }
 0x20b   : > { %2140 = vst [vmem:[%s4582_s23 + $0xa0] sm:$0xff] %v2061_v51 }
 0x214   : > { %v2579_v30 = vpop.f32.mrb[6].mxu0 }
 0x215   : > { %2127 = vst [vmem:[%s4582_s23 + $0x38] sm:$0xff] %v2579_v30  ;;  %v1991_v28 = vpop.f32.mrb[7].mxu0 }
 0x216   : > { %2126 = vst [vmem:[%s4582_s23 + $0x30] sm:$0xff] %v1991_v28 }
 0x217   : > { %v2603_v43 = vpop.f32.mrb[6].mxu1 }
 0x218   : > { %2143 = vst [vmem:[%s4582_s23 + $0xb8] sm:$0xff] %v2603_v43  ;;  %v2071_v23 = vpop.f32.mrb[7].mxu1 }
 0x219   : > { %2142 = vst [vmem:[%s4582_s23 + $0xb0] sm:$0xff] %v2071_v23 }
 0x221   : > { %v2582_v27 = vpop.f32.mrb[8].mxu0 }
 0x222   : > { %2129 = vst [vmem:[%s4582_s23 + $0x48] sm:$0xff] %v2582_v27  ;;  %v2001_v15 = vpop.f32.mrb[9].mxu0 }
 0x223   : > { %2128 = vst [vmem:[%s4582_s23 + $0x40] sm:$0xff] %v2001_v15 }
 0x226   : > { %v2606_v58 = vpop.f32.mrb[8].mxu1 }
 0x227   : > { %2145 = vst [vmem:[%s4582_s23 + $0xc8] sm:$0xff] %v2606_v58  ;;  %v2081_v42 = vpop.f32.mrb[9].mxu1 }
 0x228   : > { %2144 = vst [vmem:[%s4582_s23 + $0xc0] sm:$0xff] %v2081_v42 }
 0x233   : > { %v2585_v12 = vpop.f32.mrb[10].mxu0 }
 0x234   : > { %2131 = vst [vmem:[%s4582_s23 + $0x58] sm:$0xff] %v2585_v12  ;;  %v2011_v26 = vpop.f32.mrb[11].mxu0 }
 0x235   : > { %2130 = vst [vmem:[%s4582_s23 + $0x50] sm:$0xff] %v2011_v26 }
 0x238   : > { %v2609_v0 = vpop.f32.mrb[10].mxu1 }
 0x239   : > { %2147 = vst [vmem:[%s4582_s23 + $0xd8] sm:$0xff] %v2609_v0  ;;  %v2091_v37 = vpop.f32.mrb[11].mxu1 }
 0x23a   : > { %2146 = vst [vmem:[%s4582_s23 + $0xd0] sm:$0xff] %v2091_v37 }
 0x24a   : > { %v2588_v36 = vpop.f32.mrb[12].mxu0 }
 0x24b   : > { %2133 = vst [vmem:[%s4582_s23 + $0x68] sm:$0xff] %v2588_v36  ;;  %v2021_v7 = vpop.f32.mrb[13].mxu0 }
 0x24c   : > { %2132 = vst [vmem:[%s4582_s23 + $0x60] sm:$0xff] %v2021_v7 }
 0x24d   : > { %v2612_v25 = vpop.f32.mrb[12].mxu1 }
 0x24e   : > { %2149 = vst [vmem:[%s4582_s23 + $0xe8] sm:$0xff] %v2612_v25  ;;  %v2101_v3 = vpop.f32.mrb[13].mxu1 }
 0x24f   : > { %2148 = vst [vmem:[%s4582_s23 + $0xe0] sm:$0xff] %v2101_v3 }
 0x25c   : > { %v2591_v45 = vpop.f32.mrb[14].mxu0 }
 0x25d   : > { %2135 = vst [vmem:[%s4582_s23 + $0x78] sm:$0xff] %v2591_v45  ;;  %v2031_v61 = vpop.f32.mrb[15].mxu0 }
 0x25e   : > { %2134 = vst [vmem:[%s4582_s23 + $0x70] sm:$0xff] %v2031_v61 }
 0x25f   : > { %v2615_v14 = vpop.f32.mrb[14].mxu1 }
 0x260   : > { %2151 = vst [vmem:[%s4582_s23 + $0xf8] sm:$0xff] %v2615_v14  ;;  %v2111_v19 = vpop.f32.mrb[15].mxu1 }
 0x261   : > { %2150 = vst [vmem:[%s4582_s23 + $0xf0] sm:$0xff] %v2111_v19 }
 0x262   : > { %2847 = shalt.err (!%p2844_p7)
}
 0x263   : > { %s2848_s10 = scalar_lea.hbm %s4619_s11, 4096  ;;  %s2852_s8 = scalar_lea.hbm %s4676_s4, 8192 }
 0x264   : > { %p2849_p11 = scmp.ne.s32.totalorder %s4619_s11, %s2848_s10  ;;  %p2853_p12 = scmp.lt.u32.totalorder %s4619_s11, %s4676_s4 }
 0x265   : > { %p2854_p13 = scmp.lt.u32.totalorder %s2852_s8, %s2848_s10  ;;  %p2856_p1 = scmp.lt.u32.totalorder %s2848_s10, %s4619_s11 }
 0x266   : > { %p2850_p2 = pnand %p2849_p11, %p4720_p6 }
 0x267   : > { %p2855_p0 = por %p2854_p13, %p2853_p12 }
 0x268   : > { %p2851_p8 = pneg %p2850_p2 }
 0x269   : > { %p2857_p10 = por %p2856_p1, %p2855_p0 }
 0x26b   : > { %p2858_p3 = pnand %p2857_p10, %p2851_p8 }
 0x26d   : > { %2861 = shalt.err (!%p2858_p3)
}
 0x26e   : > { %s2939_s25 = smov 128   ;;  %s2940_s29 = smov 8  }
 0x26f   : > { %2636 = dma.vmem_to_hbm [thread:$0]  (%p4720_p6), %s4621_s30, 4096, %s4619_s11, %s2153_s9, %s2939_s25, %s2939_s25, %s2940_s29  }
 0x270 PF: > { %s2185_s21 = sand.u32 1, %s2908_s15   ;;  %p4721_p4 = scmp.ne.s32.totalorder %s4685_s24, 0 }
 0x271   : > { %p4722_p9 = scmp.ge.s32.totalorder %s2928_s20, 2  ;;  %s2186_s23 = scalar_lea.sflag [#allocation5], %s2185_s21 }
 0x273   : > { %p2653_p5 = pnand %p4722_p9, %p4721_p4 }
 0x275   : > { %2903 = dma.done.wait (!%p2653_p5), %s2186_s23, 4096  }
 0x276   : > { %2905 = vsyncadd (!%p2653_p5), %s2186_s23, 4294963200  ;;  %s24_s20 = sadd.s32 1, %s2928_s20   ;;  %s4723_s28 = sld [smem:[#allocation17_spill]] }
 0x277   : > { %p21_p7 = scmp.ge.s32.totalorder %s24_s20, 4   ;;  %s4724_s15 = smov %s2912_s16 }
 0x278   : > { %s4725_s16 = smov %s2916_s17  ;;  %s4726_s17 = smov %s3110_s5 }
 0x279   : > { %s4727_s18 = smov %s2924_s19  ;;  %23 = sbr.rel (!%p21_p7) target bundleno = 13 (0xd), region = 111 }
 0x27c   : > { %s4728_s19 = smov %s4723_s28 }
 0x280   :  { %2191 = vsyncpa [#allocation4], 1 }
 0x281   :  { %2193 = vsyncpa [#allocation4 + $0x1], 1 }
 0x282   :  { %2194 = vsyncpa [#allocation7], 1 }
 0x283   :  { %2196 = vsyncpa [#allocation7 + $0x1], 1 }
 0x284   :  { %2197 = vsyncpa [#allocation10], 1 }
 0x285   :  { %2198 = vsyncpa [#allocation5], 1 }
 0x286   :  { %2200 = vsyncpa [#allocation5 + $0x1], 1 }

</bundles_post_ra>
